<compile_context>
chip_gen: v7x
topology: tpu7x:2x2x1
jax: 0.10.0
libtpu: 0.0.40
codegen_flags: <defaults>
</compile_context>

<pallas_src>
import functools

import jax
import jax.numpy as jnp
import numpy as np
from jax import lax
from jax.experimental import pallas as pl
from jax.experimental.pallas import tpu as pltpu

EPS = 1e-5  # torch.nn.InstanceNorm2d default (affine=False, biased variance)


# ---------------------------------------------------------------------------
# Fused kernel: one batch element per grid step.
#   xpad_ref : (1, L, C)  reflection-padded input, flat (Hp*Wp) + Wp zero guard rows
#   w1_ref   : (9, C, C)  conv1 weights, tap-major (ky, kx), (cin, cout)
#   w2_ref   : (9, C, C)  conv2 weights
#   mask_ref : (H*Wp, 1)  1.0 on valid columns, 0.0 on the 2 junk columns per row
#   o_ref    : (1, H*Wp, C) output in the same "wide" layout (junk cols sliced in JAX)
#   h1pad_ref: (L, C) f32 VMEM scratch holding ReflectionPad2d(1)(h1)
# ---------------------------------------------------------------------------
def _resblock_kernel(xpad_ref, w1_ref, w2_ref, mask_ref, o_ref, h1pad_ref, *,
                     H, W, compute_dtype):
    Hp, Wp = H + 2, W + 2
    HWp = H * Wp          # rows of the "wide" output layout
    HpWp = Hp * Wp        # rows of the padded slab
    inv_n = 1.0 / float(H * W)
    C = h1pad_ref.shape[-1]
    mask = mask_ref[...]  # (HWp, 1) f32

    def conv3x3(load_tap, w_ref):
        # 9 shifted slices of the padded slab, each fed to the MXU; f32 accumulate.
        acc = None
        for k in range(9):
            dy, dx = divmod(k, 3)
            a = load_tap(dy * Wp + dx).astype(compute_dtype)
            p = jnp.dot(a, w_ref[k].astype(compute_dtype),
                        preferred_element_type=jnp.float32)
            acc = p if acc is None else acc + p
        return acc        # (HWp, C) f32

    def instance_norm(acc):
        # biased per-channel stats over the H*W valid positions only (junk cols masked)
        mean = jnp.sum(acc * mask, axis=0, keepdims=True) * inv_n
        d = acc - mean                                  # reused for var AND normalize
        var = jnp.sum(d * d * mask, axis=0, keepdims=True) * inv_n
        return d * lax.rsqrt(var + EPS)

    # ---- stage 1: Conv3x3 -> InstanceNorm -> ReLU (bias cancelled by IN) ----
    h1 = jnp.maximum(
        instance_norm(conv3x3(lambda off: xpad_ref[0, pl.ds(off, HWp), :], w1_ref)),
        0.0)

    # ---- rebuild ReflectionPad2d(1)(h1) in the VMEM scratch (flat layout) ----
    # zero guard rows past the padded slab (keeps every shifted tap read in-bounds)
    h1pad_ref[pl.ds(HpWp, Wp), :] = jnp.zeros((Wp, C), h1pad_ref.dtype)
    # interior copy: junk columns of h1 land exactly on pad columns and are fixed below
    h1pad_ref[pl.ds(Wp + 1, HWp), :] = h1
    # left / right pad columns of interior rows = reflection of columns 1 / W-2
    for r in range(1, H + 1):           # static unroll: tiny ref-to-ref row copies
        base = r * Wp
        h1pad_ref[pl.ds(base, 1), :] = h1pad_ref[pl.ds(base + 2, 1), :]
        h1pad_ref[pl.ds(base + Wp - 1, 1), :] = h1pad_ref[pl.ds(base + Wp - 3, 1), :]
    # top / bottom padded rows = reflection of padded rows 2 / Hp-3
    h1pad_ref[pl.ds(0, Wp), :] = h1pad_ref[pl.ds(2 * Wp, Wp), :]
    h1pad_ref[pl.ds((Hp - 1) * Wp, Wp), :] = h1pad_ref[pl.ds((Hp - 3) * Wp, Wp), :]

    # ---- stage 2: Conv3x3 -> InstanceNorm -> residual add ----
    h2 = instance_norm(conv3x3(lambda off: h1pad_ref[pl.ds(off, HWp), :], w2_ref))
    x_res = xpad_ref[0, pl.ds(Wp + 1, HWp), :]   # original x in the same wide layout (f32)
    o_ref[0] = (x_res + h2).astype(o_ref.dtype)


# ---------------------------------------------------------------------------
# Wrapper: layout glue only (transpose, reflection pad, weight reshaping).
# ---------------------------------------------------------------------------
def residual_block(x_nchw, w1, b1, w2, b2, *, compute_dtype=jnp.float32):
    """x_nchw: (N, C, H, W); w*: (C, C, 3, 3) torch OIHW; b*: (C,) (cancelled by IN)."""
    del b1, b2  # exactly cancelled by InstanceNorm2d(affine=False): dead work removed
    x = jnp.transpose(x_nchw, (0, 2, 3, 1)).astype(jnp.float32)   # NHWC, C on lanes
    N, H, W, C = x.shape
    assert H >= 2 and W >= 2, "ReflectionPad2d(1) requires H, W >= 2"
    Hp, Wp = H + 2, W + 2
    HWp, HpWp = H * Wp, Hp * Wp
    L = HpWp + Wp   # + Wp zero guard rows so every shifted tap slice stays in-bounds

    # reflection pad in JAX (~6% layout glue; the 9x im2col blow-up is gone)
    xpad = jnp.pad(x, ((0, 0), (1, 1), (1, 1), (0, 0)), mode="reflect").reshape(N, HpWp, C)
    xpad = jnp.pad(xpad, ((0, 0), (0, L - HpWp), (0, 0)))          # zero guard rows

    # OIHW -> (tap=(ky,kx), cin, cout); cast to the MXU compute dtype (bf16 on v6e/v7x)
    wk1 = jnp.transpose(w1, (2, 3, 1, 0)).reshape(9, C, C).astype(compute_dtype)
    wk2 = jnp.transpose(w2, (2, 3, 1, 0)).reshape(9, C, C).astype(compute_dtype)

    # valid-column mask for the (H, Wp) wide layout
    mask = jnp.asarray(((np.arange(HWp) % Wp) < W).astype(np.float32)).reshape(HWp, 1)

    # explicit VMEM budget: double-buffered blocks + scratch + live f32 temporaries
    cbytes = np.dtype(compute_dtype).itemsize
    est = (2 * L * C * 4 + 2 * HWp * C * 4 + 4 * 9 * C * C * cbytes
           + 2 * HWp * 4 + L * C * 4 + 4 * HWp * C * 4)
    vmem_limit = int(min(max(2 * est, 32 * 1024 * 1024), 100 * 1024 * 1024))
    # TODO(synk): for very large images/channels (whole-image footprint > ~24 MB) add an
    # HW-tiled two-pass InstanceNorm variant so v7x's 64 MiB physical VMEM is never exceeded.

    kernel = functools.partial(_resblock_kernel, H=H, W=W, compute_dtype=compute_dtype)
    out_wide = pl.pallas_call(
        kernel,
        out_shape=jax.ShapeDtypeStruct((N, HWp, C), jnp.float32),
        grid=(N,),
        in_specs=[
            pl.BlockSpec((1, L, C), lambda n: (n, 0, 0)),     # padded input slab
            pl.BlockSpec((9, C, C), lambda n: (0, 0, 0)),     # conv1 weights (grid-invariant)
            pl.BlockSpec((9, C, C), lambda n: (0, 0, 0)),     # conv2 weights
            pl.BlockSpec((HWp, 1), lambda n: (0, 0)),         # valid-column mask
        ],
        out_specs=pl.BlockSpec((1, HWp, C), lambda n: (n, 0, 0)),
        scratch_shapes=[pltpu.VMEM((L, C), jnp.float32)],     # reflection-padded h1
        compiler_params=pltpu.CompilerParams(
            dimension_semantics=("parallel",),                # batch across cores (v7x)
            vmem_limit_bytes=vmem_limit),
    )(xpad, wk1, wk2, mask)

    # drop the 2 junk columns per row and go back to NCHW
    y = out_wide.reshape(N, H, Wp, C)[:, :, :W, :]
    return jnp.transpose(y, (0, 3, 1, 2))


# ---------------------------------------------------------------------------
# Pure-JAX reference (mirrors the PyTorch module, including the conv biases)
# ---------------------------------------------------------------------------
def residual_block_ref(x, w1, b1, w2, b2):
    def conv(h, w, b):
        hp = jnp.pad(h, ((0, 0), (0, 0), (1, 1), (1, 1)), mode="reflect")
        out = lax.conv_general_dilated(
            hp, w, window_strides=(1, 1), padding="VALID",
            dimension_numbers=("NCHW", "OIHW", "NCHW"),
            precision=lax.Precision.HIGHEST)
        return out + b[None, :, None, None]

    def inorm(h):
        m = jnp.mean(h, axis=(2, 3), keepdims=True)
        v = jnp.mean(jnp.square(h - m), axis=(2, 3), keepdims=True)
        return (h - m) * lax.rsqrt(v + EPS)

    h = jnp.maximum(inorm(conv(x, w1, b1)), 0.0)
    h = inorm(conv(h, w2, b2))
    return x + h


if __name__ == "__main__":
    N, C, H, W = 2, 4, 16, 16

    key = jax.random.PRNGKey(0)
    kx, kw1, kb1, kw2, kb2 = jax.random.split(key, 5)
    x = jax.random.normal(kx, (N, C, H, W), dtype=jnp.float32)
    w1 = 0.2 * jax.random.normal(kw1, (C, C, 3, 3), dtype=jnp.float32)
    b1 = 0.1 * jax.random.normal(kb1, (C,), dtype=jnp.float32)
    w2 = 0.2 * jax.random.normal(kw2, (C, C, 3, 3), dtype=jnp.float32)
    b2 = 0.1 * jax.random.normal(kb2, (C,), dtype=jnp.float32)

    ref = jax.block_until_ready(residual_block_ref(x, w1, b1, w2, b2))

    # f32 MXU path: tight correctness check
    out_f32 = jax.block_until_ready(
        jax.jit(functools.partial(residual_block, compute_dtype=jnp.float32))(
            x, w1, b1, w2, b2))
    np.testing.assert_allclose(np.asarray(out_f32), np.asarray(ref), atol=1e-2, rtol=1e-2)

    # bf16 MXU operands (production default on v6e/v7x); stats/residual stay f32
    out_bf16 = jax.block_until_ready(
        jax.jit(functools.partial(residual_block, compute_dtype=jnp.bfloat16))(
            x, w1, b1, w2, b2))
    np.testing.assert_allclose(np.asarray(out_bf16), np.asarray(ref), atol=5e-2, rtol=5e-2)

    print("KERNEL_OK")
</pallas_src>

<mosaic_0001>
module attributes {stable_mosaic.version = 11 : i64} {
  func.func @_resblock_kernel(%arg0: i32, %arg1: memref<1x342x4xf32, #tpu.memory_space<vmem>>, %arg2: memref<9x4x4xf32, #tpu.memory_space<vmem>>, %arg3: memref<9x4x4xf32, #tpu.memory_space<vmem>>, %arg4: memref<288x1xf32, #tpu.memory_space<vmem>>, %arg5: memref<1x288x4xf32, #tpu.memory_space<vmem>>, %arg6: memref<342x4xf32, #tpu.memory_space<vmem>>) attributes {dimension_semantics = [#tpu.dimension_semantics<parallel>], iteration_bounds = array<i64: 2>, scalar_prefetch = 0 : i64, scratch_operands = 1 : i64, tpu.core_type = #tpu.core_type<tc>, window_params = [{transform_indices = @transform_0, window_bounds = array<i64: 1, 342, 4>}, {pipeline_mode = #tpu.pipeline_mode<synchronous>, transform_indices = @transform_1, window_bounds = array<i64: 9, 4, 4>}, {pipeline_mode = #tpu.pipeline_mode<synchronous>, transform_indices = @transform_2, window_bounds = array<i64: 9, 4, 4>}, {pipeline_mode = #tpu.pipeline_mode<synchronous>, transform_indices = @transform_3, window_bounds = array<i64: 288, 1>}, {transform_indices = @transform_4, window_bounds = array<i64: 1, 288, 4>}]} {
    %c0 = arith.constant 0 : index
    %c0_0 = arith.constant 0 : index
    %0 = vector.load %arg4[%c0, %c0_0] : memref<288x1xf32, #tpu.memory_space<vmem>>, vector<288x1xf32>
    %c0_1 = arith.constant 0 : index
    %c0_2 = arith.constant 0 : index
    %c0_3 = arith.constant 0 : index
    %1 = vector.load %arg1[%c0_1, %c0_2, %c0_3] : memref<1x342x4xf32, #tpu.memory_space<vmem>>, vector<1x288x4xf32>
    %2 = vector.shape_cast %1 : vector<1x288x4xf32> to vector<288x4xf32>
    %c0_4 = arith.constant 0 : index
    %c0_5 = arith.constant 0 : index
    %c0_6 = arith.constant 0 : index
    %3 = vector.load %arg2[%c0_4, %c0_5, %c0_6] : memref<9x4x4xf32, #tpu.memory_space<vmem>>, vector<1x4x4xf32>
    %4 = vector.shape_cast %3 : vector<1x4x4xf32> to vector<4x4xf32>
    %cst = arith.constant dense<0.000000e+00> : vector<288x4xf32>
    %5 = tpu.matmul %2, %4, %cst {dimension_numbers = #tpu.dot_dimension_numbers<[1], [0], [0], [1], [0, 0, 1, 1], [], []>} : vector<288x4xf32>, vector<4x4xf32>, vector<288x4xf32> -> vector<288x4xf32>
    %c0_7 = arith.constant 0 : index
    %c1 = arith.constant 1 : index
    %c0_8 = arith.constant 0 : index
    %6 = vector.load %arg1[%c0_7, %c1, %c0_8] : memref<1x342x4xf32, #tpu.memory_space<vmem>>, vector<1x288x4xf32>
    %7 = vector.shape_cast %6 : vector<1x288x4xf32> to vector<288x4xf32>
    %c1_9 = arith.constant 1 : index
    %c0_10 = arith.constant 0 : index
    %c0_11 = arith.constant 0 : index
    %8 = vector.load %arg2[%c1_9, %c0_10, %c0_11] : memref<9x4x4xf32, #tpu.memory_space<vmem>>, vector<1x4x4xf32>
    %9 = vector.shape_cast %8 : vector<1x4x4xf32> to vector<4x4xf32>
    %cst_12 = arith.constant dense<0.000000e+00> : vector<288x4xf32>
    %10 = tpu.matmul %7, %9, %cst_12 {dimension_numbers = #tpu.dot_dimension_numbers<[1], [0], [0], [1], [0, 0, 1, 1], [], []>} : vector<288x4xf32>, vector<4x4xf32>, vector<288x4xf32> -> vector<288x4xf32>
    %11 = arith.addf %5, %10 : vector<288x4xf32>
    %c0_13 = arith.constant 0 : index
    %c2 = arith.constant 2 : index
    %c0_14 = arith.constant 0 : index
    %12 = vector.load %arg1[%c0_13, %c2, %c0_14] : memref<1x342x4xf32, #tpu.memory_space<vmem>>, vector<1x288x4xf32>
    %13 = vector.shape_cast %12 : vector<1x288x4xf32> to vector<288x4xf32>
    %c2_15 = arith.constant 2 : index
    %c0_16 = arith.constant 0 : index
    %c0_17 = arith.constant 0 : index
    %14 = vector.load %arg2[%c2_15, %c0_16, %c0_17] : memref<9x4x4xf32, #tpu.memory_space<vmem>>, vector<1x4x4xf32>
    %15 = vector.shape_cast %14 : vector<1x4x4xf32> to vector<4x4xf32>
    %cst_18 = arith.constant dense<0.000000e+00> : vector<288x4xf32>
    %16 = tpu.matmul %13, %15, %cst_18 {dimension_numbers = #tpu.dot_dimension_numbers<[1], [0], [0], [1], [0, 0, 1, 1], [], []>} : vector<288x4xf32>, vector<4x4xf32>, vector<288x4xf32> -> vector<288x4xf32>
    %17 = arith.addf %11, %16 : vector<288x4xf32>
    %c0_19 = arith.constant 0 : index
    %c18 = arith.constant 18 : index
    %c0_20 = arith.constant 0 : index
    %18 = vector.load %arg1[%c0_19, %c18, %c0_20] : memref<1x342x4xf32, #tpu.memory_space<vmem>>, vector<1x288x4xf32>
    %19 = vector.shape_cast %18 : vector<1x288x4xf32> to vector<288x4xf32>
    %c3 = arith.constant 3 : index
    %c0_21 = arith.constant 0 : index
    %c0_22 = arith.constant 0 : index
    %20 = vector.load %arg2[%c3, %c0_21, %c0_22] : memref<9x4x4xf32, #tpu.memory_space<vmem>>, vector<1x4x4xf32>
    %21 = vector.shape_cast %20 : vector<1x4x4xf32> to vector<4x4xf32>
    %cst_23 = arith.constant dense<0.000000e+00> : vector<288x4xf32>
    %22 = tpu.matmul %19, %21, %cst_23 {dimension_numbers = #tpu.dot_dimension_numbers<[1], [0], [0], [1], [0, 0, 1, 1], [], []>} : vector<288x4xf32>, vector<4x4xf32>, vector<288x4xf32> -> vector<288x4xf32>
    %23 = arith.addf %17, %22 : vector<288x4xf32>
    %c0_24 = arith.constant 0 : index
    %c19 = arith.constant 19 : index
    %c0_25 = arith.constant 0 : index
    %24 = vector.load %arg1[%c0_24, %c19, %c0_25] : memref<1x342x4xf32, #tpu.memory_space<vmem>>, vector<1x288x4xf32>
    %25 = vector.shape_cast %24 : vector<1x288x4xf32> to vector<288x4xf32>
    %c4 = arith.constant 4 : index
    %c0_26 = arith.constant 0 : index
    %c0_27 = arith.constant 0 : index
    %26 = vector.load %arg2[%c4, %c0_26, %c0_27] : memref<9x4x4xf32, #tpu.memory_space<vmem>>, vector<1x4x4xf32>
    %27 = vector.shape_cast %26 : vector<1x4x4xf32> to vector<4x4xf32>
    %cst_28 = arith.constant dense<0.000000e+00> : vector<288x4xf32>
    %28 = tpu.matmul %25, %27, %cst_28 {dimension_numbers = #tpu.dot_dimension_numbers<[1], [0], [0], [1], [0, 0, 1, 1], [], []>} : vector<288x4xf32>, vector<4x4xf32>, vector<288x4xf32> -> vector<288x4xf32>
    %29 = arith.addf %23, %28 : vector<288x4xf32>
    %c0_29 = arith.constant 0 : index
    %c20 = arith.constant 20 : index
    %c0_30 = arith.constant 0 : index
    %30 = vector.load %arg1[%c0_29, %c20, %c0_30] : memref<1x342x4xf32, #tpu.memory_space<vmem>>, vector<1x288x4xf32>
    %31 = vector.shape_cast %30 : vector<1x288x4xf32> to vector<288x4xf32>
    %c5 = arith.constant 5 : index
    %c0_31 = arith.constant 0 : index
    %c0_32 = arith.constant 0 : index
    %32 = vector.load %arg2[%c5, %c0_31, %c0_32] : memref<9x4x4xf32, #tpu.memory_space<vmem>>, vector<1x4x4xf32>
    %33 = vector.shape_cast %32 : vector<1x4x4xf32> to vector<4x4xf32>
    %cst_33 = arith.constant dense<0.000000e+00> : vector<288x4xf32>
    %34 = tpu.matmul %31, %33, %cst_33 {dimension_numbers = #tpu.dot_dimension_numbers<[1], [0], [0], [1], [0, 0, 1, 1], [], []>} : vector<288x4xf32>, vector<4x4xf32>, vector<288x4xf32> -> vector<288x4xf32>
    %35 = arith.addf %29, %34 : vector<288x4xf32>
    %c0_34 = arith.constant 0 : index
    %c36 = arith.constant 36 : index
    %c0_35 = arith.constant 0 : index
    %36 = vector.load %arg1[%c0_34, %c36, %c0_35] : memref<1x342x4xf32, #tpu.memory_space<vmem>>, vector<1x288x4xf32>
    %37 = vector.shape_cast %36 : vector<1x288x4xf32> to vector<288x4xf32>
    %c6 = arith.constant 6 : index
    %c0_36 = arith.constant 0 : index
    %c0_37 = arith.constant 0 : index
    %38 = vector.load %arg2[%c6, %c0_36, %c0_37] : memref<9x4x4xf32, #tpu.memory_space<vmem>>, vector<1x4x4xf32>
    %39 = vector.shape_cast %38 : vector<1x4x4xf32> to vector<4x4xf32>
    %cst_38 = arith.constant dense<0.000000e+00> : vector<288x4xf32>
    %40 = tpu.matmul %37, %39, %cst_38 {dimension_numbers = #tpu.dot_dimension_numbers<[1], [0], [0], [1], [0, 0, 1, 1], [], []>} : vector<288x4xf32>, vector<4x4xf32>, vector<288x4xf32> -> vector<288x4xf32>
    %41 = arith.addf %35, %40 : vector<288x4xf32>
    %c0_39 = arith.constant 0 : index
    %c37 = arith.constant 37 : index
    %c0_40 = arith.constant 0 : index
    %42 = vector.load %arg1[%c0_39, %c37, %c0_40] : memref<1x342x4xf32, #tpu.memory_space<vmem>>, vector<1x288x4xf32>
    %43 = vector.shape_cast %42 : vector<1x288x4xf32> to vector<288x4xf32>
    %c7 = arith.constant 7 : index
    %c0_41 = arith.constant 0 : index
    %c0_42 = arith.constant 0 : index
    %44 = vector.load %arg2[%c7, %c0_41, %c0_42] : memref<9x4x4xf32, #tpu.memory_space<vmem>>, vector<1x4x4xf32>
    %45 = vector.shape_cast %44 : vector<1x4x4xf32> to vector<4x4xf32>
    %cst_43 = arith.constant dense<0.000000e+00> : vector<288x4xf32>
    %46 = tpu.matmul %43, %45, %cst_43 {dimension_numbers = #tpu.dot_dimension_numbers<[1], [0], [0], [1], [0, 0, 1, 1], [], []>} : vector<288x4xf32>, vector<4x4xf32>, vector<288x4xf32> -> vector<288x4xf32>
    %47 = arith.addf %41, %46 : vector<288x4xf32>
    %c0_44 = arith.constant 0 : index
    %c38 = arith.constant 38 : index
    %c0_45 = arith.constant 0 : index
    %48 = vector.load %arg1[%c0_44, %c38, %c0_45] : memref<1x342x4xf32, #tpu.memory_space<vmem>>, vector<1x288x4xf32>
    %49 = vector.shape_cast %48 : vector<1x288x4xf32> to vector<288x4xf32>
    %c8 = arith.constant 8 : index
    %c0_46 = arith.constant 0 : index
    %c0_47 = arith.constant 0 : index
    %50 = vector.load %arg2[%c8, %c0_46, %c0_47] : memref<9x4x4xf32, #tpu.memory_space<vmem>>, vector<1x4x4xf32>
    %51 = vector.shape_cast %50 : vector<1x4x4xf32> to vector<4x4xf32>
    %cst_48 = arith.constant dense<0.000000e+00> : vector<288x4xf32>
    %52 = tpu.matmul %49, %51, %cst_48 {dimension_numbers = #tpu.dot_dimension_numbers<[1], [0], [0], [1], [0, 0, 1, 1], [], []>} : vector<288x4xf32>, vector<4x4xf32>, vector<288x4xf32> -> vector<288x4xf32>
    %53 = arith.addf %47, %52 : vector<288x4xf32>
    %54 = vector.broadcast %0 : vector<288x1xf32> to vector<288x4xf32>
    %55 = arith.mulf %53, %54 : vector<288x4xf32>
    %cst_49 = arith.constant dense<0.000000e+00> : vector<4xf32>
    %56 = vector.multi_reduction <add>, %55, %cst_49 [0] : vector<288x4xf32> to vector<4xf32>
    %57 = vector.shape_cast %56 : vector<4xf32> to vector<1x4xf32>
    %cst_50 = arith.constant 3.906250e-03 : f32
    %58 = vector.broadcast %cst_50 : f32 to vector<1x4xf32>
    %59 = arith.mulf %57, %58 : vector<1x4xf32>
    %60 = vector.broadcast %59 : vector<1x4xf32> to vector<288x4xf32>
    %61 = arith.subf %53, %60 : vector<288x4xf32>
    %62 = arith.mulf %61, %61 : vector<288x4xf32>
    %63 = vector.broadcast %0 : vector<288x1xf32> to vector<288x4xf32>
    %64 = arith.mulf %62, %63 : vector<288x4xf32>
    %cst_51 = arith.constant dense<0.000000e+00> : vector<4xf32>
    %65 = vector.multi_reduction <add>, %64, %cst_51 [0] : vector<288x4xf32> to vector<4xf32>
    %66 = vector.shape_cast %65 : vector<4xf32> to vector<1x4xf32>
    %cst_52 = arith.constant 3.906250e-03 : f32
    %67 = vector.broadcast %cst_52 : f32 to vector<1x4xf32>
    %68 = arith.mulf %66, %67 : vector<1x4xf32>
    %cst_53 = arith.constant 9.99999974E-6 : f32
    %69 = vector.broadcast %cst_53 : f32 to vector<1x4xf32>
    %70 = arith.addf %68, %69 : vector<1x4xf32>
    %71 = math.rsqrt %70 : vector<1x4xf32>
    %72 = vector.broadcast %71 : vector<1x4xf32> to vector<288x4xf32>
    %73 = arith.mulf %61, %72 : vector<288x4xf32>
    %cst_54 = arith.constant 0.000000e+00 : f32
    %74 = vector.broadcast %cst_54 : f32 to vector<288x4xf32>
    %75 = arith.maximumf %73, %74 : vector<288x4xf32>
    %cst_55 = arith.constant 0.000000e+00 : f32
    %76 = vector.broadcast %cst_55 : f32 to vector<18x4xf32>
    %c324 = arith.constant 324 : index
    %c0_56 = arith.constant 0 : index
    %77 = vector.load %arg6[%c324, %c0_56] : memref<342x4xf32, #tpu.memory_space<vmem>>, vector<18x4xf32>
    tpu.vector_store %arg6[%c324, %c0_56], %76 {strides = array<i32>} : memref<342x4xf32, #tpu.memory_space<vmem>>, vector<18x4xf32>,
    %c19_57 = arith.constant 19 : index
    %c0_58 = arith.constant 0 : index
    %78 = vector.load %arg6[%c19_57, %c0_58] : memref<342x4xf32, #tpu.memory_space<vmem>>, vector<288x4xf32>
    tpu.vector_store %arg6[%c19_57, %c0_58], %75 {strides = array<i32>} : memref<342x4xf32, #tpu.memory_space<vmem>>, vector<288x4xf32>,
    %c20_59 = arith.constant 20 : index
    %c0_60 = arith.constant 0 : index
    %79 = vector.load %arg6[%c20_59, %c0_60] : memref<342x4xf32, #tpu.memory_space<vmem>>, vector<1x4xf32>
    %c18_61 = arith.constant 18 : index
    %c0_62 = arith.constant 0 : index
    %80 = vector.load %arg6[%c18_61, %c0_62] : memref<342x4xf32, #tpu.memory_space<vmem>>, vector<1x4xf32>
    tpu.vector_store %arg6[%c18_61, %c0_62], %79 {strides = array<i32>} : memref<342x4xf32, #tpu.memory_space<vmem>>, vector<1x4xf32>,
    %c33 = arith.constant 33 : index
    %c0_63 = arith.constant 0 : index
    %81 = vector.load %arg6[%c33, %c0_63] : memref<342x4xf32, #tpu.memory_space<vmem>>, vector<1x4xf32>
    %c35 = arith.constant 35 : index
    %c0_64 = arith.constant 0 : index
    %82 = vector.load %arg6[%c35, %c0_64] : memref<342x4xf32, #tpu.memory_space<vmem>>, vector<1x4xf32>
    tpu.vector_store %arg6[%c35, %c0_64], %81 {strides = array<i32>} : memref<342x4xf32, #tpu.memory_space<vmem>>, vector<1x4xf32>,
    %c38_65 = arith.constant 38 : index
    %c0_66 = arith.constant 0 : index
    %83 = vector.load %arg6[%c38_65, %c0_66] : memref<342x4xf32, #tpu.memory_space<vmem>>, vector<1x4xf32>
    %c36_67 = arith.constant 36 : index
    %c0_68 = arith.constant 0 : index
    %84 = vector.load %arg6[%c36_67, %c0_68] : memref<342x4xf32, #tpu.memory_space<vmem>>, vector<1x4xf32>
    tpu.vector_store %arg6[%c36_67, %c0_68], %83 {strides = array<i32>} : memref<342x4xf32, #tpu.memory_space<vmem>>, vector<1x4xf32>,
    %c51 = arith.constant 51 : index
    %c0_69 = arith.constant 0 : index
    %85 = vector.load %arg6[%c51, %c0_69] : memref<342x4xf32, #tpu.memory_space<vmem>>, vector<1x4xf32>
    %c53 = arith.constant 53 : index
    %c0_70 = arith.constant 0 : index
    %86 = vector.load %arg6[%c53, %c0_70] : memref<342x4xf32, #tpu.memory_space<vmem>>, vector<1x4xf32>
    tpu.vector_store %arg6[%c53, %c0_70], %85 {strides = array<i32>} : memref<342x4xf32, #tpu.memory_space<vmem>>, vector<1x4xf32>,
    %c56 = arith.constant 56 : index
    %c0_71 = arith.constant 0 : index
    %87 = vector.load %arg6[%c56, %c0_71] : memref<342x4xf32, #tpu.memory_space<vmem>>, vector<1x4xf32>
    %c54 = arith.constant 54 : index
    %c0_72 = arith.constant 0 : index
    %88 = vector.load %arg6[%c54, %c0_72] : memref<342x4xf32, #tpu.memory_space<vmem>>, vector<1x4xf32>
    tpu.vector_store %arg6[%c54, %c0_72], %87 {strides = array<i32>} : memref<342x4xf32, #tpu.memory_space<vmem>>, vector<1x4xf32>,
    %c69 = arith.constant 69 : index
    %c0_73 = arith.constant 0 : index
    %89 = vector.load %arg6[%c69, %c0_73] : memref<342x4xf32, #tpu.memory_space<vmem>>, vector<1x4xf32>
    %c71 = arith.constant 71 : index
    %c0_74 = arith.constant 0 : index
    %90 = vector.load %arg6[%c71, %c0_74] : memref<342x4xf32, #tpu.memory_space<vmem>>, vector<1x4xf32>
    tpu.vector_store %arg6[%c71, %c0_74], %89 {strides = array<i32>} : memref<342x4xf32, #tpu.memory_space<vmem>>, vector<1x4xf32>,
    %c74 = arith.constant 74 : index
    %c0_75 = arith.constant 0 : index
    %91 = vector.load %arg6[%c74, %c0_75] : memref<342x4xf32, #tpu.memory_space<vmem>>, vector<1x4xf32>
    %c72 = arith.constant 72 : index
    %c0_76 = arith.constant 0 : index
    %92 = vector.load %arg6[%c72, %c0_76] : memref<342x4xf32, #tpu.memory_space<vmem>>, vector<1x4xf32>
    tpu.vector_store %arg6[%c72, %c0_76], %91 {strides = array<i32>} : memref<342x4xf32, #tpu.memory_space<vmem>>, vector<1x4xf32>,
    %c87 = arith.constant 87 : index
    %c0_77 = arith.constant 0 : index
    %93 = vector.load %arg6[%c87, %c0_77] : memref<342x4xf32, #tpu.memory_space<vmem>>, vector<1x4xf32>
    %c89 = arith.constant 89 : index
    %c0_78 = arith.constant 0 : index
    %94 = vector.load %arg6[%c89, %c0_78] : memref<342x4xf32, #tpu.memory_space<vmem>>, vector<1x4xf32>
    tpu.vector_store %arg6[%c89, %c0_78], %93 {strides = array<i32>} : memref<342x4xf32, #tpu.memory_space<vmem>>, vector<1x4xf32>,
    %c92 = arith.constant 92 : index
    %c0_79 = arith.constant 0 : index
    %95 = vector.load %arg6[%c92, %c0_79] : memref<342x4xf32, #tpu.memory_space<vmem>>, vector<1x4xf32>
    %c90 = arith.constant 90 : index
    %c0_80 = arith.constant 0 : index
    %96 = vector.load %arg6[%c90, %c0_80] : memref<342x4xf32, #tpu.memory_space<vmem>>, vector<1x4xf32>
    tpu.vector_store %arg6[%c90, %c0_80], %95 {strides = array<i32>} : memref<342x4xf32, #tpu.memory_space<vmem>>, vector<1x4xf32>,
    %c105 = arith.constant 105 : index
    %c0_81 = arith.constant 0 : index
    %97 = vector.load %arg6[%c105, %c0_81] : memref<342x4xf32, #tpu.memory_space<vmem>>, vector<1x4xf32>
    %c107 = arith.constant 107 : index
    %c0_82 = arith.constant 0 : index
    %98 = vector.load %arg6[%c107, %c0_82] : memref<342x4xf32, #tpu.memory_space<vmem>>, vector<1x4xf32>
    tpu.vector_store %arg6[%c107, %c0_82], %97 {strides = array<i32>} : memref<342x4xf32, #tpu.memory_space<vmem>>, vector<1x4xf32>,
    %c110 = arith.constant 110 : index
    %c0_83 = arith.constant 0 : index
    %99 = vector.load %arg6[%c110, %c0_83] : memref<342x4xf32, #tpu.memory_space<vmem>>, vector<1x4xf32>
    %c108 = arith.constant 108 : index
    %c0_84 = arith.constant 0 : index
    %100 = vector.load %arg6[%c108, %c0_84] : memref<342x4xf32, #tpu.memory_space<vmem>>, vector<1x4xf32>
    tpu.vector_store %arg6[%c108, %c0_84], %99 {strides = array<i32>} : memref<342x4xf32, #tpu.memory_space<vmem>>, vector<1x4xf32>,
    %c123 = arith.constant 123 : index
    %c0_85 = arith.constant 0 : index
    %101 = vector.load %arg6[%c123, %c0_85] : memref<342x4xf32, #tpu.memory_space<vmem>>, vector<1x4xf32>
    %c125 = arith.constant 125 : index
    %c0_86 = arith.constant 0 : index
    %102 = vector.load %arg6[%c125, %c0_86] : memref<342x4xf32, #tpu.memory_space<vmem>>, vector<1x4xf32>
    tpu.vector_store %arg6[%c125, %c0_86], %101 {strides = array<i32>} : memref<342x4xf32, #tpu.memory_space<vmem>>, vector<1x4xf32>,
    %c128 = arith.constant 128 : index
    %c0_87 = arith.constant 0 : index
    %103 = vector.load %arg6[%c128, %c0_87] : memref<342x4xf32, #tpu.memory_space<vmem>>, vector<1x4xf32>
    %c126 = arith.constant 126 : index
    %c0_88 = arith.constant 0 : index
    %104 = vector.load %arg6[%c126, %c0_88] : memref<342x4xf32, #tpu.memory_space<vmem>>, vector<1x4xf32>
    tpu.vector_store %arg6[%c126, %c0_88], %103 {strides = array<i32>} : memref<342x4xf32, #tpu.memory_space<vmem>>, vector<1x4xf32>,
    %c141 = arith.constant 141 : index
    %c0_89 = arith.constant 0 : index
    %105 = vector.load %arg6[%c141, %c0_89] : memref<342x4xf32, #tpu.memory_space<vmem>>, vector<1x4xf32>
    %c143 = arith.constant 143 : index
    %c0_90 = arith.constant 0 : index
    %106 = vector.load %arg6[%c143, %c0_90] : memref<342x4xf32, #tpu.memory_space<vmem>>, vector<1x4xf32>
    tpu.vector_store %arg6[%c143, %c0_90], %105 {strides = array<i32>} : memref<342x4xf32, #tpu.memory_space<vmem>>, vector<1x4xf32>,
    %c146 = arith.constant 146 : index
    %c0_91 = arith.constant 0 : index
    %107 = vector.load %arg6[%c146, %c0_91] : memref<342x4xf32, #tpu.memory_space<vmem>>, vector<1x4xf32>
    %c144 = arith.constant 144 : index
    %c0_92 = arith.constant 0 : index
    %108 = vector.load %arg6[%c144, %c0_92] : memref<342x4xf32, #tpu.memory_space<vmem>>, vector<1x4xf32>
    tpu.vector_store %arg6[%c144, %c0_92], %107 {strides = array<i32>} : memref<342x4xf32, #tpu.memory_space<vmem>>, vector<1x4xf32>,
    %c159 = arith.constant 159 : index
    %c0_93 = arith.constant 0 : index
    %109 = vector.load %arg6[%c159, %c0_93] : memref<342x4xf32, #tpu.memory_space<vmem>>, vector<1x4xf32>
    %c161 = arith.constant 161 : index
    %c0_94 = arith.constant 0 : index
    %110 = vector.load %arg6[%c161, %c0_94] : memref<342x4xf32, #tpu.memory_space<vmem>>, vector<1x4xf32>
    tpu.vector_store %arg6[%c161, %c0_94], %109 {strides = array<i32>} : memref<342x4xf32, #tpu.memory_space<vmem>>, vector<1x4xf32>,
    %c164 = arith.constant 164 : index
    %c0_95 = arith.constant 0 : index
    %111 = vector.load %arg6[%c164, %c0_95] : memref<342x4xf32, #tpu.memory_space<vmem>>, vector<1x4xf32>
    %c162 = arith.constant 162 : index
    %c0_96 = arith.constant 0 : index
    %112 = vector.load %arg6[%c162, %c0_96] : memref<342x4xf32, #tpu.memory_space<vmem>>, vector<1x4xf32>
    tpu.vector_store %arg6[%c162, %c0_96], %111 {strides = array<i32>} : memref<342x4xf32, #tpu.memory_space<vmem>>, vector<1x4xf32>,
    %c177 = arith.constant 177 : index
    %c0_97 = arith.constant 0 : index
    %113 = vector.load %arg6[%c177, %c0_97] : memref<342x4xf32, #tpu.memory_space<vmem>>, vector<1x4xf32>
    %c179 = arith.constant 179 : index
    %c0_98 = arith.constant 0 : index
    %114 = vector.load %arg6[%c179, %c0_98] : memref<342x4xf32, #tpu.memory_space<vmem>>, vector<1x4xf32>
    tpu.vector_store %arg6[%c179, %c0_98], %113 {strides = array<i32>} : memref<342x4xf32, #tpu.memory_space<vmem>>, vector<1x4xf32>,
    %c182 = arith.constant 182 : index
    %c0_99 = arith.constant 0 : index
    %115 = vector.load %arg6[%c182, %c0_99] : memref<342x4xf32, #tpu.memory_space<vmem>>, vector<1x4xf32>
    %c180 = arith.constant 180 : index
    %c0_100 = arith.constant 0 : index
    %116 = vector.load %arg6[%c180, %c0_100] : memref<342x4xf32, #tpu.memory_space<vmem>>, vector<1x4xf32>
    tpu.vector_store %arg6[%c180, %c0_100], %115 {strides = array<i32>} : memref<342x4xf32, #tpu.memory_space<vmem>>, vector<1x4xf32>,
    %c195 = arith.constant 195 : index
    %c0_101 = arith.constant 0 : index
    %117 = vector.load %arg6[%c195, %c0_101] : memref<342x4xf32, #tpu.memory_space<vmem>>, vector<1x4xf32>
    %c197 = arith.constant 197 : index
    %c0_102 = arith.constant 0 : index
    %118 = vector.load %arg6[%c197, %c0_102] : memref<342x4xf32, #tpu.memory_space<vmem>>, vector<1x4xf32>
    tpu.vector_store %arg6[%c197, %c0_102], %117 {strides = array<i32>} : memref<342x4xf32, #tpu.memory_space<vmem>>, vector<1x4xf32>,
    %c200 = arith.constant 200 : index
    %c0_103 = arith.constant 0 : index
    %119 = vector.load %arg6[%c200, %c0_103] : memref<342x4xf32, #tpu.memory_space<vmem>>, vector<1x4xf32>
    %c198 = arith.constant 198 : index
    %c0_104 = arith.constant 0 : index
    %120 = vector.load %arg6[%c198, %c0_104] : memref<342x4xf32, #tpu.memory_space<vmem>>, vector<1x4xf32>
    tpu.vector_store %arg6[%c198, %c0_104], %119 {strides = array<i32>} : memref<342x4xf32, #tpu.memory_space<vmem>>, vector<1x4xf32>,
    %c213 = arith.constant 213 : index
    %c0_105 = arith.constant 0 : index
    %121 = vector.load %arg6[%c213, %c0_105] : memref<342x4xf32, #tpu.memory_space<vmem>>, vector<1x4xf32>
    %c215 = arith.constant 215 : index
    %c0_106 = arith.constant 0 : index
    %122 = vector.load %arg6[%c215, %c0_106] : memref<342x4xf32, #tpu.memory_space<vmem>>, vector<1x4xf32>
    tpu.vector_store %arg6[%c215, %c0_106], %121 {strides = array<i32>} : memref<342x4xf32, #tpu.memory_space<vmem>>, vector<1x4xf32>,
    %c218 = arith.constant 218 : index
    %c0_107 = arith.constant 0 : index
    %123 = vector.load %arg6[%c218, %c0_107] : memref<342x4xf32, #tpu.memory_space<vmem>>, vector<1x4xf32>
    %c216 = arith.constant 216 : index
    %c0_108 = arith.constant 0 : index
    %124 = vector.load %arg6[%c216, %c0_108] : memref<342x4xf32, #tpu.memory_space<vmem>>, vector<1x4xf32>
    tpu.vector_store %arg6[%c216, %c0_108], %123 {strides = array<i32>} : memref<342x4xf32, #tpu.memory_space<vmem>>, vector<1x4xf32>,
    %c231 = arith.constant 231 : index
    %c0_109 = arith.constant 0 : index
    %125 = vector.load %arg6[%c231, %c0_109] : memref<342x4xf32, #tpu.memory_space<vmem>>, vector<1x4xf32>
    %c233 = arith.constant 233 : index
    %c0_110 = arith.constant 0 : index
    %126 = vector.load %arg6[%c233, %c0_110] : memref<342x4xf32, #tpu.memory_space<vmem>>, vector<1x4xf32>
    tpu.vector_store %arg6[%c233, %c0_110], %125 {strides = array<i32>} : memref<342x4xf32, #tpu.memory_space<vmem>>, vector<1x4xf32>,
    %c236 = arith.constant 236 : index
    %c0_111 = arith.constant 0 : index
    %127 = vector.load %arg6[%c236, %c0_111] : memref<342x4xf32, #tpu.memory_space<vmem>>, vector<1x4xf32>
    %c234 = arith.constant 234 : index
    %c0_112 = arith.constant 0 : index
    %128 = vector.load %arg6[%c234, %c0_112] : memref<342x4xf32, #tpu.memory_space<vmem>>, vector<1x4xf32>
    tpu.vector_store %arg6[%c234, %c0_112], %127 {strides = array<i32>} : memref<342x4xf32, #tpu.memory_space<vmem>>, vector<1x4xf32>,
    %c249 = arith.constant 249 : index
    %c0_113 = arith.constant 0 : index
    %129 = vector.load %arg6[%c249, %c0_113] : memref<342x4xf32, #tpu.memory_space<vmem>>, vector<1x4xf32>
    %c251 = arith.constant 251 : index
    %c0_114 = arith.constant 0 : index
    %130 = vector.load %arg6[%c251, %c0_114] : memref<342x4xf32, #tpu.memory_space<vmem>>, vector<1x4xf32>
    tpu.vector_store %arg6[%c251, %c0_114], %129 {strides = array<i32>} : memref<342x4xf32, #tpu.memory_space<vmem>>, vector<1x4xf32>,
    %c254 = arith.constant 254 : index
    %c0_115 = arith.constant 0 : index
    %131 = vector.load %arg6[%c254, %c0_115] : memref<342x4xf32, #tpu.memory_space<vmem>>, vector<1x4xf32>
    %c252 = arith.constant 252 : index
    %c0_116 = arith.constant 0 : index
    %132 = vector.load %arg6[%c252, %c0_116] : memref<342x4xf32, #tpu.memory_space<vmem>>, vector<1x4xf32>
    tpu.vector_store %arg6[%c252, %c0_116], %131 {strides = array<i32>} : memref<342x4xf32, #tpu.memory_space<vmem>>, vector<1x4xf32>,
    %c267 = arith.constant 267 : index
    %c0_117 = arith.constant 0 : index
    %133 = vector.load %arg6[%c267, %c0_117] : memref<342x4xf32, #tpu.memory_space<vmem>>, vector<1x4xf32>
    %c269 = arith.constant 269 : index
    %c0_118 = arith.constant 0 : index
    %134 = vector.load %arg6[%c269, %c0_118] : memref<342x4xf32, #tpu.memory_space<vmem>>, vector<1x4xf32>
    tpu.vector_store %arg6[%c269, %c0_118], %133 {strides = array<i32>} : memref<342x4xf32, #tpu.memory_space<vmem>>, vector<1x4xf32>,
    %c272 = arith.constant 272 : index
    %c0_119 = arith.constant 0 : index
    %135 = vector.load %arg6[%c272, %c0_119] : memref<342x4xf32, #tpu.memory_space<vmem>>, vector<1x4xf32>
    %c270 = arith.constant 270 : index
    %c0_120 = arith.constant 0 : index
    %136 = vector.load %arg6[%c270, %c0_120] : memref<342x4xf32, #tpu.memory_space<vmem>>, vector<1x4xf32>
    tpu.vector_store %arg6[%c270, %c0_120], %135 {strides = array<i32>} : memref<342x4xf32, #tpu.memory_space<vmem>>, vector<1x4xf32>,
    %c285 = arith.constant 285 : index
    %c0_121 = arith.constant 0 : index
    %137 = vector.load %arg6[%c285, %c0_121] : memref<342x4xf32, #tpu.memory_space<vmem>>, vector<1x4xf32>
    %c287 = arith.constant 287 : index
    %c0_122 = arith.constant 0 : index
    %138 = vector.load %arg6[%c287, %c0_122] : memref<342x4xf32, #tpu.memory_space<vmem>>, vector<1x4xf32>
    tpu.vector_store %arg6[%c287, %c0_122], %137 {strides = array<i32>} : memref<342x4xf32, #tpu.memory_space<vmem>>, vector<1x4xf32>,
    %c290 = arith.constant 290 : index
    %c0_123 = arith.constant 0 : index
    %139 = vector.load %arg6[%c290, %c0_123] : memref<342x4xf32, #tpu.memory_space<vmem>>, vector<1x4xf32>
    %c288 = arith.constant 288 : index
    %c0_124 = arith.constant 0 : index
    %140 = vector.load %arg6[%c288, %c0_124] : memref<342x4xf32, #tpu.memory_space<vmem>>, vector<1x4xf32>
    tpu.vector_store %arg6[%c288, %c0_124], %139 {strides = array<i32>} : memref<342x4xf32, #tpu.memory_space<vmem>>, vector<1x4xf32>,
    %c303 = arith.constant 303 : index
    %c0_125 = arith.constant 0 : index
    %141 = vector.load %arg6[%c303, %c0_125] : memref<342x4xf32, #tpu.memory_space<vmem>>, vector<1x4xf32>
    %c305 = arith.constant 305 : index
    %c0_126 = arith.constant 0 : index
    %142 = vector.load %arg6[%c305, %c0_126] : memref<342x4xf32, #tpu.memory_space<vmem>>, vector<1x4xf32>
    tpu.vector_store %arg6[%c305, %c0_126], %141 {strides = array<i32>} : memref<342x4xf32, #tpu.memory_space<vmem>>, vector<1x4xf32>,
    %c36_127 = arith.constant 36 : index
    %c0_128 = arith.constant 0 : index
    %143 = vector.load %arg6[%c36_127, %c0_128] : memref<342x4xf32, #tpu.memory_space<vmem>>, vector<18x4xf32>
    %c0_129 = arith.constant 0 : index
    %c0_130 = arith.constant 0 : index
    %144 = vector.load %arg6[%c0_129, %c0_130] : memref<342x4xf32, #tpu.memory_space<vmem>>, vector<18x4xf32>
    tpu.vector_store %arg6[%c0_129, %c0_130], %143 {strides = array<i32>} : memref<342x4xf32, #tpu.memory_space<vmem>>, vector<18x4xf32>,
    %c270_131 = arith.constant 270 : index
    %c0_132 = arith.constant 0 : index
    %145 = vector.load %arg6[%c270_131, %c0_132] : memref<342x4xf32, #tpu.memory_space<vmem>>, vector<18x4xf32>
    %c306 = arith.constant 306 : index
    %c0_133 = arith.constant 0 : index
    %146 = vector.load %arg6[%c306, %c0_133] : memref<342x4xf32, #tpu.memory_space<vmem>>, vector<18x4xf32>
    tpu.vector_store %arg6[%c306, %c0_133], %145 {strides = array<i32>} : memref<342x4xf32, #tpu.memory_space<vmem>>, vector<18x4xf32>,
    %c0_134 = arith.constant 0 : index
    %c0_135 = arith.constant 0 : index
    %147 = vector.load %arg6[%c0_134, %c0_135] : memref<342x4xf32, #tpu.memory_space<vmem>>, vector<288x4xf32>
    %c0_136 = arith.constant 0 : index
    %c0_137 = arith.constant 0 : index
    %c0_138 = arith.constant 0 : index
    %148 = vector.load %arg3[%c0_136, %c0_137, %c0_138] : memref<9x4x4xf32, #tpu.memory_space<vmem>>, vector<1x4x4xf32>
    %149 = vector.shape_cast %148 : vector<1x4x4xf32> to vector<4x4xf32>
    %cst_139 = arith.constant dense<0.000000e+00> : vector<288x4xf32>
    %150 = tpu.matmul %147, %149, %cst_139 {dimension_numbers = #tpu.dot_dimension_numbers<[1], [0], [0], [1], [0, 0, 1, 1], [], []>} : vector<288x4xf32>, vector<4x4xf32>, vector<288x4xf32> -> vector<288x4xf32>
    %c1_140 = arith.constant 1 : index
    %c0_141 = arith.constant 0 : index
    %151 = vector.load %arg6[%c1_140, %c0_141] : memref<342x4xf32, #tpu.memory_space<vmem>>, vector<288x4xf32>
    %c1_142 = arith.constant 1 : index
    %c0_143 = arith.constant 0 : index
    %c0_144 = arith.constant 0 : index
    %152 = vector.load %arg3[%c1_142, %c0_143, %c0_144] : memref<9x4x4xf32, #tpu.memory_space<vmem>>, vector<1x4x4xf32>
    %153 = vector.shape_cast %152 : vector<1x4x4xf32> to vector<4x4xf32>
    %cst_145 = arith.constant dense<0.000000e+00> : vector<288x4xf32>
    %154 = tpu.matmul %151, %153, %cst_145 {dimension_numbers = #tpu.dot_dimension_numbers<[1], [0], [0], [1], [0, 0, 1, 1], [], []>} : vector<288x4xf32>, vector<4x4xf32>, vector<288x4xf32> -> vector<288x4xf32>
    %155 = arith.addf %150, %154 : vector<288x4xf32>
    %c2_146 = arith.constant 2 : index
    %c0_147 = arith.constant 0 : index
    %156 = vector.load %arg6[%c2_146, %c0_147] : memref<342x4xf32, #tpu.memory_space<vmem>>, vector<288x4xf32>
    %c2_148 = arith.constant 2 : index
    %c0_149 = arith.constant 0 : index
    %c0_150 = arith.constant 0 : index
    %157 = vector.load %arg3[%c2_148, %c0_149, %c0_150] : memref<9x4x4xf32, #tpu.memory_space<vmem>>, vector<1x4x4xf32>
    %158 = vector.shape_cast %157 : vector<1x4x4xf32> to vector<4x4xf32>
    %cst_151 = arith.constant dense<0.000000e+00> : vector<288x4xf32>
    %159 = tpu.matmul %156, %158, %cst_151 {dimension_numbers = #tpu.dot_dimension_numbers<[1], [0], [0], [1], [0, 0, 1, 1], [], []>} : vector<288x4xf32>, vector<4x4xf32>, vector<288x4xf32> -> vector<288x4xf32>
    %160 = arith.addf %155, %159 : vector<288x4xf32>
    %c18_152 = arith.constant 18 : index
    %c0_153 = arith.constant 0 : index
    %161 = vector.load %arg6[%c18_152, %c0_153] : memref<342x4xf32, #tpu.memory_space<vmem>>, vector<288x4xf32>
    %c3_154 = arith.constant 3 : index
    %c0_155 = arith.constant 0 : index
    %c0_156 = arith.constant 0 : index
    %162 = vector.load %arg3[%c3_154, %c0_155, %c0_156] : memref<9x4x4xf32, #tpu.memory_space<vmem>>, vector<1x4x4xf32>
    %163 = vector.shape_cast %162 : vector<1x4x4xf32> to vector<4x4xf32>
    %cst_157 = arith.constant dense<0.000000e+00> : vector<288x4xf32>
    %164 = tpu.matmul %161, %163, %cst_157 {dimension_numbers = #tpu.dot_dimension_numbers<[1], [0], [0], [1], [0, 0, 1, 1], [], []>} : vector<288x4xf32>, vector<4x4xf32>, vector<288x4xf32> -> vector<288x4xf32>
    %165 = arith.addf %160, %164 : vector<288x4xf32>
    %c19_158 = arith.constant 19 : index
    %c0_159 = arith.constant 0 : index
    %166 = vector.load %arg6[%c19_158, %c0_159] : memref<342x4xf32, #tpu.memory_space<vmem>>, vector<288x4xf32>
    %c4_160 = arith.constant 4 : index
    %c0_161 = arith.constant 0 : index
    %c0_162 = arith.constant 0 : index
    %167 = vector.load %arg3[%c4_160, %c0_161, %c0_162] : memref<9x4x4xf32, #tpu.memory_space<vmem>>, vector<1x4x4xf32>
    %168 = vector.shape_cast %167 : vector<1x4x4xf32> to vector<4x4xf32>
    %cst_163 = arith.constant dense<0.000000e+00> : vector<288x4xf32>
    %169 = tpu.matmul %166, %168, %cst_163 {dimension_numbers = #tpu.dot_dimension_numbers<[1], [0], [0], [1], [0, 0, 1, 1], [], []>} : vector<288x4xf32>, vector<4x4xf32>, vector<288x4xf32> -> vector<288x4xf32>
    %170 = arith.addf %165, %169 : vector<288x4xf32>
    %c20_164 = arith.constant 20 : index
    %c0_165 = arith.constant 0 : index
    %171 = vector.load %arg6[%c20_164, %c0_165] : memref<342x4xf32, #tpu.memory_space<vmem>>, vector<288x4xf32>
    %c5_166 = arith.constant 5 : index
    %c0_167 = arith.constant 0 : index
    %c0_168 = arith.constant 0 : index
    %172 = vector.load %arg3[%c5_166, %c0_167, %c0_168] : memref<9x4x4xf32, #tpu.memory_space<vmem>>, vector<1x4x4xf32>
    %173 = vector.shape_cast %172 : vector<1x4x4xf32> to vector<4x4xf32>
    %cst_169 = arith.constant dense<0.000000e+00> : vector<288x4xf32>
    %174 = tpu.matmul %171, %173, %cst_169 {dimension_numbers = #tpu.dot_dimension_numbers<[1], [0], [0], [1], [0, 0, 1, 1], [], []>} : vector<288x4xf32>, vector<4x4xf32>, vector<288x4xf32> -> vector<288x4xf32>
    %175 = arith.addf %170, %174 : vector<288x4xf32>
    %c36_170 = arith.constant 36 : index
    %c0_171 = arith.constant 0 : index
    %176 = vector.load %arg6[%c36_170, %c0_171] : memref<342x4xf32, #tpu.memory_space<vmem>>, vector<288x4xf32>
    %c6_172 = arith.constant 6 : index
    %c0_173 = arith.constant 0 : index
    %c0_174 = arith.constant 0 : index
    %177 = vector.load %arg3[%c6_172, %c0_173, %c0_174] : memref<9x4x4xf32, #tpu.memory_space<vmem>>, vector<1x4x4xf32>
    %178 = vector.shape_cast %177 : vector<1x4x4xf32> to vector<4x4xf32>
    %cst_175 = arith.constant dense<0.000000e+00> : vector<288x4xf32>
    %179 = tpu.matmul %176, %178, %cst_175 {dimension_numbers = #tpu.dot_dimension_numbers<[1], [0], [0], [1], [0, 0, 1, 1], [], []>} : vector<288x4xf32>, vector<4x4xf32>, vector<288x4xf32> -> vector<288x4xf32>
    %180 = arith.addf %175, %179 : vector<288x4xf32>
    %c37_176 = arith.constant 37 : index
    %c0_177 = arith.constant 0 : index
    %181 = vector.load %arg6[%c37_176, %c0_177] : memref<342x4xf32, #tpu.memory_space<vmem>>, vector<288x4xf32>
    %c7_178 = arith.constant 7 : index
    %c0_179 = arith.constant 0 : index
    %c0_180 = arith.constant 0 : index
    %182 = vector.load %arg3[%c7_178, %c0_179, %c0_180] : memref<9x4x4xf32, #tpu.memory_space<vmem>>, vector<1x4x4xf32>
    %183 = vector.shape_cast %182 : vector<1x4x4xf32> to vector<4x4xf32>
    %cst_181 = arith.constant dense<0.000000e+00> : vector<288x4xf32>
    %184 = tpu.matmul %181, %183, %cst_181 {dimension_numbers = #tpu.dot_dimension_numbers<[1], [0], [0], [1], [0, 0, 1, 1], [], []>} : vector<288x4xf32>, vector<4x4xf32>, vector<288x4xf32> -> vector<288x4xf32>
    %185 = arith.addf %180, %184 : vector<288x4xf32>
    %c38_182 = arith.constant 38 : index
    %c0_183 = arith.constant 0 : index
    %186 = vector.load %arg6[%c38_182, %c0_183] : memref<342x4xf32, #tpu.memory_space<vmem>>, vector<288x4xf32>
    %c8_184 = arith.constant 8 : index
    %c0_185 = arith.constant 0 : index
    %c0_186 = arith.constant 0 : index
    %187 = vector.load %arg3[%c8_184, %c0_185, %c0_186] : memref<9x4x4xf32, #tpu.memory_space<vmem>>, vector<1x4x4xf32>
    %188 = vector.shape_cast %187 : vector<1x4x4xf32> to vector<4x4xf32>
    %cst_187 = arith.constant dense<0.000000e+00> : vector<288x4xf32>
    %189 = tpu.matmul %186, %188, %cst_187 {dimension_numbers = #tpu.dot_dimension_numbers<[1], [0], [0], [1], [0, 0, 1, 1], [], []>} : vector<288x4xf32>, vector<4x4xf32>, vector<288x4xf32> -> vector<288x4xf32>
    %190 = arith.addf %185, %189 : vector<288x4xf32>
    %191 = vector.broadcast %0 : vector<288x1xf32> to vector<288x4xf32>
    %192 = arith.mulf %190, %191 : vector<288x4xf32>
    %cst_188 = arith.constant dense<0.000000e+00> : vector<4xf32>
    %193 = vector.multi_reduction <add>, %192, %cst_188 [0] : vector<288x4xf32> to vector<4xf32>
    %194 = vector.shape_cast %193 : vector<4xf32> to vector<1x4xf32>
    %cst_189 = arith.constant 3.906250e-03 : f32
    %195 = vector.broadcast %cst_189 : f32 to vector<1x4xf32>
    %196 = arith.mulf %194, %195 : vector<1x4xf32>
    %197 = vector.broadcast %196 : vector<1x4xf32> to vector<288x4xf32>
    %198 = arith.subf %190, %197 : vector<288x4xf32>
    %199 = arith.mulf %198, %198 : vector<288x4xf32>
    %200 = vector.broadcast %0 : vector<288x1xf32> to vector<288x4xf32>
    %201 = arith.mulf %199, %200 : vector<288x4xf32>
    %cst_190 = arith.constant dense<0.000000e+00> : vector<4xf32>
    %202 = vector.multi_reduction <add>, %201, %cst_190 [0] : vector<288x4xf32> to vector<4xf32>
    %203 = vector.shape_cast %202 : vector<4xf32> to vector<1x4xf32>
    %cst_191 = arith.constant 3.906250e-03 : f32
    %204 = vector.broadcast %cst_191 : f32 to vector<1x4xf32>
    %205 = arith.mulf %203, %204 : vector<1x4xf32>
    %cst_192 = arith.constant 9.99999974E-6 : f32
    %206 = vector.broadcast %cst_192 : f32 to vector<1x4xf32>
    %207 = arith.addf %205, %206 : vector<1x4xf32>
    %208 = math.rsqrt %207 : vector<1x4xf32>
    %209 = vector.broadcast %208 : vector<1x4xf32> to vector<288x4xf32>
    %210 = arith.mulf %198, %209 : vector<288x4xf32>
    %c0_193 = arith.constant 0 : index
    %c19_194 = arith.constant 19 : index
    %c0_195 = arith.constant 0 : index
    %211 = vector.load %arg1[%c0_193, %c19_194, %c0_195] : memref<1x342x4xf32, #tpu.memory_space<vmem>>, vector<1x288x4xf32>
    %212 = vector.shape_cast %211 : vector<1x288x4xf32> to vector<288x4xf32>
    %213 = arith.addf %212, %210 : vector<288x4xf32>
    %c0_196 = arith.constant 0 : index
    %c0_197 = arith.constant 0 : index
    %c0_198 = arith.constant 0 : index
    %214 = vector.load %arg5[%c0_196, %c0_197, %c0_198] : memref<1x288x4xf32, #tpu.memory_space<vmem>>, vector<1x288x4xf32>
    %215 = vector.shape_cast %214 : vector<1x288x4xf32> to vector<288x4xf32>
    %216 = vector.shape_cast %213 : vector<288x4xf32> to vector<1x288x4xf32>
    tpu.vector_store %arg5[%c0_196, %c0_197, %c0_198], %216 {strides = array<i32>} : memref<1x288x4xf32, #tpu.memory_space<vmem>>, vector<1x288x4xf32>,
    return
  }
  func.func @transform_0(%arg0: i32) -> (i32, i32, i32) {
    %c0_i32 = arith.constant 0 : i32
    %c0_i32_0 = arith.constant 0 : i32
    %c0_i32_1 = arith.constant 0 : i32
    return %arg0, %c0_i32, %c0_i32_0 : i32, i32, i32
  }
  func.func @transform_1(%arg0: i32) -> (i32, i32, i32) {
    %c0_i32 = arith.constant 0 : i32
    %c0_i32_0 = arith.constant 0 : i32
    %c0_i32_1 = arith.constant 0 : i32
    %c0_i32_2 = arith.constant 0 : i32
    return %c0_i32, %c0_i32_0, %c0_i32_1 : i32, i32, i32
  }
  func.func @transform_2(%arg0: i32) -> (i32, i32, i32) {
    %c0_i32 = arith.constant 0 : i32
    %c0_i32_0 = arith.constant 0 : i32
    %c0_i32_1 = arith.constant 0 : i32
    %c0_i32_2 = arith.constant 0 : i32
    return %c0_i32, %c0_i32_0, %c0_i32_1 : i32, i32, i32
  }
  func.func @transform_3(%arg0: i32) -> (i32, i32) {
    %c0_i32 = arith.constant 0 : i32
    %c0_i32_0 = arith.constant 0 : i32
    %c0_i32_1 = arith.constant 0 : i32
    return %c0_i32, %c0_i32_0 : i32, i32
  }
  func.func @transform_4(%arg0: i32) -> (i32, i32, i32) {
    %c0_i32 = arith.constant 0 : i32
    %c0_i32_0 = arith.constant 0 : i32
    %c0_i32_1 = arith.constant 0 : i32
    return %arg0, %c0_i32, %c0_i32_0 : i32, i32, i32
  }
}

</mosaic_0001>

<bundles_post_ra>
// kernel: residual_block.1
= control target key start
LH: loop header
LB: loop body
LE: loop exit
PB: predicated region body
PF: predicated region fallthrough
CT: control target
= control target key end

     0   :  { %s11996_s15 = smov 0   ;;  %s14688_s0 = inlined_call_operand.vmem [shape: f32[2,342,4], index: 0, kind: input, shape index: {}]   ;;  %s14689_s1 = inlined_call_operand.vmem [shape: f32[9,4,4], index: 1, kind: input, shape index: {}]   ;;  %s14690_s2 = inlined_call_operand.vmem [shape: f32[9,4,4], index: 2, kind: input, shape index: {}]   ;;  %s14691_s3 = inlined_call_operand.vmem [shape: f32[288,1], index: 3, kind: input, shape index: {}]   ;;  %s14692_s4 = inlined_call_operand.vmem [shape: f32[2,288,4], index: 4, kind: output, shape index: {}]  }
   0x1 LB: > { %s9002_s16 = sadd.s32 4294967295, %s11967_s15   ;;  %p9006_p0 = scmp.ge.s32.totalorder %s11967_s15, 1  ;;  %s11967_s15 = sphi %s11996_s15, %s14_s15  }
   0x2   : > { %p162_p1 = scmp.lt.s32.totalorder %s11967_s15, 3 }
   0x4   : > { %p163_p2 = pnand %p9006_p0, %p162_p1 }
   0x6   : > { %166 = sbr.rel (%p163_p2) target bundleno = 2075 (0x81b), region = 36 }
   0xd   : > { %v9009_v0 = vld [vmem:[%s14689_s1 + $0x4] sm:$0xf]  ;;  %vm418_vm0 = vcmask 1043456   ;;  %p188_p3 = scmp.lt.s32.totalorder %s9002_s16, 1  ;;  %v270_v1 = vld [vmem:[%s14689_s1] sm:$0xf] }
   0xe   : > { %10359 = vmatprep.subr.msk.mxu0 %vm418_vm0, %v9009_v0  ;;  %vm309_vm1 = vcmask 31744   ;;  %v12028_v5 = vld [vmem:[%s14689_s1 + $0x8] sm:$0xf]  ;;  %v12108_v42 = vld [vmem:[%s14689_s1 + $0xc] sm:$0xf]  ;;  %vm4589_vm2 = vcmask 25600  }
   0xf   : > { %10360 = vmatpush3.msk.msra.mxu0 %vm418_vm0, %v9009_v0  ;;  %s14878_s16 = smov (!%p188_p3, %s9002_s16), 1  ;;  %vm4628_vm3 = vcmask 24576  }
  0x10   : > { %10415 = vmatprep.subr.msk.mxu0 %vm418_vm0, %v270_v1  ;;  %s11943_s21 = smul.u32 344, %s14878_s16 }
  0x11   : > { %s11944_s11 = smul.u32 288, %s14878_s16 }
  0x12   : > { %s12019_s24 = scalar_lea.vmem %s14688_s0, %s11943_s21 }
  0x13   : > { %v271_v2 = vld [vmem:[%s12019_s24 + $0x1] sm:$0xff]  ;;  %v272_v3 = vld [vmem:[%s12019_s24 + $0x9] sm:$0xff]  ;;  %v273_v4 = vld [vmem:[%s12019_s24 + $0x11] sm:$0xff]  ;;  %s14550_s14 = scalar_lea.vmem %s14692_s4, %s11944_s11 }
  0x14   : > { %10361 = vmatprep.mubr.msk.f32.mxu0 %vm309_vm1, %v271_v2  ;;  %v274_v6 = vld [vmem:[%s12019_s24 + $0x19] sm:$0xff]  ;;  %v275_v7 = vld [vmem:[%s12019_s24 + $0x21] sm:$0xff]  ;;  %v276_v8 = vld [vmem:[%s12019_s24 + $0x29] sm:$0xff] }
  0x15   : > { %10362 = vmatmul.mubr.msk.f32.vlgmr.msra.gmra.mrb[0].mxu0 %vm309_vm1, %v272_v3  ;;  %v277_v9 = vld [vmem:[%s12019_s24 + $0x31] sm:$0xff]  ;;  %v278_v10 = vld [vmem:[%s12019_s24 + $0x39] sm:$0xff]  ;;  %v279_v11 = vld [vmem:[%s12019_s24 + $0x41] sm:$0xff] }
  0x16   : > { %10416 = vmatpush3.msk.msra.mxu0 %vm418_vm0, %v270_v1  ;;  %10364 = vmatprep.mubr.msk.f32.mxu0 %vm309_vm1, %v273_v4  ;;  %v280_v12 = vld [vmem:[%s12019_s24 + $0x49] sm:$0xff]  ;;  %v281_v13 = vld [vmem:[%s12019_s24 + $0x51] sm:$0xff]  ;;  %v282_v14 = vld [vmem:[%s12019_s24 + $0x59] sm:$0xff] }
  0x17   : > { %10471 = vmatprep.subr.msk.mxu0 %vm418_vm0, %v12028_v5  ;;  %v283_v15 = vld [vmem:[%s12019_s24 + $0x61] sm:$0xff]  ;;  %v284_v16 = vld [vmem:[%s12019_s24 + $0x69] sm:$0xff]  ;;  %v285_v17 = vld [vmem:[%s12019_s24 + $0x71] sm:$0xff] }
  0x18   : > { %v286_v18 = vld [vmem:[%s12019_s24 + $0x79] sm:$0xff]  ;;  %v287_v19 = vld [vmem:[%s12019_s24 + $0x81] sm:$0xff]  ;;  %v288_v20 = vld [vmem:[%s12019_s24 + $0x89] sm:$0xff] }
  0x19   : > { %10365 = vmatmul.mubr.msk.f32.gmra.mrb[2].mxu0 %vm309_vm1, %v274_v6  ;;  %v289_v21 = vld [vmem:[%s12019_s24 + $0x91] sm:$0xff]  ;;  %v290_v22 = vld [vmem:[%s12019_s24 + $0x99] sm:$0xff]  ;;  %v291_v23 = vld [vmem:[%s12019_s24 + $0xa1] sm:$0xff] }
  0x1a   : > { %10367 = vmatprep.mubr.msk.f32.mxu0 %vm309_vm1, %v275_v7  ;;  %v292_v24 = vld [vmem:[%s12019_s24 + $0xa9] sm:$0xff]  ;;  %v293_v25 = vld [vmem:[%s12019_s24 + $0xb1] sm:$0xff]  ;;  %v294_v26 = vld [vmem:[%s12019_s24 + $0xb9] sm:$0xff] }
  0x1b   : > { %v295_v27 = vld [vmem:[%s12019_s24 + $0xc1] sm:$0xff]  ;;  %v296_v28 = vld [vmem:[%s12019_s24 + $0xc9] sm:$0xff]  ;;  %v297_v29 = vld [vmem:[%s12019_s24 + $0xd1] sm:$0xff] }
  0x1c   : > { %v298_v30 = vld [vmem:[%s12019_s24 + $0xd9] sm:$0xff]  ;;  %v299_v31 = vld [vmem:[%s12019_s24 + $0xe1] sm:$0xff]  ;;  %v300_v32 = vld [vmem:[%s12019_s24 + $0xe9] sm:$0xff] }
  0x1d   : > { %10368 = vmatmul.mubr.msk.f32.gmra.mrb[4].mxu0 %vm309_vm1, %v276_v8  ;;  %v301_v33 = vld [vmem:[%s12019_s24 + $0xf1] sm:$0xff]  ;;  %v302_v34 = vld [vmem:[%s12019_s24 + $0xf9] sm:$0xff]  ;;  %v303_v35 = vld [vmem:[%s12019_s24 + $0x101] sm:$0xff] }
  0x1e   : > { %10370 = vmatprep.mubr.msk.f32.mxu0 %vm309_vm1, %v277_v9  ;;  %v304_v36 = vld [vmem:[%s12019_s24 + $0x109] sm:$0xff]  ;;  %v305_v37 = vld [vmem:[%s12019_s24 + $0x111] sm:$0xff]  ;;  %v306_v38 = vld [vmem:[%s12019_s24 + $0x119] sm:$0xff] }
  0x1f   : > { %v234_v39 = vld [vmem:[%s12019_s24] sm:$0xff]  ;;  %v235_v40 = vld [vmem:[%s12019_s24 + $0x8] sm:$0xff]  ;;  %v236_v41 = vld [vmem:[%s12019_s24 + $0x10] sm:$0xff] }
  0x20   : > { %v237_v43 = vld [vmem:[%s12019_s24 + $0x18] sm:$0xff]  ;;  %v238_v44 = vld [vmem:[%s12019_s24 + $0x20] sm:$0xff]  ;;  %v239_v45 = vld [vmem:[%s12019_s24 + $0x28] sm:$0xff] }
  0x21   : > { %10371 = vmatmul.mubr.msk.f32.gmra.mrb[6].mxu0 %vm309_vm1, %v278_v10  ;;  %v240_v46 = vld [vmem:[%s12019_s24 + $0x30] sm:$0xff]  ;;  %v241_v47 = vld [vmem:[%s12019_s24 + $0x38] sm:$0xff]  ;;  %v242_v48 = vld [vmem:[%s12019_s24 + $0x40] sm:$0xff] }
  0x22   : > { %10373 = vmatprep.mubr.msk.f32.mxu0 %vm309_vm1, %v279_v11  ;;  %v243_v49 = vld [vmem:[%s12019_s24 + $0x48] sm:$0xff]  ;;  %v244_v50 = vld [vmem:[%s12019_s24 + $0x50] sm:$0xff]  ;;  %v245_v51 = vld [vmem:[%s12019_s24 + $0x58] sm:$0xff] }
  0x23   : > { %v246_v52 = vld [vmem:[%s12019_s24 + $0x60] sm:$0xff]  ;;  %v247_v53 = vld [vmem:[%s12019_s24 + $0x68] sm:$0xff]  ;;  %v248_v54 = vld [vmem:[%s12019_s24 + $0x70] sm:$0xff] }
  0x24   : > { %v249_v55 = vld [vmem:[%s12019_s24 + $0x78] sm:$0xff]  ;;  %v250_v56 = vld [vmem:[%s12019_s24 + $0x80] sm:$0xff]  ;;  %v251_v57 = vld [vmem:[%s12019_s24 + $0x88] sm:$0xff] }
  0x25   : > { %10374 = vmatmul.mubr.msk.f32.gmra.mrb[8].mxu0 %vm309_vm1, %v280_v12  ;;  %v252_v58 = vld [vmem:[%s12019_s24 + $0x90] sm:$0xff]  ;;  %v253_v59 = vld [vmem:[%s12019_s24 + $0x98] sm:$0xff]  ;;  %v254_v60 = vld [vmem:[%s12019_s24 + $0xa0] sm:$0xff] }
  0x26   : > { %10376 = vmatprep.mubr.msk.f32.mxu0 %vm309_vm1, %v281_v13  ;;  %v255_v61 = vld [vmem:[%s12019_s24 + $0xa8] sm:$0xff]  ;;  %v256_v62 = vld [vmem:[%s12019_s24 + $0xb0] sm:$0xff]  ;;  %v257_v63 = vld [vmem:[%s12019_s24 + $0xb8] sm:$0xff] }
  0x27   : > { %v258_v0 = vld [vmem:[%s12019_s24 + $0xc0] sm:$0xff]  ;;  %v259_v1 = vld [vmem:[%s12019_s24 + $0xc8] sm:$0xff]  ;;  %v260_v2 = vld [vmem:[%s12019_s24 + $0xd0] sm:$0xff] }
  0x28   : > { %v261_v3 = vld [vmem:[%s12019_s24 + $0xd8] sm:$0xff]  ;;  %v262_v4 = vld [vmem:[%s12019_s24 + $0xe0] sm:$0xff]  ;;  %v264_v6 = vld [vmem:[%s12019_s24 + $0xf0] sm:$0xff] }
  0x29   : > { %10377 = vmatmul.mubr.msk.f32.gmra.mrb[10].mxu0 %vm309_vm1, %v282_v14  ;;  %v265_v7 = vld [vmem:[%s12019_s24 + $0xf8] sm:$0xff]  ;;  %v266_v8 = vld [vmem:[%s12019_s24 + $0x100] sm:$0xff]  ;;  %v267_v9 = vld [vmem:[%s12019_s24 + $0x108] sm:$0xff] }
  0x2a   : > { %10379 = vmatprep.mubr.msk.f32.mxu0 %vm309_vm1, %v283_v15  ;;  %v268_v10 = vld [vmem:[%s12019_s24 + $0x110] sm:$0xff]  ;;  %v269_v11 = vld [vmem:[%s12019_s24 + $0x118] sm:$0xff]  ;;  %v1023_v12 = vld [vmem:[%s12019_s24 + $0x2] sm:$0xff] }
  0x2b   : > { %v1024_v13 = vld [vmem:[%s12019_s24 + $0xa] sm:$0xff]  ;;  %v12186_v14 = vld [vmem:[%s12019_s24 + $0x12] sm:$0xff] }
  0x2c   : > { %v12191_v15 = vld [vmem:[%s14689_s1 + $0x10] sm:$0xf] }
  0x2d   : > { %10380 = vmatmul.mubr.msk.f32.gmra.mrb[12].mxu0 %vm309_vm1, %v284_v16  ;;  %v12199_v16 = vld [vmem:[%s12019_s24 + $0x1a] sm:$0xff] }
  0x2e   : > { %10382 = vmatprep.mubr.msk.f32.mxu0 %vm309_vm1, %v285_v17  ;;  %v12202_v17 = vld [vmem:[%s12019_s24 + $0x22] sm:$0xff] }
  0x31   : > { %10383 = vmatmul.mubr.msk.f32.gmra.mrb[14].mxu0 %vm309_vm1, %v286_v18  ;;  %v12211_v18 = vld [vmem:[%s12019_s24 + $0x2a] sm:$0xff] }
  0x32   : > { %10385 = vmatprep.mubr.msk.f32.mxu0 %vm309_vm1, %v287_v19  ;;  %v12214_v19 = vld [vmem:[%s12019_s24 + $0x32] sm:$0xff] }
  0x35   : > { %10386 = vmatmul.mubr.msk.f32.gmra.mrb[16].mxu0 %vm309_vm1, %v288_v20  ;;  %v12221_v20 = vld [vmem:[%s12019_s24 + $0x3a] sm:$0xff] }
  0x36   : > { %10388 = vmatprep.mubr.msk.f32.mxu0 %vm309_vm1, %v289_v21  ;;  %v12224_v21 = vld [vmem:[%s12019_s24 + $0x42] sm:$0xff] }
  0x39   : > { %10389 = vmatmul.mubr.msk.f32.gmra.mrb[18].mxu0 %vm309_vm1, %v290_v22  ;;  %v12231_v22 = vld [vmem:[%s12019_s24 + $0x4a] sm:$0xff] }
  0x3a   : > { %10391 = vmatprep.mubr.msk.f32.mxu0 %vm309_vm1, %v291_v23  ;;  %v12234_v23 = vld [vmem:[%s12019_s24 + $0x52] sm:$0xff] }
  0x3d   : > { %10392 = vmatmul.mubr.msk.f32.gmra.mrb[20].mxu0 %vm309_vm1, %v292_v24  ;;  %v1034_v24 = vld [vmem:[%s12019_s24 + $0x5a] sm:$0xff] }
  0x3e   : > { %10394 = vmatprep.mubr.msk.f32.mxu0 %vm309_vm1, %v293_v25  ;;  %v1035_v25 = vld [vmem:[%s12019_s24 + $0x62] sm:$0xff] }
  0x41   : > { %10395 = vmatmul.mubr.msk.f32.gmra.mrb[22].mxu0 %vm309_vm1, %v294_v26  ;;  %v1036_v26 = vld [vmem:[%s12019_s24 + $0x6a] sm:$0xff] }
  0x42   : > { %10397 = vmatprep.mubr.msk.f32.mxu0 %vm309_vm1, %v295_v27  ;;  %v1037_v27 = vld [vmem:[%s12019_s24 + $0x72] sm:$0xff] }
  0x45   : > { %10398 = vmatmul.mubr.msk.f32.gmra.mrb[24].mxu0 %vm309_vm1, %v296_v28  ;;  %v1038_v28 = vld [vmem:[%s12019_s24 + $0x7a] sm:$0xff] }
  0x46   : > { %10400 = vmatprep.mubr.msk.f32.mxu0 %vm309_vm1, %v297_v29  ;;  %v1039_v29 = vld [vmem:[%s12019_s24 + $0x82] sm:$0xff] }
  0x49   : > { %10401 = vmatmul.mubr.msk.f32.gmra.mrb[26].mxu0 %vm309_vm1, %v298_v30  ;;  %v1040_v30 = vld [vmem:[%s12019_s24 + $0x8a] sm:$0xff] }
  0x4a   : > { %10403 = vmatprep.mubr.msk.f32.mxu0 %vm309_vm1, %v299_v31  ;;  %v1041_v31 = vld [vmem:[%s12019_s24 + $0x92] sm:$0xff] }
  0x4d   : > { %10404 = vmatmul.mubr.msk.f32.gmra.mrb[28].mxu0 %vm309_vm1, %v300_v32  ;;  %v1042_v32 = vld [vmem:[%s12019_s24 + $0x9a] sm:$0xff] }
  0x4e   : > { %10406 = vmatprep.mubr.msk.f32.mxu0 %vm309_vm1, %v301_v33  ;;  %v1043_v33 = vld [vmem:[%s12019_s24 + $0xa2] sm:$0xff] }
  0x51   : > { %10407 = vmatmul.mubr.msk.f32.gmra.mrb[30].mxu0 %vm309_vm1, %v302_v34  ;;  %v1044_v34 = vld [vmem:[%s12019_s24 + $0xaa] sm:$0xff] }
  0x52   : > { %10409 = vmatprep.mubr.msk.f32.mxu0 %vm309_vm1, %v303_v35  ;;  %v1045_v35 = vld [vmem:[%s12019_s24 + $0xb2] sm:$0xff] }
  0x55   : > { %10410 = vmatmul.mubr.msk.f32.gmra.mrb[32].mxu0 %vm309_vm1, %v304_v36  ;;  %v1046_v36 = vld [vmem:[%s12019_s24 + $0xba] sm:$0xff] }
  0x56   : > { %10412 = vmatprep.mubr.msk.f32.mxu0 %vm309_vm1, %v305_v37  ;;  %v1047_v37 = vld [vmem:[%s12019_s24 + $0xc2] sm:$0xff] }
  0x59   : > { %10413 = vmatmul.mubr.msk.f32.gmra.mrb[34].mxu0 %vm309_vm1, %v306_v38  ;;  %v1048_v38 = vld [vmem:[%s12019_s24 + $0xca] sm:$0xff] }
  0x5a   : > { %10417 = vmatprep.mubr.msk.f32.mxu0 %vm309_vm1, %v234_v39  ;;  %v1049_v39 = vld [vmem:[%s12019_s24 + $0xd2] sm:$0xff] }
  0x5d   : > { %10418 = vmatmul.mubr.msk.f32.vlgmr.msra.gmra.mrb[0].mxu0 %vm309_vm1, %v235_v40  ;;  %v1050_v40 = vld [vmem:[%s12019_s24 + $0xda] sm:$0xff] }
  0x5e   : > { %10472 = vmatpush3.msk.msra.mxu0 %vm418_vm0, %v12028_v5  ;;  %10420 = vmatprep.mubr.msk.f32.mxu0 %vm309_vm1, %v236_v41  ;;  %v263_v5 = vld [vmem:[%s12019_s24 + $0xe8] sm:$0xff] }
  0x5f   : > { %10527 = vmatprep.subr.msk.mxu0 %vm418_vm0, %v12108_v42  ;;  %v1051_v41 = vld [vmem:[%s12019_s24 + $0xe2] sm:$0xff] }
  0x61   : > { %10421 = vmatmul.mubr.msk.f32.gmra.mrb[2].mxu0 %vm309_vm1, %v237_v43  ;;  %v1053_v43 = vld [vmem:[%s12019_s24 + $0xf2] sm:$0xff] }
  0x62   : > { %10423 = vmatprep.mubr.msk.f32.mxu0 %vm309_vm1, %v238_v44  ;;  %v1054_v44 = vld [vmem:[%s12019_s24 + $0xfa] sm:$0xff] }
  0x65   : > { %10424 = vmatmul.mubr.msk.f32.gmra.mrb[4].mxu0 %vm309_vm1, %v239_v45  ;;  %v1055_v45 = vld [vmem:[%s12019_s24 + $0x102] sm:$0xff] }
  0x66   : > { %10426 = vmatprep.mubr.msk.f32.mxu0 %vm309_vm1, %v240_v46  ;;  %v1056_v46 = vld [vmem:[%s12019_s24 + $0x10a] sm:$0xff] }
  0x69   : > { %10427 = vmatmul.mubr.msk.f32.gmra.mrb[6].mxu0 %vm309_vm1, %v241_v47  ;;  %v1057_v47 = vld [vmem:[%s12019_s24 + $0x112] sm:$0xff] }
  0x6a   : > { %10429 = vmatprep.mubr.msk.f32.mxu0 %vm309_vm1, %v242_v48  ;;  %v1058_v48 = vld [vmem:[%s12019_s24 + $0x11a] sm:$0xff] }
  0x6d   : > { %10430 = vmatmul.mubr.msk.f32.gmra.mrb[8].mxu0 %vm309_vm1, %v243_v49  ;;  %v9198_v49 = vld [vmem:[%s14689_s1 + $0x14] sm:$0xf] }
  0x6e   : > { %10432 = vmatprep.mubr.msk.f32.mxu0 %vm309_vm1, %v244_v50  ;;  %v1487_v50 = vld [vmem:[%s12019_s24 + $0x122] sm:$0xff] }
  0x71   : > { %10433 = vmatmul.mubr.msk.f32.gmra.mrb[10].mxu0 %vm309_vm1, %v245_v51  ;;  %v1488_v51 = vld [vmem:[%s12019_s24 + $0x12a] sm:$0xff] }
  0x72   : > { %10435 = vmatprep.mubr.msk.f32.mxu0 %vm309_vm1, %v246_v52  ;;  %v1883_v52 = vld [vmem:[%s12019_s24 + $0x13] sm:$0xff] }
  0x75   : > { %10436 = vmatmul.mubr.msk.f32.gmra.mrb[12].mxu0 %vm309_vm1, %v247_v53  ;;  %v1884_v53 = vld [vmem:[%s12019_s24 + $0x1b] sm:$0xff] }
  0x76   : > { %10438 = vmatprep.mubr.msk.f32.mxu0 %vm309_vm1, %v248_v54  ;;  %v1885_v54 = vld [vmem:[%s12019_s24 + $0x23] sm:$0xff] }
  0x79   : > { %10439 = vmatmul.mubr.msk.f32.gmra.mrb[14].mxu0 %vm309_vm1, %v249_v55  ;;  %v12350_v55 = vld [vmem:[%s14689_s1 + $0x18] sm:$0xf] }
  0x7a   : > { %10441 = vmatprep.mubr.msk.f32.mxu0 %vm309_vm1, %v250_v56  ;;  %v1886_v56 = vld [vmem:[%s12019_s24 + $0x2b] sm:$0xff] }
  0x7d   : > { %10442 = vmatmul.mubr.msk.f32.gmra.mrb[16].mxu0 %vm309_vm1, %v251_v57  ;;  %v1887_v57 = vld [vmem:[%s12019_s24 + $0x33] sm:$0xff] }
  0x7e   : > { %10444 = vmatprep.mubr.msk.f32.mxu0 %vm309_vm1, %v252_v58  ;;  %v1888_v58 = vld [vmem:[%s12019_s24 + $0x3b] sm:$0xff] }
  0x81   : > { %10445 = vmatmul.mubr.msk.f32.gmra.mrb[18].mxu0 %vm309_vm1, %v253_v59  ;;  %v1889_v59 = vld [vmem:[%s12019_s24 + $0x43] sm:$0xff] }
  0x82   : > { %10447 = vmatprep.mubr.msk.f32.mxu0 %vm309_vm1, %v254_v60  ;;  %v1890_v60 = vld [vmem:[%s12019_s24 + $0x4b] sm:$0xff] }
  0x85   : > { %10448 = vmatmul.mubr.msk.f32.gmra.mrb[20].mxu0 %vm309_vm1, %v255_v61  ;;  %v1891_v61 = vld [vmem:[%s12019_s24 + $0x53] sm:$0xff] }
  0x86   : > { %10450 = vmatprep.mubr.msk.f32.mxu0 %vm309_vm1, %v256_v62  ;;  %v1892_v62 = vld [vmem:[%s12019_s24 + $0x5b] sm:$0xff] }
  0x89   : > { %10451 = vmatmul.mubr.msk.f32.gmra.mrb[22].mxu0 %vm309_vm1, %v257_v63  ;;  %v1893_v63 = vld [vmem:[%s12019_s24 + $0x63] sm:$0xff] }
  0x8a   : > { %10453 = vmatprep.mubr.msk.f32.mxu0 %vm309_vm1, %v258_v0  ;;  %v1894_v0 = vld [vmem:[%s12019_s24 + $0x6b] sm:$0xff] }
  0x8d   : > { %10454 = vmatmul.mubr.msk.f32.gmra.mrb[24].mxu0 %vm309_vm1, %v259_v1  ;;  %v1895_v1 = vld [vmem:[%s12019_s24 + $0x73] sm:$0xff] }
  0x8e   : > { %10456 = vmatprep.mubr.msk.f32.mxu0 %vm309_vm1, %v260_v2  ;;  %v1896_v2 = vld [vmem:[%s12019_s24 + $0x7b] sm:$0xff] }
  0x91   : > { %10457 = vmatmul.mubr.msk.f32.gmra.mrb[26].mxu0 %vm309_vm1, %v261_v3  ;;  %v1897_v3 = vld [vmem:[%s12019_s24 + $0x83] sm:$0xff] }
  0x92   : > { %10459 = vmatprep.mubr.msk.f32.mxu0 %vm309_vm1, %v262_v4  ;;  %v1898_v4 = vld [vmem:[%s12019_s24 + $0x8b] sm:$0xff] }
  0x95   : > { %10460 = vmatmul.mubr.msk.f32.gmra.mrb[28].mxu0 %vm309_vm1, %v263_v5  ;;  %v1899_v5 = vld [vmem:[%s12019_s24 + $0x93] sm:$0xff] }
  0x96   : > { %10462 = vmatprep.mubr.msk.f32.mxu0 %vm309_vm1, %v264_v6  ;;  %v1900_v6 = vld [vmem:[%s12019_s24 + $0x9b] sm:$0xff] }
  0x99   : > { %10463 = vmatmul.mubr.msk.f32.gmra.mrb[30].mxu0 %vm309_vm1, %v265_v7  ;;  %v1901_v7 = vld [vmem:[%s12019_s24 + $0xa3] sm:$0xff] }
  0x9a   : > { %10465 = vmatprep.mubr.msk.f32.mxu0 %vm309_vm1, %v266_v8  ;;  %v1902_v8 = vld [vmem:[%s12019_s24 + $0xab] sm:$0xff] }
  0x9d   : > { %10466 = vmatmul.mubr.msk.f32.gmra.mrb[32].mxu0 %vm309_vm1, %v267_v9  ;;  %v1903_v9 = vld [vmem:[%s12019_s24 + $0xb3] sm:$0xff] }
  0x9e   : > { %10468 = vmatprep.mubr.msk.f32.mxu0 %vm309_vm1, %v268_v10  ;;  %v1904_v10 = vld [vmem:[%s12019_s24 + $0xbb] sm:$0xff] }
  0xa1   : > { %10469 = vmatmul.mubr.msk.f32.gmra.mrb[34].mxu0 %vm309_vm1, %v269_v11  ;;  %v1905_v11 = vld [vmem:[%s12019_s24 + $0xc3] sm:$0xff] }
  0xa2   : > { %10473 = vmatprep.mubr.msk.f32.mxu0 %vm309_vm1, %v1023_v12  ;;  %v1906_v12 = vld [vmem:[%s12019_s24 + $0xcb] sm:$0xff] }
  0xa5   : > { %10474 = vmatmul.mubr.msk.f32.vlgmr.msra.gmra.mrb[0].mxu0 %vm309_vm1, %v1024_v13  ;;  %v1907_v13 = vld [vmem:[%s12019_s24 + $0xd3] sm:$0xff] }
  0xa6   : > { %10528 = vmatpush3.msk.msra.mxu0 %vm418_vm0, %v12108_v42  ;;  %10476 = vmatprep.mubr.msk.f32.mxu0 %vm309_vm1, %v12186_v14  ;;  %v1052_v42 = vld [vmem:[%s12019_s24 + $0xea] sm:$0xff] }
  0xa7   : > { %10583 = vmatprep.subr.msk.mxu0 %vm418_vm0, %v12191_v15 }
  0xa9   : > { %10477 = vmatmul.mubr.msk.f32.gmra.mrb[2].mxu0 %vm309_vm1, %v12199_v16 }
  0xaa   : > { %10479 = vmatprep.mubr.msk.f32.mxu0 %vm309_vm1, %v12202_v17 }
  0xad   : > { %10480 = vmatmul.mubr.msk.f32.gmra.mrb[4].mxu0 %vm309_vm1, %v12211_v18 }
  0xae   : > { %10482 = vmatprep.mubr.msk.f32.mxu0 %vm309_vm1, %v12214_v19 }
  0xb1   : > { %10483 = vmatmul.mubr.msk.f32.gmra.mrb[6].mxu0 %vm309_vm1, %v12221_v20 }
  0xb2   : > { %10485 = vmatprep.mubr.msk.f32.mxu0 %vm309_vm1, %v12224_v21 }
  0xb5   : > { %10486 = vmatmul.mubr.msk.f32.gmra.mrb[8].mxu0 %vm309_vm1, %v12231_v22 }
  0xb6   : > { %10488 = vmatprep.mubr.msk.f32.mxu0 %vm309_vm1, %v12234_v23 }
  0xb9   : > { %10489 = vmatmul.mubr.msk.f32.gmra.mrb[10].mxu0 %vm309_vm1, %v1034_v24 }
  0xba   : > { %10491 = vmatprep.mubr.msk.f32.mxu0 %vm309_vm1, %v1035_v25 }
  0xbd   : > { %10492 = vmatmul.mubr.msk.f32.gmra.mrb[12].mxu0 %vm309_vm1, %v1036_v26 }
  0xbe   : > { %10494 = vmatprep.mubr.msk.f32.mxu0 %vm309_vm1, %v1037_v27 }
  0xc1   : > { %10495 = vmatmul.mubr.msk.f32.gmra.mrb[14].mxu0 %vm309_vm1, %v1038_v28 }
  0xc2   : > { %10497 = vmatprep.mubr.msk.f32.mxu0 %vm309_vm1, %v1039_v29 }
  0xc5   : > { %10498 = vmatmul.mubr.msk.f32.gmra.mrb[16].mxu0 %vm309_vm1, %v1040_v30 }
  0xc6   : > { %10500 = vmatprep.mubr.msk.f32.mxu0 %vm309_vm1, %v1041_v31 }
  0xc9   : > { %10501 = vmatmul.mubr.msk.f32.gmra.mrb[18].mxu0 %vm309_vm1, %v1042_v32 }
  0xca   : > { %10503 = vmatprep.mubr.msk.f32.mxu0 %vm309_vm1, %v1043_v33 }
  0xcd   : > { %10504 = vmatmul.mubr.msk.f32.gmra.mrb[20].mxu0 %vm309_vm1, %v1044_v34 }
  0xce   : > { %10506 = vmatprep.mubr.msk.f32.mxu0 %vm309_vm1, %v1045_v35 }
  0xd1   : > { %10507 = vmatmul.mubr.msk.f32.gmra.mrb[22].mxu0 %vm309_vm1, %v1046_v36 }
  0xd2   : > { %10509 = vmatprep.mubr.msk.f32.mxu0 %vm309_vm1, %v1047_v37 }
  0xd5   : > { %10510 = vmatmul.mubr.msk.f32.gmra.mrb[24].mxu0 %vm309_vm1, %v1048_v38 }
  0xd6   : > { %10512 = vmatprep.mubr.msk.f32.mxu0 %vm309_vm1, %v1049_v39 }
  0xd9   : > { %10513 = vmatmul.mubr.msk.f32.gmra.mrb[26].mxu0 %vm309_vm1, %v1050_v40 }
  0xda   : > { %10515 = vmatprep.mubr.msk.f32.mxu0 %vm309_vm1, %v1051_v41 }
  0xdd   : > { %10516 = vmatmul.mubr.msk.f32.gmra.mrb[28].mxu0 %vm309_vm1, %v1052_v42 }
  0xde   : > { %10518 = vmatprep.mubr.msk.f32.mxu0 %vm309_vm1, %v1053_v43 }
  0xe1   : > { %10519 = vmatmul.mubr.msk.f32.gmra.mrb[30].mxu0 %vm309_vm1, %v1054_v44 }
  0xe2   : > { %10521 = vmatprep.mubr.msk.f32.mxu0 %vm309_vm1, %v1055_v45 }
  0xe5   : > { %10522 = vmatmul.mubr.msk.f32.gmra.mrb[32].mxu0 %vm309_vm1, %v1056_v46 }
  0xe6   : > { %10524 = vmatprep.mubr.msk.f32.mxu0 %vm309_vm1, %v1057_v47 }
  0xe9   : > { %10525 = vmatmul.mubr.msk.f32.gmra.mrb[34].mxu0 %vm309_vm1, %v1058_v48 }
  0xea   : > { %10529 = vmatprep.mubr.msk.f32.mxu0 %vm309_vm1, %v12186_v14  ;;  %v1908_v14 = vld [vmem:[%s12019_s24 + $0xdb] sm:$0xff] }
  0xed   : > { %10530 = vmatmul.mubr.msk.f32.vlgmr.msra.gmra.mrb[0].mxu0 %vm309_vm1, %v12199_v16  ;;  %v1910_v16 = vld [vmem:[%s12019_s24 + $0xeb] sm:$0xff] }
  0xee   : > { %10584 = vmatpush3.msk.msra.mxu0 %vm418_vm0, %v12191_v15  ;;  %10532 = vmatprep.mubr.msk.f32.mxu0 %vm309_vm1, %v12202_v17  ;;  %v1909_v15 = vld [vmem:[%s12019_s24 + $0xe3] sm:$0xff]  ;;  %v1911_v17 = vld [vmem:[%s12019_s24 + $0xf3] sm:$0xff] }
  0xef   : > { %10639 = vmatprep.subr.msk.mxu0 %vm418_vm0, %v9198_v49 }
  0xf1   : > { %10533 = vmatmul.mubr.msk.f32.gmra.mrb[2].mxu0 %vm309_vm1, %v12211_v18  ;;  %v1912_v18 = vld [vmem:[%s12019_s24 + $0xfb] sm:$0xff] }
  0xf2   : > { %10535 = vmatprep.mubr.msk.f32.mxu0 %vm309_vm1, %v12214_v19  ;;  %v1913_v19 = vld [vmem:[%s12019_s24 + $0x103] sm:$0xff] }
  0xf5   : > { %10536 = vmatmul.mubr.msk.f32.gmra.mrb[4].mxu0 %vm309_vm1, %v12221_v20  ;;  %v1914_v20 = vld [vmem:[%s12019_s24 + $0x10b] sm:$0xff] }
  0xf6   : > { %10538 = vmatprep.mubr.msk.f32.mxu0 %vm309_vm1, %v12224_v21  ;;  %v1915_v21 = vld [vmem:[%s12019_s24 + $0x113] sm:$0xff] }
  0xf9   : > { %10539 = vmatmul.mubr.msk.f32.gmra.mrb[6].mxu0 %vm309_vm1, %v12231_v22  ;;  %v1916_v22 = vld [vmem:[%s12019_s24 + $0x11b] sm:$0xff] }
  0xfa   : > { %10541 = vmatprep.mubr.msk.f32.mxu0 %vm309_vm1, %v12234_v23  ;;  %v1917_v23 = vld [vmem:[%s12019_s24 + $0x123] sm:$0xff] }
  0xfd   : > { %10542 = vmatmul.mubr.msk.f32.gmra.mrb[8].mxu0 %vm309_vm1, %v1034_v24  ;;  %v1918_v24 = vld [vmem:[%s12019_s24 + $0x12b] sm:$0xff] }
  0xfe   : > { %10544 = vmatprep.mubr.msk.f32.mxu0 %vm309_vm1, %v1035_v25  ;;  %v2313_v25 = vld [vmem:[%s12019_s24 + $0x14] sm:$0xff] }
 0x101   : > { %10545 = vmatmul.mubr.msk.f32.gmra.mrb[10].mxu0 %vm309_vm1, %v1036_v26  ;;  %v2314_v26 = vld [vmem:[%s12019_s24 + $0x1c] sm:$0xff] }
 0x102   : > { %10547 = vmatprep.mubr.msk.f32.mxu0 %vm309_vm1, %v1037_v27  ;;  %v12427_v27 = vld [vmem:[%s12019_s24 + $0x24] sm:$0xff] }
 0x105   : > { %10548 = vmatmul.mubr.msk.f32.gmra.mrb[12].mxu0 %vm309_vm1, %v1038_v28  ;;  %v12432_v28 = vld [vmem:[%s14689_s1 + $0x1c] sm:$0xf] }
 0x106   : > { %10550 = vmatprep.mubr.msk.f32.mxu0 %vm309_vm1, %v1039_v29  ;;  %v12440_v29 = vld [vmem:[%s12019_s24 + $0x2c] sm:$0xff] }
 0x109   : > { %10551 = vmatmul.mubr.msk.f32.gmra.mrb[14].mxu0 %vm309_vm1, %v1040_v30  ;;  %v12443_v30 = vld [vmem:[%s12019_s24 + $0x34] sm:$0xff] }
 0x10a   : > { %10553 = vmatprep.mubr.msk.f32.mxu0 %vm309_vm1, %v1041_v31  ;;  %v12452_v31 = vld [vmem:[%s12019_s24 + $0x3c] sm:$0xff] }
 0x10d   : > { %10554 = vmatmul.mubr.msk.f32.gmra.mrb[16].mxu0 %vm309_vm1, %v1042_v32  ;;  %v12455_v32 = vld [vmem:[%s12019_s24 + $0x44] sm:$0xff] }
 0x10e   : > { %10556 = vmatprep.mubr.msk.f32.mxu0 %vm309_vm1, %v1043_v33  ;;  %v12462_v33 = vld [vmem:[%s12019_s24 + $0x4c] sm:$0xff] }
 0x111   : > { %10557 = vmatmul.mubr.msk.f32.gmra.mrb[18].mxu0 %vm309_vm1, %v1044_v34  ;;  %v12465_v34 = vld [vmem:[%s12019_s24 + $0x54] sm:$0xff] }
 0x112   : > { %10559 = vmatprep.mubr.msk.f32.mxu0 %vm309_vm1, %v1045_v35  ;;  %v12472_v35 = vld [vmem:[%s12019_s24 + $0x5c] sm:$0xff] }
 0x115   : > { %10560 = vmatmul.mubr.msk.f32.gmra.mrb[20].mxu0 %vm309_vm1, %v1046_v36  ;;  %v12475_v36 = vld [vmem:[%s12019_s24 + $0x64] sm:$0xff] }
 0x116   : > { %10562 = vmatprep.mubr.msk.f32.mxu0 %vm309_vm1, %v1047_v37  ;;  %v2324_v37 = vld [vmem:[%s12019_s24 + $0x6c] sm:$0xff] }
 0x119   : > { %10563 = vmatmul.mubr.msk.f32.gmra.mrb[22].mxu0 %vm309_vm1, %v1048_v38  ;;  %v2325_v38 = vld [vmem:[%s12019_s24 + $0x74] sm:$0xff] }
 0x11a   : > { %10565 = vmatprep.mubr.msk.f32.mxu0 %vm309_vm1, %v1049_v39  ;;  %v2326_v39 = vld [vmem:[%s12019_s24 + $0x7c] sm:$0xff] }
 0x11d   : > { %10566 = vmatmul.mubr.msk.f32.gmra.mrb[24].mxu0 %vm309_vm1, %v1050_v40  ;;  %v2327_v40 = vld [vmem:[%s12019_s24 + $0x84] sm:$0xff] }
 0x11e   : > { %10568 = vmatprep.mubr.msk.f32.mxu0 %vm309_vm1, %v1051_v41  ;;  %v2328_v41 = vld [vmem:[%s12019_s24 + $0x8c] sm:$0xff] }
 0x121   : > { %10569 = vmatmul.mubr.msk.f32.gmra.mrb[26].mxu0 %vm309_vm1, %v1052_v42  ;;  %v2329_v42 = vld [vmem:[%s12019_s24 + $0x94] sm:$0xff] }
 0x122   : > { %10571 = vmatprep.mubr.msk.f32.mxu0 %vm309_vm1, %v1053_v43  ;;  %v2330_v43 = vld [vmem:[%s12019_s24 + $0x9c] sm:$0xff] }
 0x125   : > { %10572 = vmatmul.mubr.msk.f32.gmra.mrb[28].mxu0 %vm309_vm1, %v1054_v44  ;;  %v2331_v44 = vld [vmem:[%s12019_s24 + $0xa4] sm:$0xff] }
 0x126   : > { %10574 = vmatprep.mubr.msk.f32.mxu0 %vm309_vm1, %v1055_v45  ;;  %v2332_v45 = vld [vmem:[%s12019_s24 + $0xac] sm:$0xff] }
 0x129   : > { %10575 = vmatmul.mubr.msk.f32.gmra.mrb[30].mxu0 %vm309_vm1, %v1056_v46  ;;  %v2333_v46 = vld [vmem:[%s12019_s24 + $0xb4] sm:$0xff] }
 0x12a   : > { %10577 = vmatprep.mubr.msk.f32.mxu0 %vm309_vm1, %v1057_v47  ;;  %v2334_v47 = vld [vmem:[%s12019_s24 + $0xbc] sm:$0xff] }
 0x12d   : > { %10578 = vmatmul.mubr.msk.f32.gmra.mrb[32].mxu0 %vm309_vm1, %v1058_v48  ;;  %v12503_v48 = vld [vmem:[%s12019_s24 + $0xc4] sm:$0xff] }
 0x12e   : > { %10580 = vmatprep.mubr.msk.f32.mxu0 %vm309_vm1, %v1487_v50  ;;  %v12512_v50 = vld [vmem:[%s12019_s24 + $0xd4] sm:$0xff] }
 0x131   : > { %10581 = vmatmul.mubr.msk.f32.gmra.mrb[34].mxu0 %vm309_vm1, %v1488_v51  ;;  %v12519_v51 = vld [vmem:[%s12019_s24 + $0xdc] sm:$0xff] }
 0x132   : > { %10585 = vmatprep.mubr.msk.f32.mxu0 %vm309_vm1, %v1883_v52  ;;  %v12522_v52 = vld [vmem:[%s12019_s24 + $0xe4] sm:$0xff] }
 0x135   : > { %10586 = vmatmul.mubr.msk.f32.vlgmr.msra.gmra.mrb[0].mxu0 %vm309_vm1, %v1884_v53  ;;  %v12529_v53 = vld [vmem:[%s12019_s24 + $0xec] sm:$0xff] }
 0x136   : > { %10640 = vmatpush3.msk.msra.mxu0 %vm418_vm0, %v9198_v49  ;;  %10588 = vmatprep.mubr.msk.f32.mxu0 %vm309_vm1, %v1885_v54  ;;  %v12509_v49 = vld [vmem:[%s12019_s24 + $0xcc] sm:$0xff]  ;;  %v12532_v54 = vld [vmem:[%s12019_s24 + $0xf4] sm:$0xff] }
 0x137   : > { %10695 = vmatprep.subr.msk.mxu0 %vm418_vm0, %v12350_v55 }
 0x139   : > { %10589 = vmatmul.mubr.msk.f32.gmra.mrb[2].mxu0 %vm309_vm1, %v1886_v56  ;;  %v12542_v56 = vld [vmem:[%s12019_s24 + $0x104] sm:$0xff] }
 0x13a   : > { %10591 = vmatprep.mubr.msk.f32.mxu0 %vm309_vm1, %v1887_v57  ;;  %v12549_v57 = vld [vmem:[%s12019_s24 + $0x10c] sm:$0xff] }
 0x13d   : > { %10592 = vmatmul.mubr.msk.f32.gmra.mrb[4].mxu0 %vm309_vm1, %v1888_v58  ;;  %v12552_v58 = vld [vmem:[%s12019_s24 + $0x114] sm:$0xff] }
 0x13e   : > { %10594 = vmatprep.mubr.msk.f32.mxu0 %vm309_vm1, %v1889_v59  ;;  %v12559_v59 = vld [vmem:[%s12019_s24 + $0x11c] sm:$0xff] }
 0x141   : > { %10595 = vmatmul.mubr.msk.f32.gmra.mrb[6].mxu0 %vm309_vm1, %v1890_v60  ;;  %v12562_v60 = vld [vmem:[%s12019_s24 + $0x124] sm:$0xff] }
 0x142   : > { %10597 = vmatprep.mubr.msk.f32.mxu0 %vm309_vm1, %v1891_v61  ;;  %v12569_v61 = vld [vmem:[%s12019_s24 + $0x12c] sm:$0xff] }
 0x145   : > { %10598 = vmatmul.mubr.msk.f32.gmra.mrb[8].mxu0 %vm309_vm1, %v1892_v62  ;;  %v12578_v62 = vld [vmem:[%s14689_s1 + $0x20] sm:$0xf] }
 0x146   : > { %10600 = vmatprep.mubr.msk.f32.mxu0 %vm309_vm1, %v1893_v63  ;;  %v198_v63 = vld [vmem:[%s14691_s3] sm:$0xff] }
 0x149   : > { %10601 = vmatmul.mubr.msk.f32.gmra.mrb[10].mxu0 %vm309_vm1, %v1894_v0  ;;  %v11969_v0 = vmov 0  }
 0x14a   : > { %10603 = vmatprep.mubr.msk.f32.mxu0 %vm309_vm1, %v1895_v1  ;;  %11955 = vset.pattern.permute.xlu0 %v11969_v0  ;;  %v200_v1 = vld [vmem:[%s14691_s3 + $0x10] sm:$0xff] }
 0x14b   : > { %4035 = vperm.xlu0 %11955, %v198_v63   ;;  %11956 = vset.pattern.permute.xlu1 %v11969_v0  ;;  %v3198_v63 = vld [vmem:[%s12019_s24 + $0xed] sm:$0xff]  ;;  %v3199_v0 = vld [vmem:[%s12019_s24 + $0xf5] sm:$0xff] }
 0x14c   : > { %4045 = vperm.xlu1 %11956, %v200_v1   ;;  %v3200_v1 = vld [vmem:[%s12019_s24 + $0xfd] sm:$0xff] }
 0x14d   : > { %10604 = vmatmul.mubr.msk.f32.gmra.mrb[12].mxu0 %vm309_vm1, %v1896_v2  ;;  %v199_v2 = vld [vmem:[%s14691_s3 + $0x8] sm:$0xff] }
 0x14e   : > { %10606 = vmatprep.mubr.msk.f32.mxu0 %vm309_vm1, %v1897_v3  ;;  %v201_v3 = vld [vmem:[%s14691_s3 + $0x18] sm:$0xff] }
 0x14f   : > { %4040 = vperm.xlu0 %11955, %v199_v2   ;;  %v3201_v2 = vld [vmem:[%s12019_s24 + $0x105] sm:$0xff] }
 0x150   : > { %4050 = vperm.xlu1 %11956, %v201_v3   ;;  %v3202_v3 = vld [vmem:[%s12019_s24 + $0x10d] sm:$0xff] }
 0x151   : > { %10607 = vmatmul.mubr.msk.f32.gmra.mrb[14].mxu0 %vm309_vm1, %v1898_v4  ;;  %v202_v4 = vld [vmem:[%s14691_s3 + $0x20] sm:$0xff] }
 0x152   : > { %10609 = vmatprep.mubr.msk.f32.mxu0 %vm309_vm1, %v1899_v5  ;;  %v203_v5 = vld [vmem:[%s14691_s3 + $0x28] sm:$0xff] }
 0x153   : > { %4055 = vperm.xlu0 %11955, %v202_v4   ;;  %v3203_v4 = vld [vmem:[%s12019_s24 + $0x115] sm:$0xff] }
 0x154   : > { %4060 = vperm.xlu1 %11956, %v203_v5   ;;  %v3204_v5 = vld [vmem:[%s12019_s24 + $0x11d] sm:$0xff] }
 0x155   : > { %10610 = vmatmul.mubr.msk.f32.gmra.mrb[16].mxu0 %vm309_vm1, %v1900_v6  ;;  %v204_v6 = vld [vmem:[%s14691_s3 + $0x30] sm:$0xff] }
 0x156   : > { %10612 = vmatprep.mubr.msk.f32.mxu0 %vm309_vm1, %v1901_v7  ;;  %v205_v7 = vld [vmem:[%s14691_s3 + $0x38] sm:$0xff] }
 0x157   : > { %4065 = vperm.xlu0 %11955, %v204_v6   ;;  %v3205_v6 = vld [vmem:[%s12019_s24 + $0x125] sm:$0xff] }
 0x158   : > { %4070 = vperm.xlu1 %11956, %v205_v7   ;;  %v3206_v7 = vld [vmem:[%s12019_s24 + $0x12d] sm:$0xff] }
 0x159   : > { %10613 = vmatmul.mubr.msk.f32.gmra.mrb[18].mxu0 %vm309_vm1, %v1902_v8  ;;  %v206_v8 = vld [vmem:[%s14691_s3 + $0x40] sm:$0xff] }
 0x15a   : > { %10615 = vmatprep.mubr.msk.f32.mxu0 %vm309_vm1, %v1903_v9  ;;  %v207_v9 = vld [vmem:[%s14691_s3 + $0x48] sm:$0xff] }
 0x15b   : > { %4075 = vperm.xlu0 %11955, %v206_v8   ;;  %v3207_v8 = vld [vmem:[%s12019_s24 + $0x135] sm:$0xff] }
 0x15c   : > { %4080 = vperm.xlu1 %11956, %v207_v9   ;;  %v3208_v9 = vld [vmem:[%s12019_s24 + $0x13d] sm:$0xff] }
 0x15d   : > { %10616 = vmatmul.mubr.msk.f32.gmra.mrb[20].mxu0 %vm309_vm1, %v1904_v10  ;;  %v208_v10 = vld [vmem:[%s14691_s3 + $0x50] sm:$0xff] }
 0x15e   : > { %10618 = vmatprep.mubr.msk.f32.mxu0 %vm309_vm1, %v1905_v11  ;;  %v209_v11 = vld [vmem:[%s14691_s3 + $0x58] sm:$0xff] }
 0x15f   : > { %4085 = vperm.xlu0 %11955, %v208_v10   ;;  %v3603_v10 = vld [vmem:[%s12019_s24 + $0x26] sm:$0xff] }
 0x160   : > { %4090 = vperm.xlu1 %11956, %v209_v11   ;;  %v3604_v11 = vld [vmem:[%s12019_s24 + $0x2e] sm:$0xff] }
 0x161   : > { %10619 = vmatmul.mubr.msk.f32.gmra.mrb[22].mxu0 %vm309_vm1, %v1906_v12  ;;  %v210_v12 = vld [vmem:[%s14691_s3 + $0x60] sm:$0xff] }
 0x162   : > { %10621 = vmatprep.mubr.msk.f32.mxu0 %vm309_vm1, %v1907_v13  ;;  %v211_v13 = vld [vmem:[%s14691_s3 + $0x68] sm:$0xff] }
 0x163   : > { %4095 = vperm.xlu0 %11955, %v210_v12   ;;  %v3605_v12 = vld [vmem:[%s12019_s24 + $0x36] sm:$0xff] }
 0x164   : > { %4100 = vperm.xlu1 %11956, %v211_v13   ;;  %v3606_v13 = vld [vmem:[%s12019_s24 + $0x3e] sm:$0xff] }
 0x165   : > { %10622 = vmatmul.mubr.msk.f32.gmra.mrb[24].mxu0 %vm309_vm1, %v1908_v14  ;;  %v212_v14 = vld [vmem:[%s14691_s3 + $0x70] sm:$0xff] }
 0x166   : > { %10624 = vmatprep.mubr.msk.f32.mxu0 %vm309_vm1, %v1909_v15  ;;  %v213_v15 = vld [vmem:[%s14691_s3 + $0x78] sm:$0xff] }
 0x167   : > { %4105 = vperm.xlu0 %11955, %v212_v14   ;;  %v3607_v14 = vld [vmem:[%s12019_s24 + $0x46] sm:$0xff] }
 0x168   : > { %4110 = vperm.xlu1 %11956, %v213_v15   ;;  %v3608_v15 = vld [vmem:[%s12019_s24 + $0x4e] sm:$0xff] }
 0x169   : > { %10625 = vmatmul.mubr.msk.f32.gmra.mrb[26].mxu0 %vm309_vm1, %v1910_v16  ;;  %v214_v16 = vld [vmem:[%s14691_s3 + $0x80] sm:$0xff] }
 0x16a   : > { %10627 = vmatprep.mubr.msk.f32.mxu0 %vm309_vm1, %v1911_v17  ;;  %v2777_v17 = vld [vmem:[%s12019_s24 + $0x134] sm:$0xff] }
 0x16b   : > { %4115 = vperm.xlu0 %11955, %v214_v16   ;;  %v3609_v16 = vld [vmem:[%s12019_s24 + $0x56] sm:$0xff] }
 0x16d   : > { %10628 = vmatmul.mubr.msk.f32.gmra.mrb[28].mxu0 %vm309_vm1, %v1912_v18  ;;  %v215_v18 = vld [vmem:[%s14691_s3 + $0x88] sm:$0xff] }
 0x16e   : > { %10630 = vmatprep.mubr.msk.f32.mxu0 %vm309_vm1, %v1913_v19  ;;  %v216_v19 = vld [vmem:[%s14691_s3 + $0x90] sm:$0xff]  ;;  %4120 = vperm.xlu1 %11956, %v215_v18   ;;  %v3611_v18 = vld [vmem:[%s12019_s24 + $0x66] sm:$0xff] }
 0x16f   : > { %4125 = vperm.xlu0 %11955, %v216_v19   ;;  %v3612_v19 = vld [vmem:[%s12019_s24 + $0x6e] sm:$0xff] }
 0x171   : > { %10631 = vmatmul.mubr.msk.f32.gmra.mrb[30].mxu0 %vm309_vm1, %v1914_v20  ;;  %v2778_v20 = vld [vmem:[%s12019_s24 + $0x13c] sm:$0xff] }
 0x172   : > { %10633 = vmatprep.mubr.msk.f32.mxu0 %vm309_vm1, %v1915_v21  ;;  %v3173_v21 = vld [vmem:[%s12019_s24 + $0x25] sm:$0xff] }
 0x175   : > { %10634 = vmatmul.mubr.msk.f32.gmra.mrb[32].mxu0 %vm309_vm1, %v1916_v22  ;;  %v217_v22 = vld [vmem:[%s14691_s3 + $0x98] sm:$0xff] }
 0x176   : > { %10636 = vmatprep.mubr.msk.f32.mxu0 %vm309_vm1, %v1917_v23  ;;  %v218_v23 = vld [vmem:[%s14691_s3 + $0xa0] sm:$0xff]  ;;  %4130 = vperm.xlu1 %11956, %v217_v22  }
 0x177   : > { %4135 = vperm.xlu0 %11955, %v218_v23   ;;  %v3615_v22 = vld [vmem:[%s12019_s24 + $0x86] sm:$0xff]  ;;  %v3616_v23 = vld [vmem:[%s12019_s24 + $0x8e] sm:$0xff] }
 0x179   : > { %10637 = vmatmul.mubr.msk.f32.gmra.mrb[34].mxu0 %vm309_vm1, %v1918_v24  ;;  %v3174_v24 = vld [vmem:[%s12019_s24 + $0x2d] sm:$0xff] }
 0x17a   : > { %10641 = vmatprep.mubr.msk.f32.mxu0 %vm309_vm1, %v2313_v25  ;;  %v3175_v25 = vld [vmem:[%s12019_s24 + $0x35] sm:$0xff] }
 0x17d   : > { %10642 = vmatmul.mubr.msk.f32.vlgmr.msra.gmra.mrb[0].mxu0 %vm309_vm1, %v2314_v26  ;;  %v219_v26 = vld [vmem:[%s14691_s3 + $0xa8] sm:$0xff] }
 0x17e   : > { %10696 = vmatpush3.msk.msra.mxu0 %vm418_vm0, %v12350_v55  ;;  %10644 = vmatprep.mubr.msk.f32.mxu0 %vm309_vm1, %v12427_v27  ;;  %v12539_v55 = vld [vmem:[%s12019_s24 + $0xfc] sm:$0xff] }
 0x17f   : > { %10751 = vmatprep.subr.msk.mxu0 %vm418_vm0, %v12432_v28  ;;  %4140 = vperm.xlu1 %11956, %v219_v26   ;;  %v3619_v26 = vld [vmem:[%s12019_s24 + $0xa6] sm:$0xff] }
 0x181   : > { %10645 = vmatmul.mubr.msk.f32.gmra.mrb[2].mxu0 %vm309_vm1, %v12440_v29 }
 0x182   : > { %10647 = vmatprep.mubr.msk.f32.mxu0 %vm309_vm1, %v12443_v30 }
 0x185   : > { %10648 = vmatmul.mubr.msk.f32.gmra.mrb[4].mxu0 %vm309_vm1, %v12452_v31 }
 0x186   : > { %10650 = vmatprep.mubr.msk.f32.mxu0 %vm309_vm1, %v12455_v32 }
 0x189   : > { %10651 = vmatmul.mubr.msk.f32.gmra.mrb[6].mxu0 %vm309_vm1, %v12462_v33 }
 0x18a   : > { %10653 = vmatprep.mubr.msk.f32.mxu0 %vm309_vm1, %v12465_v34 }
 0x18d   : > { %10654 = vmatmul.mubr.msk.f32.gmra.mrb[8].mxu0 %vm309_vm1, %v12472_v35 }
 0x18e   : > { %10656 = vmatprep.mubr.msk.f32.mxu0 %vm309_vm1, %v12475_v36 }
 0x191   : > { %10657 = vmatmul.mubr.msk.f32.gmra.mrb[10].mxu0 %vm309_vm1, %v2324_v37 }
 0x192   : > { %10659 = vmatprep.mubr.msk.f32.mxu0 %vm309_vm1, %v2325_v38 }
 0x195   : > { %10660 = vmatmul.mubr.msk.f32.gmra.mrb[12].mxu0 %vm309_vm1, %v2326_v39 }
 0x196   : > { %10662 = vmatprep.mubr.msk.f32.mxu0 %vm309_vm1, %v2327_v40 }
 0x199   : > { %10663 = vmatmul.mubr.msk.f32.gmra.mrb[14].mxu0 %vm309_vm1, %v2328_v41 }
 0x19a   : > { %10665 = vmatprep.mubr.msk.f32.mxu0 %vm309_vm1, %v2329_v42 }
 0x19d   : > { %10666 = vmatmul.mubr.msk.f32.gmra.mrb[16].mxu0 %vm309_vm1, %v2330_v43 }
 0x19e   : > { %10668 = vmatprep.mubr.msk.f32.mxu0 %vm309_vm1, %v2331_v44 }
 0x1a1   : > { %10669 = vmatmul.mubr.msk.f32.gmra.mrb[18].mxu0 %vm309_vm1, %v2332_v45 }
 0x1a2   : > { %10671 = vmatprep.mubr.msk.f32.mxu0 %vm309_vm1, %v2333_v46 }
 0x1a5   : > { %10672 = vmatmul.mubr.msk.f32.gmra.mrb[20].mxu0 %vm309_vm1, %v2334_v47 }
 0x1a6   : > { %10674 = vmatprep.mubr.msk.f32.mxu0 %vm309_vm1, %v12503_v48 }
 0x1a9   : > { %10675 = vmatmul.mubr.msk.f32.gmra.mrb[22].mxu0 %vm309_vm1, %v12509_v49 }
 0x1aa   : > { %10677 = vmatprep.mubr.msk.f32.mxu0 %vm309_vm1, %v12512_v50 }
 0x1ad   : > { %10678 = vmatmul.mubr.msk.f32.gmra.mrb[24].mxu0 %vm309_vm1, %v12519_v51 }
 0x1ae   : > { %10680 = vmatprep.mubr.msk.f32.mxu0 %vm309_vm1, %v12522_v52 }
 0x1b1   : > { %10681 = vmatmul.mubr.msk.f32.gmra.mrb[26].mxu0 %vm309_vm1, %v12529_v53 }
 0x1b2   : > { %10683 = vmatprep.mubr.msk.f32.mxu0 %vm309_vm1, %v12532_v54 }
 0x1b5   : > { %10684 = vmatmul.mubr.msk.f32.gmra.mrb[28].mxu0 %vm309_vm1, %v12539_v55 }
 0x1b6   : > { %10686 = vmatprep.mubr.msk.f32.mxu0 %vm309_vm1, %v12542_v56 }
 0x1b9   : > { %10687 = vmatmul.mubr.msk.f32.gmra.mrb[30].mxu0 %vm309_vm1, %v12549_v57 }
 0x1ba   : > { %10689 = vmatprep.mubr.msk.f32.mxu0 %vm309_vm1, %v12552_v58 }
 0x1bd   : > { %10690 = vmatmul.mubr.msk.f32.gmra.mrb[32].mxu0 %vm309_vm1, %v12559_v59 }
 0x1be   : > { %10692 = vmatprep.mubr.msk.f32.mxu0 %vm309_vm1, %v12562_v60 }
 0x1c1   : > { %10693 = vmatmul.mubr.msk.f32.gmra.mrb[34].mxu0 %vm309_vm1, %v12569_v61 }
 0x1c2   : > { %10697 = vmatprep.mubr.msk.f32.mxu0 %vm309_vm1, %v12427_v27  ;;  %v220_v27 = vld [vmem:[%s14691_s3 + $0xb0] sm:$0xff] }
 0x1c3   : > { %4145 = vperm.xlu0 %11955, %v220_v27   ;;  %v3620_v27 = vld [vmem:[%s12019_s24 + $0xae] sm:$0xff] }
 0x1c5   : > { %10698 = vmatmul.mubr.msk.f32.vlgmr.msra.gmra.mrb[0].mxu0 %vm309_vm1, %v12440_v29  ;;  %v3177_v29 = vld [vmem:[%s12019_s24 + $0x45] sm:$0xff] }
 0x1c6   : > { %10752 = vmatpush3.msk.msra.mxu0 %vm418_vm0, %v12432_v28  ;;  %10700 = vmatprep.mubr.msk.f32.mxu0 %vm309_vm1, %v12443_v30  ;;  %v3176_v28 = vld [vmem:[%s12019_s24 + $0x3d] sm:$0xff] }
 0x1c7   : > { %10807 = vmatprep.subr.msk.mxu0 %vm418_vm0, %v12578_v62  ;;  %v221_v30 = vld [vmem:[%s14691_s3 + $0xb8] sm:$0xff] }
 0x1c8   : > { %4150 = vperm.xlu1 %11956, %v221_v30   ;;  %v3623_v30 = vld [vmem:[%s12019_s24 + $0xc6] sm:$0xff] }
 0x1c9   : > { %10701 = vmatmul.mubr.msk.f32.gmra.mrb[2].mxu0 %vm309_vm1, %v12452_v31  ;;  %v222_v31 = vld [vmem:[%s14691_s3 + $0xc0] sm:$0xff] }
 0x1ca   : > { %10703 = vmatprep.mubr.msk.f32.mxu0 %vm309_vm1, %v12455_v32  ;;  %v3178_v32 = vld [vmem:[%s12019_s24 + $0x4d] sm:$0xff]  ;;  %4155 = vperm.xlu0 %11955, %v222_v31  }
 0x1cb   : > { %v3624_v31 = vld [vmem:[%s12019_s24 + $0xce] sm:$0xff] }
 0x1cd   : > { %10704 = vmatmul.mubr.msk.f32.gmra.mrb[4].mxu0 %vm309_vm1, %v12462_v33  ;;  %v3179_v33 = vld [vmem:[%s12019_s24 + $0x55] sm:$0xff] }
 0x1ce   : > { %10706 = vmatprep.mubr.msk.f32.mxu0 %vm309_vm1, %v12465_v34  ;;  %v223_v34 = vld [vmem:[%s14691_s3 + $0xc8] sm:$0xff] }
 0x1cf   : > { %4160 = vperm.xlu1 %11956, %v223_v34   ;;  %v3627_v34 = vld [vmem:[%s12019_s24 + $0xe6] sm:$0xff] }
 0x1d1   : > { %10707 = vmatmul.mubr.msk.f32.gmra.mrb[6].mxu0 %vm309_vm1, %v12472_v35  ;;  %v224_v35 = vld [vmem:[%s14691_s3 + $0xd0] sm:$0xff] }
 0x1d2   : > { %10709 = vmatprep.mubr.msk.f32.mxu0 %vm309_vm1, %v12475_v36  ;;  %v3180_v36 = vld [vmem:[%s12019_s24 + $0x5d] sm:$0xff]  ;;  %4165 = vperm.xlu0 %11955, %v224_v35   ;;  %v3628_v35 = vld [vmem:[%s12019_s24 + $0xee] sm:$0xff] }
 0x1d5   : > { %10710 = vmatmul.mubr.msk.f32.gmra.mrb[8].mxu0 %vm309_vm1, %v2324_v37  ;;  %v3181_v37 = vld [vmem:[%s12019_s24 + $0x65] sm:$0xff] }
 0x1d6   : > { %10712 = vmatprep.mubr.msk.f32.mxu0 %vm309_vm1, %v2325_v38  ;;  %v225_v38 = vld [vmem:[%s14691_s3 + $0xd8] sm:$0xff] }
 0x1d7   : > { %4170 = vperm.xlu1 %11956, %v225_v38   ;;  %v3631_v38 = vld [vmem:[%s12019_s24 + $0x106] sm:$0xff] }
 0x1d9   : > { %10713 = vmatmul.mubr.msk.f32.gmra.mrb[10].mxu0 %vm309_vm1, %v2326_v39  ;;  %v226_v39 = vld [vmem:[%s14691_s3 + $0xe0] sm:$0xff] }
 0x1da   : > { %10715 = vmatprep.mubr.msk.f32.mxu0 %vm309_vm1, %v2327_v40  ;;  %v3182_v40 = vld [vmem:[%s12019_s24 + $0x6d] sm:$0xff]  ;;  %4175 = vperm.xlu0 %11955, %v226_v39  }
 0x1db   : > { %v3632_v39 = vld [vmem:[%s12019_s24 + $0x10e] sm:$0xff] }
 0x1dd   : > { %10716 = vmatmul.mubr.msk.f32.gmra.mrb[12].mxu0 %vm309_vm1, %v2328_v41  ;;  %v3183_v41 = vld [vmem:[%s12019_s24 + $0x75] sm:$0xff] }
 0x1de   : > { %10718 = vmatprep.mubr.msk.f32.mxu0 %vm309_vm1, %v2329_v42  ;;  %v227_v42 = vld [vmem:[%s14691_s3 + $0xe8] sm:$0xff] }
 0x1df   : > { %4180 = vperm.xlu1 %11956, %v227_v42   ;;  %v3635_v42 = vld [vmem:[%s12019_s24 + $0x126] sm:$0xff] }
 0x1e1   : > { %10719 = vmatmul.mubr.msk.f32.gmra.mrb[14].mxu0 %vm309_vm1, %v2330_v43  ;;  %v228_v43 = vld [vmem:[%s14691_s3 + $0xf0] sm:$0xff] }
 0x1e2   : > { %10721 = vmatprep.mubr.msk.f32.mxu0 %vm309_vm1, %v2331_v44  ;;  %v3184_v44 = vld [vmem:[%s12019_s24 + $0x7d] sm:$0xff]  ;;  %4185 = vperm.xlu0 %11955, %v228_v43   ;;  %v3636_v43 = vld [vmem:[%s12019_s24 + $0x12e] sm:$0xff] }
 0x1e5   : > { %10722 = vmatmul.mubr.msk.f32.gmra.mrb[16].mxu0 %vm309_vm1, %v2332_v45  ;;  %v3185_v45 = vld [vmem:[%s12019_s24 + $0x85] sm:$0xff] }
 0x1e6   : > { %10724 = vmatprep.mubr.msk.f32.mxu0 %vm309_vm1, %v2333_v46  ;;  %v229_v46 = vld [vmem:[%s14691_s3 + $0xf8] sm:$0xff] }
 0x1e7   : > { %4190 = vperm.xlu1 %11956, %v229_v46   ;;  %v12897_v46 = vpop.permute.xlu0 %4035 }
 0x1e9   : > { %10725 = vmatmul.mubr.msk.f32.gmra.mrb[18].mxu0 %vm309_vm1, %v2334_v47  ;;  %v230_v47 = vld [vmem:[%s14691_s3 + $0x100] sm:$0xff] }
 0x1ea   : > { %10727 = vmatprep.mubr.msk.f32.mxu0 %vm309_vm1, %v12503_v48  ;;  %v3186_v48 = vld [vmem:[%s12019_s24 + $0x8d] sm:$0xff]  ;;  %4195 = vperm.xlu0 %11955, %v230_v47   ;;  %v12899_v47 = vpop.permute.xlu1 %4045 }
 0x1ed   : > { %10728 = vmatmul.mubr.msk.f32.gmra.mrb[20].mxu0 %vm309_vm1, %v12509_v49  ;;  %v3187_v49 = vld [vmem:[%s12019_s24 + $0x95] sm:$0xff] }
 0x1ee   : > { %10730 = vmatprep.mubr.msk.f32.mxu0 %vm309_vm1, %v12512_v50  ;;  %v231_v50 = vld [vmem:[%s14691_s3 + $0x108] sm:$0xff] }
 0x1ef   : > { %4200 = vperm.xlu1 %11956, %v231_v50  }
 0x1f1   : > { %10731 = vmatmul.mubr.msk.f32.gmra.mrb[22].mxu0 %vm309_vm1, %v12519_v51  ;;  %v232_v51 = vld [vmem:[%s14691_s3 + $0x110] sm:$0xff] }
 0x1f2   : > { %10733 = vmatprep.mubr.msk.f32.mxu0 %vm309_vm1, %v12522_v52  ;;  %v3188_v52 = vld [vmem:[%s12019_s24 + $0x9d] sm:$0xff]  ;;  %4205 = vperm.xlu0 %11955, %v232_v51  }
 0x1f5   : > { %10734 = vmatmul.mubr.msk.f32.gmra.mrb[24].mxu0 %vm309_vm1, %v12529_v53  ;;  %v3189_v53 = vld [vmem:[%s12019_s24 + $0xa5] sm:$0xff] }
 0x1f6   : > { %10736 = vmatprep.mubr.msk.f32.mxu0 %vm309_vm1, %v12532_v54  ;;  %v233_v54 = vld [vmem:[%s14691_s3 + $0x118] sm:$0xff] }
 0x1f7   : > { %4210 = vperm.xlu1 %11956, %v233_v54  }
 0x1f9   : > { %10737 = vmatmul.mubr.msk.f32.gmra.mrb[26].mxu0 %vm309_vm1, %v12539_v55  ;;  %v3190_v55 = vld [vmem:[%s12019_s24 + $0xad] sm:$0xff] }
 0x1fa   : > { %10739 = vmatprep.mubr.msk.f32.mxu0 %vm309_vm1, %v12542_v56  ;;  %v3191_v56 = vld [vmem:[%s12019_s24 + $0xb5] sm:$0xff] }
 0x1fd   : > { %10740 = vmatmul.mubr.msk.f32.gmra.mrb[28].mxu0 %vm309_vm1, %v12549_v57  ;;  %v3192_v57 = vld [vmem:[%s12019_s24 + $0xbd] sm:$0xff] }
 0x1fe   : > { %10742 = vmatprep.mubr.msk.f32.mxu0 %vm309_vm1, %v12552_v58  ;;  %v3193_v58 = vld [vmem:[%s12019_s24 + $0xc5] sm:$0xff] }
 0x201   : > { %10743 = vmatmul.mubr.msk.f32.gmra.mrb[30].mxu0 %vm309_vm1, %v12559_v59  ;;  %v3194_v59 = vld [vmem:[%s12019_s24 + $0xcd] sm:$0xff] }
 0x202   : > { %10745 = vmatprep.mubr.msk.f32.mxu0 %vm309_vm1, %v12562_v60  ;;  %v3195_v60 = vld [vmem:[%s12019_s24 + $0xd5] sm:$0xff] }
 0x205   : > { %10746 = vmatmul.mubr.msk.f32.gmra.mrb[32].mxu0 %vm309_vm1, %v12569_v61  ;;  %v3196_v61 = vld [vmem:[%s12019_s24 + $0xdd] sm:$0xff] }
 0x206   : > { %10748 = vmatprep.mubr.msk.f32.mxu0 %vm309_vm1, %v2777_v17  ;;  %v3610_v17 = vld [vmem:[%s12019_s24 + $0x5e] sm:$0xff] }
 0x209   : > { %10749 = vmatmul.mubr.msk.f32.gmra.mrb[34].mxu0 %vm309_vm1, %v2778_v20  ;;  %v3613_v20 = vld [vmem:[%s12019_s24 + $0x76] sm:$0xff] }
 0x20a   : > { %10753 = vmatprep.mubr.msk.f32.mxu0 %vm309_vm1, %v3173_v21  ;;  %v3614_v21 = vld [vmem:[%s12019_s24 + $0x7e] sm:$0xff] }
 0x20d   : > { %10754 = vmatmul.mubr.msk.f32.vlgmr.msra.gmra.mrb[0].mxu0 %vm309_vm1, %v3174_v24  ;;  %v3617_v24 = vld [vmem:[%s12019_s24 + $0x96] sm:$0xff] }
 0x20e   : > { %10808 = vmatpush3.msk.msra.mxu0 %vm418_vm0, %v12578_v62  ;;  %10756 = vmatprep.mubr.msk.f32.mxu0 %vm309_vm1, %v3175_v25  ;;  %v3197_v62 = vld [vmem:[%s12019_s24 + $0xe5] sm:$0xff] }
 0x20f   : > { %v3618_v25 = vld [vmem:[%s12019_s24 + $0x9e] sm:$0xff] }
 0x211   : > { %10757 = vmatmul.mubr.msk.f32.gmra.mrb[2].mxu0 %vm309_vm1, %v3176_v28  ;;  %v3621_v28 = vld [vmem:[%s12019_s24 + $0xb6] sm:$0xff] }
 0x212   : > { %10759 = vmatprep.mubr.msk.f32.mxu0 %vm309_vm1, %v3177_v29  ;;  %v3622_v29 = vld [vmem:[%s12019_s24 + $0xbe] sm:$0xff] }
 0x215   : > { %10760 = vmatmul.mubr.msk.f32.gmra.mrb[4].mxu0 %vm309_vm1, %v3178_v32  ;;  %v3625_v32 = vld [vmem:[%s12019_s24 + $0xd6] sm:$0xff] }
 0x216   : > { %10762 = vmatprep.mubr.msk.f32.mxu0 %vm309_vm1, %v3179_v33  ;;  %v3626_v33 = vld [vmem:[%s12019_s24 + $0xde] sm:$0xff] }
 0x219   : > { %10763 = vmatmul.mubr.msk.f32.gmra.mrb[6].mxu0 %vm309_vm1, %v3180_v36  ;;  %v3629_v36 = vld [vmem:[%s12019_s24 + $0xf6] sm:$0xff] }
 0x21a   : > { %10765 = vmatprep.mubr.msk.f32.mxu0 %vm309_vm1, %v3181_v37  ;;  %v3630_v37 = vld [vmem:[%s12019_s24 + $0xfe] sm:$0xff] }
 0x21d   : > { %10766 = vmatmul.mubr.msk.f32.gmra.mrb[8].mxu0 %vm309_vm1, %v3182_v40  ;;  %v3633_v40 = vld [vmem:[%s12019_s24 + $0x116] sm:$0xff] }
 0x21e   : > { %10768 = vmatprep.mubr.msk.f32.mxu0 %vm309_vm1, %v3183_v41  ;;  %v3634_v41 = vld [vmem:[%s12019_s24 + $0x11e] sm:$0xff] }
 0x221   : > { %10769 = vmatmul.mubr.msk.f32.gmra.mrb[10].mxu0 %vm309_vm1, %v3184_v44  ;;  %v3637_v44 = vld [vmem:[%s12019_s24 + $0x136] sm:$0xff] }
 0x222   : > { %10771 = vmatprep.mubr.msk.f32.mxu0 %vm309_vm1, %v3185_v45  ;;  %v3638_v45 = vld [vmem:[%s12019_s24 + $0x13e] sm:$0xff] }
 0x225   : > { %10772 = vmatmul.mubr.msk.f32.gmra.mrb[12].mxu0 %vm309_vm1, %v3186_v48  ;;  %v12901_v48 = vpop.permute.xlu0 %4040 }
 0x226   : > { %10774 = vmatprep.mubr.msk.f32.mxu0 %vm309_vm1, %v3187_v49  ;;  %v12903_v49 = vpop.permute.xlu1 %4050 }
 0x229   : > { %10775 = vmatmul.mubr.msk.f32.gmra.mrb[14].mxu0 %vm309_vm1, %v3188_v52  ;;  %v12905_v50 = vpop.permute.xlu0 %4055 }
 0x22a   : > { %10777 = vmatprep.mubr.msk.f32.mxu0 %vm309_vm1, %v3189_v53  ;;  %14754 = vst [vmem:[#allocation3_spill] sm:$0xff] %v12905_v50  ;;  %v12907_v51 = vpop.permute.xlu1 %4060 }
 0x22d   : > { %10778 = vmatmul.mubr.msk.f32.gmra.mrb[16].mxu0 %vm309_vm1, %v3190_v55  ;;  %v12909_v52 = vpop.permute.xlu0 %4065 }
 0x22e   : > { %10780 = vmatprep.mubr.msk.f32.mxu0 %vm309_vm1, %v3191_v56  ;;  %14755 = vst [vmem:[#allocation4_spill] sm:$0xff] %v12909_v52  ;;  %v12911_v53 = vpop.permute.xlu1 %4070 }
 0x22f   : > { %14756 = vst [vmem:[#allocation5_spill] sm:$0xff] %v12911_v53 }
 0x231   : > { %10781 = vmatmul.mubr.msk.f32.gmra.mrb[18].mxu0 %vm309_vm1, %v3192_v57  ;;  %v12913_v54 = vpop.permute.xlu0 %4075 }
 0x232   : > { %10783 = vmatprep.mubr.msk.f32.mxu0 %vm309_vm1, %v3193_v58  ;;  %14757 = vst [vmem:[#allocation6_spill] sm:$0xff] %v12913_v54  ;;  %v12915_v55 = vpop.permute.xlu1 %4080 }
 0x233   : > { %14758 = vst [vmem:[#allocation7_spill] sm:$0xff] %v12915_v55 }
 0x235   : > { %10784 = vmatmul.mubr.msk.f32.gmra.mrb[20].mxu0 %vm309_vm1, %v3194_v59  ;;  %v12917_v56 = vpop.permute.xlu0 %4085 }
 0x236   : > { %10786 = vmatprep.mubr.msk.f32.mxu0 %vm309_vm1, %v3195_v60  ;;  %14759 = vst [vmem:[#allocation8_spill] sm:$0xff] %v12917_v56  ;;  %v12919_v57 = vpop.permute.xlu1 %4090 }
 0x237   : > { %14760 = vst [vmem:[#allocation9_spill] sm:$0xff] %v12919_v57 }
 0x239   : > { %10787 = vmatmul.mubr.msk.f32.gmra.mrb[22].mxu0 %vm309_vm1, %v3196_v61  ;;  %v12927_v61 = vpop.permute.xlu0 %4095 }
 0x23a   : > { %10789 = vmatprep.mubr.msk.f32.mxu0 %vm309_vm1, %v3197_v62  ;;  %14761 = vst [vmem:[#allocation10_spill] sm:$0xff] %v12927_v61 }
 0x23d   : > { %10790 = vmatmul.mubr.msk.f32.gmra.mrb[24].mxu0 %vm309_vm1, %v3198_v63  ;;  %v12931_v63 = vpop.permute.xlu1 %4100 }
 0x23e   : > { %10792 = vmatprep.mubr.msk.f32.mxu0 %vm309_vm1, %v3199_v0  ;;  %14762 = vst [vmem:[#allocation11_spill] sm:$0xff] %v12931_v63 }
 0x241   : > { %10793 = vmatmul.mubr.msk.f32.gmra.mrb[26].mxu0 %vm309_vm1, %v3200_v1 }
 0x242   : > { %10795 = vmatprep.mubr.msk.f32.mxu0 %vm309_vm1, %v3201_v2 }
 0x245   : > { %10796 = vmatmul.mubr.msk.f32.gmra.mrb[28].mxu0 %vm309_vm1, %v3202_v3 }
 0x246   : > { %10798 = vmatprep.mubr.msk.f32.mxu0 %vm309_vm1, %v3203_v4 }
 0x249   : > { %10799 = vmatmul.mubr.msk.f32.gmra.mrb[30].mxu0 %vm309_vm1, %v3204_v5 }
 0x24a   : > { %10801 = vmatprep.mubr.msk.f32.mxu0 %vm309_vm1, %v3205_v6 }
 0x24d   : > { %10802 = vmatmul.mubr.msk.f32.gmra.mrb[32].mxu0 %vm309_vm1, %v3206_v7  ;;  %v12943_v7 = vpop.permute.xlu0 %4105 }
 0x24e   : > { %10804 = vmatprep.mubr.msk.f32.mxu0 %vm309_vm1, %v3207_v8  ;;  %14763 = vst [vmem:[#allocation12_spill] sm:$0xff] %v12943_v7 }
 0x251   : > { %10805 = vmatmul.mubr.msk.f32.gmra.mrb[34].mxu0 %vm309_vm1, %v3208_v9 }
 0x252   : > { %10809 = vmatprep.mubr.msk.f32.mxu0 %vm309_vm1, %v3603_v10  ;;  %v12948_v10 = vpop.permute.xlu1 %4110 }
 0x253   : > { %14764 = vst [vmem:[#allocation13_spill] sm:$0xff] %v12948_v10 }
 0x255   : > { %10810 = vmatmul.mubr.msk.f32.vlgmr.msra.gmra.mrb[0].mxu0 %vm309_vm1, %v3604_v11 }
 0x256   : > { %10812 = vmatprep.mubr.msk.f32.mxu0 %vm309_vm1, %v3605_v12 }
 0x259   : > { %10813 = vmatmul.mubr.msk.f32.gmra.mrb[2].mxu0 %vm309_vm1, %v3606_v13 }
 0x25a   : > { %10815 = vmatprep.mubr.msk.f32.mxu0 %vm309_vm1, %v3607_v14 }
 0x25d   : > { %10816 = vmatmul.mubr.msk.f32.gmra.mrb[4].mxu0 %vm309_vm1, %v3608_v15 }
 0x25e   : > { %10818 = vmatprep.mubr.msk.f32.mxu0 %vm309_vm1, %v3609_v16 }
 0x261   : > { %10819 = vmatmul.mubr.msk.f32.gmra.mrb[6].mxu0 %vm309_vm1, %v3610_v17 }
 0x262   : > { %10821 = vmatprep.mubr.msk.f32.mxu0 %vm309_vm1, %v3611_v18 }
 0x265   : > { %10822 = vmatmul.mubr.msk.f32.gmra.mrb[8].mxu0 %vm309_vm1, %v3612_v19 }
 0x266   : > { %10824 = vmatprep.mubr.msk.f32.mxu0 %vm309_vm1, %v3613_v20 }
 0x269   : > { %10825 = vmatmul.mubr.msk.f32.gmra.mrb[10].mxu0 %vm309_vm1, %v3614_v21  ;;  %v12962_v21 = vpop.permute.xlu0 %4115 }
 0x26a   : > { %10827 = vmatprep.mubr.msk.f32.mxu0 %vm309_vm1, %v3615_v22  ;;  %14765 = vst [vmem:[#allocation14_spill] sm:$0xff] %v12962_v21 }
 0x26d   : > { %10828 = vmatmul.mubr.msk.f32.gmra.mrb[12].mxu0 %vm309_vm1, %v3616_v23 }
 0x26e   : > { %10830 = vmatprep.mubr.msk.f32.mxu0 %vm309_vm1, %v3617_v24 }
 0x271   : > { %10831 = vmatmul.mubr.msk.f32.gmra.mrb[14].mxu0 %vm309_vm1, %v3618_v25  ;;  %v12969_v25 = vpop.permute.xlu1 %4120 }
 0x272   : > { %10833 = vmatprep.mubr.msk.f32.mxu0 %vm309_vm1, %v3619_v26  ;;  %14766 = vst [vmem:[#allocation15_spill] sm:$0xff] %v12969_v25 }
 0x275   : > { %10834 = vmatmul.mubr.msk.f32.gmra.mrb[16].mxu0 %vm309_vm1, %v3620_v27 }
 0x276   : > { %10836 = vmatprep.mubr.msk.f32.mxu0 %vm309_vm1, %v3621_v28 }
 0x279   : > { %10837 = vmatmul.mubr.msk.f32.gmra.mrb[18].mxu0 %vm309_vm1, %v3622_v29 }
 0x27a   : > { %10839 = vmatprep.mubr.msk.f32.mxu0 %vm309_vm1, %v3623_v30 }
 0x27d   : > { %10840 = vmatmul.mubr.msk.f32.gmra.mrb[20].mxu0 %vm309_vm1, %v3624_v31 }
 0x27e   : > { %10842 = vmatprep.mubr.msk.f32.mxu0 %vm309_vm1, %v3625_v32 }
 0x281   : > { %10843 = vmatmul.mubr.msk.f32.gmra.mrb[22].mxu0 %vm309_vm1, %v3626_v33 }
 0x282   : > { %10845 = vmatprep.mubr.msk.f32.mxu0 %vm309_vm1, %v3627_v34 }
 0x285   : > { %10846 = vmatmul.mubr.msk.f32.gmra.mrb[24].mxu0 %vm309_vm1, %v3628_v35  ;;  %v12981_v35 = vpop.permute.xlu0 %4125 }
 0x286   : > { %10848 = vmatprep.mubr.msk.f32.mxu0 %vm309_vm1, %v3629_v36  ;;  %14767 = vst [vmem:[#allocation16_spill] sm:$0xff] %v12981_v35 }
 0x289   : > { %10849 = vmatmul.mubr.msk.f32.gmra.mrb[26].mxu0 %vm309_vm1, %v3630_v37 }
 0x28a   : > { %10851 = vmatprep.mubr.msk.f32.mxu0 %vm309_vm1, %v3631_v38  ;;  %v12986_v38 = vpop.permute.xlu1 %4130 }
 0x28b   : > { %14768 = vst [vmem:[#allocation17_spill] sm:$0xff] %v12986_v38 }
 0x28d   : > { %10852 = vmatmul.mubr.msk.f32.gmra.mrb[28].mxu0 %vm309_vm1, %v3632_v39 }
 0x28e   : > { %10854 = vmatprep.mubr.msk.f32.mxu0 %vm309_vm1, %v3633_v40 }
 0x291   : > { %10855 = vmatmul.mubr.msk.f32.gmra.mrb[30].mxu0 %vm309_vm1, %v3634_v41 }
 0x292   : > { %10857 = vmatprep.mubr.msk.f32.mxu0 %vm309_vm1, %v3635_v42 }
 0x295   : > { %10858 = vmatmul.mubr.msk.f32.gmra.mrb[32].mxu0 %vm309_vm1, %v3636_v43 }
 0x296   : > { %10860 = vmatprep.mubr.msk.f32.mxu0 %vm309_vm1, %v3637_v44 }
 0x299   : > { %10861 = vmatmul.mubr.msk.f32.gmra.mrb[34].mxu0 %vm309_vm1, %v3638_v45 }
 0x328   : > { %v12921_v58 = vpop.f32.mrb[0].mxu0 }
 0x329   : > { %v4214_v59 = vmul.f32 %v12921_v58, %v12901_v48  ;;  %v12925_v60 = vpop.f32.mrb[1].mxu0 }
 0x32a   : > { %v4213_v62 = vmul.f32 %v12897_v46, %v12925_v60 }
 0x32b   : > { %v4250_v0 = vsel %vm309_vm1, %v4214_v59, 0.0 }
 0x32c   : > { %v4249_v1 = vsel %vm309_vm1, %v4213_v62, 0.0  ;;  %v12935_v2 = vpop.f32.mrb[2].mxu0 }
 0x32d   : > { %v4251_v3 = vadd.f32 %v4250_v0, %v4249_v1  ;;  %v12937_v4 = vpop.f32.mrb[3].mxu0  ;;  %v4216_v5 = vmul.f32 %v12935_v2, %v12903_v49  ;;  %v13000_v1 = vpop.permute.xlu0 %4135 }
 0x32e   : > { %v4215_v6 = vmul.f32 %v12899_v47, %v12937_v4  ;;  %14769 = vst [vmem:[#allocation18_spill] sm:$0xff] %v13000_v1 }
 0x32f   : > { %v4254_v13 = vsel %vm309_vm1, %v4216_v5, 0.0 }
 0x330   : > { %v4252_v8 = vsel %vm309_vm1, %v4215_v6, 0.0  ;;  %v12946_v9 = vpop.f32.mrb[4].mxu0 }
 0x331   : > { %v4253_v11 = vadd.f32 %v4252_v8, %v4251_v3  ;;  %v12950_v12 = vpop.f32.mrb[5].mxu0  ;;  %v4218_v14 = vmul.f32 %v12946_v9, %v12907_v51  ;;  %v13007_v8 = vpop.permute.xlu1 %4140 }
 0x332   : > { %v4217_v15 = vmul.f32 %v12905_v50, %v12950_v12  ;;  %14770 = vst [vmem:[#allocation19_spill] sm:$0xff] %v13007_v8 }
 0x333   : > { %v4255_v16 = vadd.f32 %v4254_v13, %v4253_v11  ;;  %v4258_v22 = vsel %vm309_vm1, %v4218_v14, 0.0 }
 0x334   : > { %v4256_v17 = vsel %vm309_vm1, %v4217_v15, 0.0  ;;  %v12958_v18 = vpop.f32.mrb[6].mxu0 }
 0x335   : > { %v4257_v19 = vadd.f32 %v4256_v17, %v4255_v16  ;;  %v12960_v20 = vpop.f32.mrb[7].mxu0  ;;  %v4220_v23 = vmul.f32 %v12958_v18, %v12911_v53 }
 0x336   : > { %v4219_v24 = vmul.f32 %v12909_v52, %v12960_v20 }
 0x337   : > { %v4259_v26 = vadd.f32 %v4258_v22, %v4257_v19  ;;  %v4262_v31 = vsel %vm309_vm1, %v4220_v23, 0.0 }
 0x338   : > { %v4260_v27 = vsel %vm309_vm1, %v4219_v24, 0.0  ;;  %v12972_v28 = vpop.f32.mrb[8].mxu0  ;;  %v13019_v24 = vpop.permute.xlu0 %4145 }
 0x339   : > { %v4261_v29 = vadd.f32 %v4260_v27, %v4259_v26  ;;  %v12974_v30 = vpop.f32.mrb[9].mxu0  ;;  %v4222_v32 = vmul.f32 %v12972_v28, %v12915_v55  ;;  %14771 = vst [vmem:[#allocation20_spill] sm:$0xff] %v13019_v24 }
 0x33a   : > { %v4221_v33 = vmul.f32 %v12913_v54, %v12974_v30 }
 0x33b   : > { %v4263_v34 = vadd.f32 %v4262_v31, %v4261_v29  ;;  %v4266_v41 = vsel %vm309_vm1, %v4222_v32, 0.0  ;;  %v13024_v29 = vpop.permute.xlu1 %4150 }
 0x33c   : > { %v4264_v36 = vsel %vm309_vm1, %v4221_v33, 0.0  ;;  %v12984_v37 = vpop.f32.mrb[10].mxu0  ;;  %14772 = vst [vmem:[#allocation21_spill] sm:$0xff] %v13024_v29 }
 0x33d   : > { %v4265_v39 = vadd.f32 %v4264_v36, %v4263_v34  ;;  %v12988_v40 = vpop.f32.mrb[11].mxu0  ;;  %v4224_v42 = vmul.f32 %v12984_v37, %v12919_v57 }
 0x33e   : > { %v4223_v43 = vmul.f32 %v12917_v56, %v12988_v40 }
 0x33f   : > { %v4267_v44 = vadd.f32 %v4266_v41, %v4265_v39  ;;  %v4270_v3 = vsel %vm309_vm1, %v4224_v42, 0.0 }
 0x340   : > { %v4268_v45 = vsel %vm309_vm1, %v4223_v43, 0.0  ;;  %v12996_v59 = vpop.f32.mrb[12].mxu0 }
 0x341   : > { %v4269_v62 = vadd.f32 %v4268_v45, %v4267_v44  ;;  %v12998_v0 = vpop.f32.mrb[13].mxu0  ;;  %v4226_v5 = vmul.f32 %v12996_v59, %v12931_v63  ;;  %v13038_v45 = vpop.permute.xlu0 %4155 }
 0x342   : > { %v4225_v6 = vmul.f32 %v12927_v61, %v12998_v0  ;;  %14773 = vst [vmem:[#allocation22_spill] sm:$0xff] %v13038_v45 }
 0x343   : > { %v4271_v11 = vadd.f32 %v4270_v3, %v4269_v62  ;;  %v4274_v17 = vsel %vm309_vm1, %v4226_v5, 0.0 }
 0x344   : > { %v4272_v13 = vsel %vm309_vm1, %v4225_v6, 0.0  ;;  %v13010_v14 = vpop.f32.mrb[14].mxu0  ;;  %v13045_v6 = vpop.permute.xlu1 %4160 }
 0x345   : > { %v4273_v15 = vadd.f32 %v4272_v13, %v4271_v11  ;;  %v13012_v16 = vpop.f32.mrb[15].mxu0  ;;  %v4228_v19 = vmul.f32 %v13010_v14, %v12948_v10  ;;  %14774 = vst [vmem:[#allocation23_spill] sm:$0xff] %v13045_v6 }
 0x346   : > { %v4227_v22 = vmul.f32 %v12943_v7, %v13012_v16 }
 0x347   : > { %v4275_v23 = vadd.f32 %v4274_v17, %v4273_v15  ;;  %v4278_v33 = vsel %vm309_vm1, %v4228_v19, 0.0 }
 0x348   : > { %v4276_v26 = vsel %vm309_vm1, %v4227_v22, 0.0  ;;  %v13022_v27 = vpop.f32.mrb[16].mxu0 }
 0x349   : > { %v4277_v31 = vadd.f32 %v4276_v26, %v4275_v23  ;;  %v13026_v32 = vpop.f32.mrb[17].mxu0  ;;  %v4230_v34 = vmul.f32 %v13022_v27, %v12969_v25 }
 0x34a   : > { %v4229_v36 = vmul.f32 %v12962_v21, %v13026_v32 }
 0x34b   : > { %v4279_v39 = vadd.f32 %v4278_v33, %v4277_v31  ;;  %v4282_v62 = vsel %vm309_vm1, %v4230_v34, 0.0  ;;  %v13057_v33 = vpop.permute.xlu0 %4165 }
 0x34c   : > { %v4280_v41 = vsel %vm309_vm1, %v4229_v36, 0.0  ;;  %v13034_v42 = vpop.f32.mrb[18].mxu0  ;;  %14775 = vst [vmem:[#allocation24_spill] sm:$0xff] %v13057_v33 }
 0x34d   : > { %v4281_v43 = vadd.f32 %v4280_v41, %v4279_v39  ;;  %v13036_v44 = vpop.f32.mrb[19].mxu0  ;;  %v4232_v3 = vmul.f32 %v13034_v42, %v12986_v38  ;;  %v13062_v39 = vpop.permute.xlu1 %4170 }
 0x34e   : > { %v4231_v5 = vmul.f32 %v12981_v35, %v13036_v44  ;;  %14776 = vst [vmem:[#allocation25_spill] sm:$0xff] %v13062_v39 }
 0x34f   : > { %v4283_v11 = vadd.f32 %v4282_v62, %v4281_v43  ;;  %v4286_v22 = vsel %vm309_vm1, %v4232_v3, 0.0 }
 0x350   : > { %v4284_v13 = vsel %vm309_vm1, %v4231_v5, 0.0  ;;  %v13048_v15 = vpop.f32.mrb[20].mxu0 }
 0x351   : > { %v4285_v17 = vadd.f32 %v4284_v13, %v4283_v11  ;;  %v13050_v19 = vpop.f32.mrb[21].mxu0  ;;  %v4234_v23 = vmul.f32 %v13048_v15, %v13007_v8  ;;  %v13076_v8 = vpop.permute.xlu0 %4175 }
 0x352   : > { %v4233_v26 = vmul.f32 %v13000_v1, %v13050_v19  ;;  %14777 = vst [vmem:[#allocation26_spill] sm:$0xff] %v13076_v8 }
 0x353   : > { %v4287_v31 = vadd.f32 %v4286_v22, %v4285_v17  ;;  %v4290_v62 = vsel %vm309_vm1, %v4234_v23, 0.0 }
 0x354   : > { %v4288_v34 = vsel %vm309_vm1, %v4233_v26, 0.0  ;;  %v13060_v36 = vpop.f32.mrb[22].mxu0 }
 0x355   : > { %v4289_v41 = vadd.f32 %v4288_v34, %v4287_v31  ;;  %v13064_v43 = vpop.f32.mrb[23].mxu0  ;;  %v4236_v3 = vmul.f32 %v13060_v36, %v13024_v29  ;;  %v13083_v29 = vpop.permute.xlu1 %4180 }
 0x356   : > { %v4235_v5 = vmul.f32 %v13019_v24, %v13064_v43  ;;  %14778 = vst [vmem:[#allocation27_spill] sm:$0xff] %v13083_v29 }
 0x357   : > { %v4291_v11 = vadd.f32 %v4290_v62, %v4289_v41  ;;  %v4294_v31 = vsel %vm309_vm1, %v4236_v3, 0.0 }
 0x358   : > { %v4292_v13 = vsel %vm309_vm1, %v4235_v5, 0.0  ;;  %v13072_v17 = vpop.f32.mrb[24].mxu0 }
 0x359   : > { %v4293_v22 = vadd.f32 %v4292_v13, %v4291_v11  ;;  %v13074_v26 = vpop.f32.mrb[25].mxu0  ;;  %v4238_v23 = vmul.f32 %v13072_v17, %v13045_v6 }
 0x35a   : > { %v4237_v34 = vmul.f32 %v13038_v45, %v13074_v26  ;;  %v13095_v45 = vpop.permute.xlu0 %4185 }
 0x35b   : > { %v4295_v41 = vadd.f32 %v4294_v31, %v4293_v22  ;;  %v4298_v24 = vsel %vm309_vm1, %v4238_v23, 0.0  ;;  %14779 = vst [vmem:[#allocation28_spill] sm:$0xff] %v13095_v45 }
 0x35c   : > { %v4296_v62 = vsel %vm309_vm1, %v4237_v34, 0.0  ;;  %v13086_v5 = vpop.f32.mrb[26].mxu0  ;;  %v13100_v34 = vpop.permute.xlu1 %4190 }
 0x35d   : > { %v4297_v11 = vadd.f32 %v4296_v62, %v4295_v41  ;;  %v13088_v13 = vpop.f32.mrb[27].mxu0  ;;  %v4240_v3 = vmul.f32 %v13086_v5, %v13062_v39  ;;  %14780 = vst [vmem:[#allocation29_spill] sm:$0xff] %v13100_v34 }
 0x35e   : > { %v4239_v6 = vmul.f32 %v13057_v33, %v13088_v13  ;;  %v13114_v25 = vpop.permute.xlu0 %4195 }
 0x35f   : > { %v4299_v1 = vadd.f32 %v4298_v24, %v4297_v11  ;;  %v4302_v23 = vsel %vm309_vm1, %v4240_v3, 0.0  ;;  %14781 = vst [vmem:[#allocation30_spill] sm:$0xff] %v13114_v25 }
 0x360   : > { %v4300_v22 = vsel %vm309_vm1, %v4239_v6, 0.0  ;;  %v13098_v31 = vpop.f32.mrb[28].mxu0 }
 0x361   : > { %v4301_v41 = vadd.f32 %v4300_v22, %v4299_v1  ;;  %v13102_v62 = vpop.f32.mrb[29].mxu0  ;;  %v4242_v39 = vmul.f32 %v13098_v31, %v13083_v29  ;;  %v13121_v29 = vpop.permute.xlu1 %4200 }
 0x362   : > { %v4241_v33 = vmul.f32 %v13076_v8, %v13102_v62  ;;  %14782 = vst [vmem:[#allocation31_spill] sm:$0xff] %v13121_v29  ;;  %v13127_v7 = vpop.permute.xlu0 %4205 }
 0x363   : > { %v4303_v24 = vadd.f32 %v4302_v23, %v4301_v41  ;;  %v4306_v1 = vsel %vm309_vm1, %v4242_v39, 0.0 }
 0x364   : > { %v4304_v11 = vsel %vm309_vm1, %v4241_v33, 0.0  ;;  %v13110_v38 = vpop.f32.mrb[30].mxu0 }
 0x365   : > { %v4305_v6 = vadd.f32 %v4304_v11, %v4303_v24  ;;  %v13112_v35 = vpop.f32.mrb[31].mxu0  ;;  %v4244_v3 = vmul.f32 %v13110_v38, %v13100_v34  ;;  %v13130_v63 = vpop.permute.xlu1 %4210 }
 0x366   : > { %v4243_v22 = vmul.f32 %v13095_v45, %v13112_v35  ;;  %14783 = vst [vmem:[#allocation32_spill] sm:$0xff] %v13130_v63 }
 0x367   : > { %v4307_v41 = vadd.f32 %v4306_v1, %v4305_v6  ;;  %v4310_v11 = vsel %vm309_vm1, %v4244_v3, 0.0 }
 0x368   : > { %v4308_v33 = vsel %vm309_vm1, %v4243_v22, 0.0  ;;  %v10859_v23 = vpop.f32.mrb[32].mxu0 }
 0x369   : > { %v4309_v8 = vadd.f32 %v4308_v33, %v4307_v41  ;;  %v3978_v24 = vpop.f32.mrb[33].mxu0  ;;  %v4246_v21 = vmul.f32 %v10859_v23, %v13121_v29 }
 0x36a   : > { %v4245_v39 = vmul.f32 %v13114_v25, %v3978_v24 }
 0x36b   : > { %v4311_v10 = vadd.f32 %v4310_v11, %v4309_v8  ;;  %v4314_v22 = vsel %vm309_vm1, %v4246_v21, 0.0 }
 0x36c   : > { %v4312_v34 = vsel %vm309_vm1, %v4245_v39, 0.0  ;;  %v10862_v45 = vpop.f32.mrb[34].mxu0 }
 0x36d   : > { %v4313_v6 = vadd.f32 %v4312_v34, %v4311_v10  ;;  %v3988_v1 = vpop.f32.mrb[35].mxu0  ;;  %v4248_v41 = vmul.f32 %v10862_v45, %v13130_v63 }
 0x36e   : > { %v4247_v3 = vmul.f32 %v13127_v7, %v3988_v1 }
 0x36f   : > { %v4315_v33 = vadd.f32 %v4314_v22, %v4313_v6  ;;  %v4318_v8 = vsel %vm309_vm1, %v4248_v41, 0.0 }
 0x370   : > { %v4316_v29 = vsel %vm309_vm1, %v4247_v3, 0.0 }
 0x371   : > { %v4317_v25 = vadd.f32 %v4316_v29, %v4315_v33 }
 0x373   : > { %v4319_v11 = vadd.f32 %v4318_v8, %v4317_v25 }
 0x375   : > { %v4320_v61 = vrot.slane %v4319_v11, 4 }
 0x377   : > { %v4321_v39 = vadd.f32 %v4320_v61, %v4319_v11 }
 0x379   : > { %v4322_v57 = vrot.slane %v4321_v39, 2 }
 0x37b   : > { %v4323_v56 = vadd.f32 %v4322_v57, %v4321_v39 }
 0x37d   : > { %v4324_v55 = vrot.slane %v4323_v56, 1 }
 0x37f   : > { %v4325_v10 = vadd.f32 %v4324_v55, %v4323_v56 }
 0x381   : > { %v4326_v34 = vmul.f32 0.00390625, %v4325_v10 }
 0x383   : > { %v13138_v21 = vsub.f32 %v12925_v60, %v4326_v34  ;;  %v13141_v63 = vsub.f32 %v12921_v58, %v4326_v34  ;;  %v13144_v6 = vsub.f32 %v12937_v4, %v4326_v34  ;;  %v13147_v29 = vsub.f32 %v12935_v2, %v4326_v34 }
 0x384   : > { %v13150_v25 = vsub.f32 %v12950_v12, %v4326_v34  ;;  %v13153_v57 = vsub.f32 %v12946_v9, %v4326_v34  ;;  %v13156_v55 = vsub.f32 %v12960_v20, %v4326_v34  ;;  %v13159_v56 = vsub.f32 %v12958_v18, %v4326_v34 }
 0x385   : > { %v13162_v58 = vsub.f32 %v12974_v30, %v4326_v34  ;;  %v13165_v60 = vsub.f32 %v12972_v28, %v4326_v34  ;;  %v13168_v61 = vsub.f32 %v12988_v40, %v4326_v34  ;;  %v13171_v2 = vsub.f32 %v12984_v37, %v4326_v34 }
 0x386   : > { %v13174_v4 = vsub.f32 %v12998_v0, %v4326_v34  ;;  %v13177_v9 = vsub.f32 %v12996_v59, %v4326_v34  ;;  %v13180_v12 = vsub.f32 %v13012_v16, %v4326_v34  ;;  %v13183_v18 = vsub.f32 %v13010_v14, %v4326_v34 }
 0x387   : > { %v13186_v20 = vsub.f32 %v13026_v32, %v4326_v34  ;;  %v13189_v28 = vsub.f32 %v13022_v27, %v4326_v34  ;;  %v13192_v30 = vsub.f32 %v13036_v44, %v4326_v34  ;;  %v13195_v37 = vsub.f32 %v13034_v42, %v4326_v34 }
 0x388   : > { %v13198_v40 = vsub.f32 %v13050_v19, %v4326_v34  ;;  %v13201_v59 = vsub.f32 %v13048_v15, %v4326_v34  ;;  %v13204_v0 = vsub.f32 %v13064_v43, %v4326_v34  ;;  %v13207_v14 = vsub.f32 %v13060_v36, %v4326_v34 }
 0x389   : > { %v13210_v16 = vsub.f32 %v13074_v26, %v4326_v34  ;;  %v13213_v27 = vsub.f32 %v13072_v17, %v4326_v34  ;;  %v13216_v32 = vsub.f32 %v13088_v13, %v4326_v34  ;;  %v13219_v42 = vsub.f32 %v13086_v5, %v4326_v34  ;;  %v9350_v13 = vld [vmem:[%s14690_s2 + $0x4] sm:$0xf] }
 0x38a   : > { %v13222_v44 = vsub.f32 %v13102_v62, %v4326_v34  ;;  %v13225_v15 = vsub.f32 %v13098_v31, %v4326_v34  ;;  %v13228_v19 = vsub.f32 %v13112_v35, %v4326_v34  ;;  %v13231_v36 = vsub.f32 %v13110_v38, %v4326_v34  ;;  %10863 = vmatprep.subr.msk.mxu1 %vm418_vm0, %v9350_v13 }
 0x38b   : > { %v13233_v43 = vsub.f32 %v3978_v24, %v4326_v34  ;;  %v13235_v17 = vsub.f32 %v10859_v23, %v4326_v34  ;;  %v13237_v26 = vsub.f32 %v3988_v1, %v4326_v34  ;;  %v13239_v5 = vsub.f32 %v10862_v45, %v4326_v34  ;;  %10864 = vmatpush3.msk.msra.mxu1 %vm418_vm0, %v9350_v13 }
 0x38c   : > { %v4363_v35 = vmul.f32 %v13138_v21, %v13138_v21  ;;  %v4364_v38 = vmul.f32 %v13141_v63, %v13141_v63  ;;  %v4365_v31 = vmul.f32 %v13144_v6, %v13144_v6  ;;  %v4366_v45 = vmul.f32 %v13147_v29, %v13147_v29 }
 0x38d   : > { %v4367_v24 = vmul.f32 %v13150_v25, %v13150_v25  ;;  %v4368_v22 = vmul.f32 %v13153_v57, %v13153_v57  ;;  %v4369_v11 = vmul.f32 %v13156_v55, %v13156_v55  ;;  %v4370_v13 = vmul.f32 %v13159_v56, %v13159_v56 }
 0x38e   : > { %v4399_v62 = vmul.f32 %v4363_v35, %v12897_v46  ;;  %v4400_v23 = vmul.f32 %v4364_v38, %v12901_v48  ;;  %v4401_v1 = vmul.f32 %v4365_v31, %v12899_v47  ;;  %v4402_v41 = vmul.f32 %v4366_v45, %v12903_v49  ;;  %v13275_v45 = vld [vmem:[%s14690_s2] sm:$0xf] }
 0x38f   : > { %v4403_v39 = vmul.f32 %v4367_v24, %v12905_v50  ;;  %v4404_v35 = vmul.f32 %v4368_v22, %v12907_v51  ;;  %10919 = vmatprep.subr.msk.mxu1 %vm418_vm0, %v13275_v45  ;;  %v4372_v22 = vmul.f32 %v13165_v60, %v13165_v60 }
 0x390   : > { %v4435_v3 = vsel %vm309_vm1, %v4399_v62, 0.0  ;;  %v4436_v33 = vsel %vm309_vm1, %v4400_v23, 0.0  ;;  %v4438_v10 = vsel %vm309_vm1, %v4401_v1, 0.0  ;;  %v4440_v38 = vsel %vm309_vm1, %v4402_v41, 0.0 }
 0x391   : > { %v4437_v8 = vadd.f32 %v4436_v33, %v4435_v3  ;;  %v4371_v62 = vmul.f32 %v13162_v58, %v13162_v58  ;;  %v4405_v23 = vmul.f32 %v4369_v11, %v12909_v52  ;;  %v4442_v24 = vsel %vm309_vm1, %v4403_v39, 0.0 }
 0x392   : > { %v4406_v41 = vmul.f32 %v4370_v13, %v12911_v53  ;;  %v4444_v3 = vsel %vm309_vm1, %v4404_v35, 0.0  ;;  %v4375_v13 = vmul.f32 %v13174_v4, %v13174_v4  ;;  %v14785_v35 = vld [vmem:[#allocation8_spill] sm:$0xff] }
 0x393   : > { %v4439_v34 = vadd.f32 %v4438_v10, %v4437_v8  ;;  %v4373_v8 = vmul.f32 %v13168_v61, %v13168_v61  ;;  %v4407_v10 = vmul.f32 %v4371_v62, %v12913_v54  ;;  %v4446_v11 = vsel %vm309_vm1, %v4405_v23, 0.0  ;;  %v14786_v23 = vld [vmem:[#allocation9_spill] sm:$0xff] }
 0x394   : > { %v4376_v62 = vmul.f32 %v13177_v9, %v13177_v9 }
 0x395   : > { %v4441_v31 = vadd.f32 %v4440_v38, %v4439_v34  ;;  %v4374_v34 = vmul.f32 %v13171_v2, %v13171_v2  ;;  %v14784_v38 = vld [vmem:[#allocation7_spill] sm:$0xff] }
 0x397   : > { %v4443_v1 = vadd.f32 %v4442_v24, %v4441_v31  ;;  %v4408_v31 = vmul.f32 %v4372_v22, %v14784_v38  ;;  %v4448_v24 = vsel %vm309_vm1, %v4406_v41, 0.0  ;;  %v4377_v22 = vmul.f32 %v13180_v12, %v13180_v12  ;;  %v14787_v41 = vld [vmem:[#allocation10_spill] sm:$0xff] }
 0x399   : > { %v4445_v33 = vadd.f32 %v4444_v3, %v4443_v1  ;;  %v4409_v1 = vmul.f32 %v4373_v8, %v14785_v35  ;;  %v4450_v3 = vsel %vm309_vm1, %v4407_v10, 0.0  ;;  %v4378_v8 = vmul.f32 %v13183_v18, %v13183_v18 }
 0x39b   : > { %v4447_v39 = vadd.f32 %v4446_v11, %v4445_v33  ;;  %v4410_v33 = vmul.f32 %v4374_v34, %v14786_v23  ;;  %v4452_v11 = vsel %vm309_vm1, %v4408_v31, 0.0  ;;  %v4379_v34 = vmul.f32 %v13186_v20, %v13186_v20 }
 0x39d   : > { %v4449_v52 = vadd.f32 %v4448_v24, %v4447_v39  ;;  %v4411_v39 = vmul.f32 %v4375_v13, %v14787_v41  ;;  %v4454_v24 = vsel %vm309_vm1, %v4409_v1, 0.0  ;;  %v4380_v13 = vmul.f32 %v13189_v28, %v13189_v28 }
 0x39f   : > { %v4451_v53 = vadd.f32 %v4450_v3, %v4449_v52  ;;  %v14788_v52 = vld [vmem:[#allocation11_spill] sm:$0xff]  ;;  %v4456_v3 = vsel %vm309_vm1, %v4410_v33, 0.0 }
 0x3a0   : > { %v4412_v10 = vmul.f32 %v4376_v62, %v14788_v52  ;;  %v4381_v62 = vmul.f32 %v13192_v30, %v13192_v30 }
 0x3a1   : > { %v4453_v54 = vadd.f32 %v4452_v11, %v4451_v53  ;;  %v14789_v53 = vld [vmem:[#allocation12_spill] sm:$0xff]  ;;  %v4458_v11 = vsel %vm309_vm1, %v4411_v39, 0.0 }
 0x3a2   : > { %v4413_v31 = vmul.f32 %v4377_v22, %v14789_v53  ;;  %v4382_v22 = vmul.f32 %v13195_v37, %v13195_v37 }
 0x3a3   : > { %v4455_v38 = vadd.f32 %v4454_v24, %v4453_v54  ;;  %v14790_v54 = vld [vmem:[#allocation13_spill] sm:$0xff]  ;;  %v4460_v24 = vsel %vm309_vm1, %v4412_v10, 0.0 }
 0x3a4   : > { %v4414_v1 = vmul.f32 %v4378_v8, %v14790_v54  ;;  %v4383_v8 = vmul.f32 %v13198_v40, %v13198_v40 }
 0x3a5   : > { %v4457_v35 = vadd.f32 %v4456_v3, %v4455_v38  ;;  %v14791_v38 = vld [vmem:[#allocation14_spill] sm:$0xff]  ;;  %v4462_v3 = vsel %vm309_vm1, %v4413_v31, 0.0 }
 0x3a6   : > { %v4415_v33 = vmul.f32 %v4379_v34, %v14791_v38  ;;  %v4384_v34 = vmul.f32 %v13201_v59, %v13201_v59 }
 0x3a7   : > { %v4459_v23 = vadd.f32 %v4458_v11, %v4457_v35  ;;  %v14792_v35 = vld [vmem:[#allocation15_spill] sm:$0xff]  ;;  %v4464_v11 = vsel %vm309_vm1, %v4414_v1, 0.0 }
 0x3a8   : > { %v4416_v39 = vmul.f32 %v4380_v13, %v14792_v35  ;;  %v4385_v13 = vmul.f32 %v13204_v0, %v13204_v0 }
 0x3a9   : > { %v4461_v41 = vadd.f32 %v4460_v24, %v4459_v23  ;;  %v14793_v23 = vld [vmem:[#allocation16_spill] sm:$0xff]  ;;  %v4466_v24 = vsel %vm309_vm1, %v4415_v33, 0.0 }
 0x3aa   : > { %v4417_v10 = vmul.f32 %v4381_v62, %v14793_v23  ;;  %v4386_v62 = vmul.f32 %v13207_v14, %v13207_v14 }
 0x3ab   : > { %v4463_v52 = vadd.f32 %v4462_v3, %v4461_v41  ;;  %v14794_v41 = vld [vmem:[#allocation17_spill] sm:$0xff]  ;;  %v4468_v3 = vsel %vm309_vm1, %v4416_v39, 0.0 }
 0x3ac   : > { %v4418_v31 = vmul.f32 %v4382_v22, %v14794_v41  ;;  %v4387_v22 = vmul.f32 %v13210_v16, %v13210_v16 }
 0x3ad   : > { %v4465_v53 = vadd.f32 %v4464_v11, %v4463_v52  ;;  %v14795_v52 = vld [vmem:[#allocation18_spill] sm:$0xff]  ;;  %v4470_v11 = vsel %vm309_vm1, %v4417_v10, 0.0 }
 0x3ae   : > { %v4419_v1 = vmul.f32 %v4383_v8, %v14795_v52  ;;  %v4388_v8 = vmul.f32 %v13213_v27, %v13213_v27 }
 0x3af   : > { %v4467_v54 = vadd.f32 %v4466_v24, %v4465_v53  ;;  %v14796_v53 = vld [vmem:[#allocation19_spill] sm:$0xff]  ;;  %v4472_v24 = vsel %vm309_vm1, %v4418_v31, 0.0 }
 0x3b0   : > { %v4420_v33 = vmul.f32 %v4384_v34, %v14796_v53  ;;  %v4389_v34 = vmul.f32 %v13216_v32, %v13216_v32 }
 0x3b1   : > { %v4469_v38 = vadd.f32 %v4468_v3, %v4467_v54  ;;  %v14797_v54 = vld [vmem:[#allocation20_spill] sm:$0xff]  ;;  %v4474_v3 = vsel %vm309_vm1, %v4419_v1, 0.0 }
 0x3b2   : > { %v4421_v39 = vmul.f32 %v4385_v13, %v14797_v54  ;;  %v4390_v13 = vmul.f32 %v13219_v42, %v13219_v42 }
 0x3b3   : > { %v4471_v35 = vadd.f32 %v4470_v11, %v4469_v38  ;;  %v14798_v38 = vld [vmem:[#allocation21_spill] sm:$0xff]  ;;  %v4476_v11 = vsel %vm309_vm1, %v4420_v33, 0.0 }
 0x3b4   : > { %v4422_v10 = vmul.f32 %v4386_v62, %v14798_v38  ;;  %v4391_v62 = vmul.f32 %v13222_v44, %v13222_v44 }
 0x3b5   : > { %v4473_v23 = vadd.f32 %v4472_v24, %v4471_v35  ;;  %v14799_v35 = vld [vmem:[#allocation22_spill] sm:$0xff]  ;;  %v4478_v24 = vsel %vm309_vm1, %v4421_v39, 0.0 }
 0x3b6   : > { %v4423_v31 = vmul.f32 %v4387_v22, %v14799_v35  ;;  %v4392_v22 = vmul.f32 %v13225_v15, %v13225_v15 }
 0x3b7   : > { %v4475_v41 = vadd.f32 %v4474_v3, %v4473_v23  ;;  %v14800_v23 = vld [vmem:[#allocation23_spill] sm:$0xff]  ;;  %v4480_v3 = vsel %vm309_vm1, %v4422_v10, 0.0 }
 0x3b8   : > { %v4424_v1 = vmul.f32 %v4388_v8, %v14800_v23  ;;  %v4393_v8 = vmul.f32 %v13228_v19, %v13228_v19 }
 0x3b9   : > { %v4477_v52 = vadd.f32 %v4476_v11, %v4475_v41  ;;  %v14801_v41 = vld [vmem:[#allocation24_spill] sm:$0xff]  ;;  %v4482_v11 = vsel %vm309_vm1, %v4423_v31, 0.0 }
 0x3ba   : > { %v4425_v33 = vmul.f32 %v4389_v34, %v14801_v41  ;;  %v4394_v34 = vmul.f32 %v13231_v36, %v13231_v36 }
 0x3bb   : > { %v4479_v53 = vadd.f32 %v4478_v24, %v4477_v52  ;;  %v14802_v52 = vld [vmem:[#allocation25_spill] sm:$0xff]  ;;  %v4484_v24 = vsel %vm309_vm1, %v4424_v1, 0.0 }
 0x3bc   : > { %v4426_v39 = vmul.f32 %v4390_v13, %v14802_v52  ;;  %v4395_v13 = vmul.f32 %v13233_v43, %v13233_v43 }
 0x3bd   : > { %v4481_v54 = vadd.f32 %v4480_v3, %v4479_v53  ;;  %v14803_v53 = vld [vmem:[#allocation26_spill] sm:$0xff]  ;;  %v4486_v3 = vsel %vm309_vm1, %v4425_v33, 0.0 }
 0x3be   : > { %v4427_v10 = vmul.f32 %v4391_v62, %v14803_v53  ;;  %v4396_v62 = vmul.f32 %v13235_v17, %v13235_v17 }
 0x3bf   : > { %v4483_v38 = vadd.f32 %v4482_v11, %v4481_v54  ;;  %v14804_v54 = vld [vmem:[#allocation27_spill] sm:$0xff]  ;;  %v4488_v11 = vsel %vm309_vm1, %v4426_v39, 0.0 }
 0x3c0   : > { %v4428_v31 = vmul.f32 %v4392_v22, %v14804_v54  ;;  %v4397_v22 = vmul.f32 %v13237_v26, %v13237_v26 }
 0x3c1   : > { %v4485_v35 = vadd.f32 %v4484_v24, %v4483_v38  ;;  %v14805_v38 = vld [vmem:[#allocation28_spill] sm:$0xff]  ;;  %v4490_v24 = vsel %vm309_vm1, %v4427_v10, 0.0 }
 0x3c2   : > { %v4429_v1 = vmul.f32 %v4393_v8, %v14805_v38  ;;  %v4398_v8 = vmul.f32 %v13239_v5, %v13239_v5 }
 0x3c3   : > { %v4487_v23 = vadd.f32 %v4486_v3, %v4485_v35  ;;  %v14806_v35 = vld [vmem:[#allocation29_spill] sm:$0xff]  ;;  %v4492_v3 = vsel %vm309_vm1, %v4428_v31, 0.0 }
 0x3c4   : > { %v4430_v33 = vmul.f32 %v4394_v34, %v14806_v35  ;;  %v4433_v34 = vmul.f32 %v4397_v22, %v13127_v7 }
 0x3c5   : > { %v4489_v41 = vadd.f32 %v4488_v11, %v4487_v23  ;;  %v14807_v23 = vld [vmem:[#allocation30_spill] sm:$0xff]  ;;  %v4494_v11 = vsel %vm309_vm1, %v4429_v1, 0.0 }
 0x3c6   : > { %v4431_v39 = vmul.f32 %v4395_v13, %v14807_v23 }
 0x3c7   : > { %v4491_v52 = vadd.f32 %v4490_v24, %v4489_v41  ;;  %v14808_v41 = vld [vmem:[#allocation31_spill] sm:$0xff]  ;;  %v4496_v24 = vsel %vm309_vm1, %v4430_v33, 0.0 }
 0x3c8   : > { %v4432_v10 = vmul.f32 %v4396_v62, %v14808_v41 }
 0x3c9   : > { %v4493_v53 = vadd.f32 %v4492_v3, %v4491_v52  ;;  %v4498_v52 = vsel %vm309_vm1, %v4431_v39, 0.0  ;;  %v14809_v3 = vld [vmem:[#allocation32_spill] sm:$0xff]  ;;  %v11970_v39 = vmov 0.0  }
 0x3ca   : > { %v4434_v35 = vmul.f32 %v4398_v8, %v14809_v3  ;;  %v4500_v13 = vsel %vm309_vm1, %v4432_v10, 0.0  ;;  %4587 = vst.msk [vmem:[#allocation2 + $0x144] sm:$0xff] %vm309_vm1, %v11970_v39 }
 0x3cb   : > { %v4495_v54 = vadd.f32 %v4494_v11, %v4493_v53  ;;  %v4502_v53 = vsel %vm309_vm1, %v4433_v34, 0.0 }
 0x3cc   : > { %v4504_v11 = vsel %vm309_vm1, %v4434_v35, 0.0 }
 0x3cd   : > { %v4497_v38 = vadd.f32 %v4496_v24, %v4495_v54 }
 0x3cf   : > { %v4499_v31 = vadd.f32 %v4498_v52, %v4497_v38 }
 0x3d1   : > { %v4501_v23 = vadd.f32 %v4500_v13, %v4499_v31 }
 0x3d3   : > { %v4503_v1 = vadd.f32 %v4502_v53, %v4501_v23 }
 0x3d5   : > { %v4505_v50 = vadd.f32 %v4504_v11, %v4503_v1 }
 0x3d7   : > { %v4506_v62 = vrot.slane %v4505_v50, 4 }
 0x3d9   : > { %v4507_v41 = vadd.f32 %v4506_v62, %v4505_v50 }
 0x3db   : > { %v4508_v33 = vrot.slane %v4507_v41, 2 }
 0x3dd   : > { %v4509_v54 = vadd.f32 %v4508_v33, %v4507_v41 }
 0x3df   : > { %v4510_v24 = vrot.slane %v4509_v54, 1 }
 0x3e1   : > { %v4511_v22 = vadd.f32 %v4510_v24, %v4509_v54 }
 0x3e3   : > { %v4512_v38 = vmul.f32 0.00390625, %v4511_v22 }
 0x3e5   : > { %v4513_v8 = vadd.f32 1e-05, %v4512_v38 }
 0x3e7   : > { %11957 = vrsqrt.f32 %v4513_v8 }
 0x3f1   : > { %v11958_v10 = vpop.eup %11957 }
 0x3f2   : > { %v4549_v34 = vmul.f32 %v11958_v10, %v13237_v26  ;;  %v4515_v23 = vmul.f32 %v11958_v10, %v13138_v21  ;;  %v4516_v35 = vmul.f32 %v11958_v10, %v13141_v63  ;;  %v4517_v50 = vmul.f32 %v11958_v10, %v13144_v6 }
 0x3f3   : > { %v4518_v41 = vmul.f32 %v11958_v10, %v13147_v29  ;;  %v4519_v52 = vmul.f32 %v11958_v10, %v13150_v25  ;;  %v4520_v31 = vmul.f32 %v11958_v10, %v13153_v57  ;;  %v4521_v13 = vmul.f32 %v11958_v10, %v13156_v55 }
 0x3f4   : > { %v4585_v53 = vmax.f32 %v4549_v34, 0.0  ;;  %v4522_v1 = vmul.f32 %v11958_v10, %v13159_v56  ;;  %v4523_v11 = vmul.f32 %v11958_v10, %v13162_v58  ;;  %v4524_v26 = vmul.f32 %v11958_v10, %v13165_v60 }
 0x3f5   : > { %v4525_v21 = vmul.f32 %v11958_v10, %v13168_v61  ;;  %v4526_v63 = vmul.f32 %v11958_v10, %v13171_v2  ;;  %v4527_v6 = vmul.f32 %v11958_v10, %v13174_v4  ;;  %v4528_v29 = vmul.f32 %v11958_v10, %v13177_v9 }
 0x3f6   : > { %4625 = vst.msk [vmem:[#allocation2 + $0x123] sm:$0xff] %vm309_vm1, %v4585_v53  ;;  %v4529_v25 = vmul.f32 %v11958_v10, %v13180_v12  ;;  %v13416_v57 = vmul.f32 %v11958_v10, %v13183_v18  ;;  %v13419_v55 = vmul.f32 %v11958_v10, %v13186_v20  ;;  %v13422_v56 = vmul.f32 %v11958_v10, %v13189_v28 }
 0x3f7   : > { %v13425_v58 = vmul.f32 %v11958_v10, %v13192_v30  ;;  %v13428_v60 = vmul.f32 %v11958_v10, %v13195_v37  ;;  %v13431_v61 = vmul.f32 %v11958_v10, %v13198_v40  ;;  %v13434_v2 = vmul.f32 %v11958_v10, %v13201_v59 }
 0x3f8   : > { %v13437_v4 = vmul.f32 %v11958_v10, %v13204_v0  ;;  %v13440_v9 = vmul.f32 %v11958_v10, %v13207_v14  ;;  %v13443_v12 = vmul.f32 %v11958_v10, %v13210_v16  ;;  %v13446_v18 = vmul.f32 %v11958_v10, %v13213_v27 }
 0x3f9   : > { %v13449_v20 = vmul.f32 %v11958_v10, %v13216_v32  ;;  %v13452_v28 = vmul.f32 %v11958_v10, %v13219_v42  ;;  %v13455_v30 = vmul.f32 %v11958_v10, %v13222_v44  ;;  %v13458_v37 = vmul.f32 %v11958_v10, %v13225_v15 }
 0x3fa   : > { %v13461_v40 = vmul.f32 %v11958_v10, %v13228_v19  ;;  %v13464_v59 = vmul.f32 %v11958_v10, %v13231_v36  ;;  %v13467_v0 = vmul.f32 %v11958_v10, %v13233_v43  ;;  %v13470_v14 = vmul.f32 %v11958_v10, %v13235_v17 }
 0x3fb   : > { %v13473_v16 = vmul.f32 %v11958_v10, %v13239_v5  ;;  %v4551_v27 = vmax.f32 %v4515_v23, 0.0  ;;  %v4552_v32 = vmax.f32 %v4516_v35, 0.0  ;;  %v4553_v42 = vmax.f32 %v4517_v50, 0.0 }
 0x3fc   : > { %v4554_v44 = vmax.f32 %v4518_v41, 0.0  ;;  %v4555_v15 = vmax.f32 %v4519_v52, 0.0  ;;  %v4556_v62 = vmax.f32 %v4520_v31, 0.0  ;;  %v4557_v19 = vmax.f32 %v4521_v13, 0.0 }
 0x3fd   : > { %v4558_v33 = vmax.f32 %v4522_v1, 0.0  ;;  %v4559_v54 = vmax.f32 %v4523_v11, 0.0  ;;  %v4560_v36 = vmax.f32 %v4524_v26, 0.0  ;;  %v4561_v24 = vmax.f32 %v4525_v21, 0.0  ;;  %4591 = vst.msk [vmem:[#allocation2 + $0x13] sm:$0xff] %vm309_vm1, %v4551_v27  ;;  %4592 = vst.msk [vmem:[#allocation2 + $0x1b] sm:$0xff] %vm309_vm1, %v4552_v32 }
 0x3fe   : > { %4593 = vst.msk [vmem:[#allocation2 + $0x23] sm:$0xff] %vm309_vm1, %v4553_v42  ;;  %v4562_v43 = vmax.f32 %v4526_v63, 0.0  ;;  %v4563_v17 = vmax.f32 %v4527_v6, 0.0  ;;  %v4564_v5 = vmax.f32 %v4528_v29, 0.0  ;;  %v4565_v22 = vmax.f32 %v4529_v25, 0.0  ;;  %4594 = vst.msk [vmem:[#allocation2 + $0x2b] sm:$0xff] %vm309_vm1, %v4554_v44 }
 0x3ff   : > { %4595 = vst.msk [vmem:[#allocation2 + $0x33] sm:$0xff] %vm309_vm1, %v4555_v15  ;;  %4596 = vst.msk [vmem:[#allocation2 + $0x3b] sm:$0xff] %vm309_vm1, %v4556_v62  ;;  %v4566_v39 = vmax.f32 %v13416_v57, 0.0  ;;  %v4567_v38 = vmax.f32 %v13419_v55, 0.0  ;;  %v4568_v8 = vmax.f32 %v13422_v56, 0.0  ;;  %v4569_v10 = vmax.f32 %v13425_v58, 0.0 }
 0x400   : > { %4597 = vst.msk [vmem:[#allocation2 + $0x43] sm:$0xff] %vm309_vm1, %v4557_v19  ;;  %4598 = vst.msk [vmem:[#allocation2 + $0x4b] sm:$0xff] %vm309_vm1, %v4558_v33  ;;  %v4570_v34 = vmax.f32 %v13428_v60, 0.0  ;;  %v4571_v23 = vmax.f32 %v13431_v61, 0.0  ;;  %v4572_v35 = vmax.f32 %v13434_v2, 0.0  ;;  %v4573_v50 = vmax.f32 %v13437_v4, 0.0 }
 0x401   : > { %4599 = vst.msk [vmem:[#allocation2 + $0x53] sm:$0xff] %vm309_vm1, %v4559_v54  ;;  %4600 = vst.msk [vmem:[#allocation2 + $0x5b] sm:$0xff] %vm309_vm1, %v4560_v36  ;;  %v4574_v41 = vmax.f32 %v13440_v9, 0.0  ;;  %v4575_v52 = vmax.f32 %v13443_v12, 0.0  ;;  %v4576_v31 = vmax.f32 %v13446_v18, 0.0  ;;  %v4577_v13 = vmax.f32 %v13449_v20, 0.0 }
 0x402   : > { %4601 = vst.msk [vmem:[#allocation2 + $0x63] sm:$0xff] %vm309_vm1, %v4561_v24  ;;  %4602 = vst.msk [vmem:[#allocation2 + $0x6b] sm:$0xff] %vm309_vm1, %v4562_v43  ;;  %v4578_v53 = vmax.f32 %v13452_v28, 0.0  ;;  %v4579_v1 = vmax.f32 %v13455_v30, 0.0  ;;  %v4580_v11 = vmax.f32 %v13458_v37, 0.0  ;;  %v4581_v26 = vmax.f32 %v13461_v40, 0.0 }
 0x403   : > { %4603 = vst.msk [vmem:[#allocation2 + $0x73] sm:$0xff] %vm309_vm1, %v4563_v17  ;;  %4604 = vst.msk [vmem:[#allocation2 + $0x7b] sm:$0xff] %vm309_vm1, %v4564_v5  ;;  %v4582_v21 = vmax.f32 %v13464_v59, 0.0  ;;  %v4583_v63 = vmax.f32 %v13467_v0, 0.0  ;;  %v4584_v6 = vmax.f32 %v13470_v14, 0.0  ;;  %v4586_v29 = vmax.f32 %v13473_v16, 0.0 }
 0x404   : > { %4605 = vst.msk [vmem:[#allocation2 + $0x83] sm:$0xff] %vm309_vm1, %v4565_v22  ;;  %4606 = vst.msk [vmem:[#allocation2 + $0x8b] sm:$0xff] %vm309_vm1, %v4566_v39  ;;  %v4627_v57 = vld [vmem:[#allocation2 + $0x14] sm:$0x1]  ;;  %v4630_v58 = vld [vmem:[#allocation2 + $0x21] sm:$0x1] }
 0x405   : > { %4607 = vst.msk [vmem:[#allocation2 + $0x93] sm:$0xff] %vm309_vm1, %v4567_v38  ;;  %4608 = vst.msk [vmem:[#allocation2 + $0x9b] sm:$0xff] %vm309_vm1, %v4568_v8  ;;  %v4632_v25 = vld [vmem:[#allocation2 + $0x26] sm:$0x1]  ;;  %v13568_v36 = vld [vmem:[%s14690_s2 + $0x8] sm:$0xf] }
 0x406   : > { %4609 = vst.msk [vmem:[#allocation2 + $0xa3] sm:$0xff] %vm309_vm1, %v4569_v10  ;;  %4610 = vst.msk [vmem:[#allocation2 + $0xab] sm:$0xff] %vm309_vm1, %v4570_v34  ;;  %v4634_v55 = vld [vmem:[#allocation2 + $0x33] sm:$0x1]  ;;  %v4636_v60 = vld [vmem:[#allocation2 + $0x38] sm:$0x1] }
 0x407   : > { %4611 = vst.msk [vmem:[#allocation2 + $0xb3] sm:$0xff] %vm309_vm1, %v4571_v23  ;;  %4612 = vst.msk [vmem:[#allocation2 + $0xbb] sm:$0xff] %vm309_vm1, %v4572_v35  ;;  %v13531_v56 = vld [vmem:[#allocation2 + $0x2c] sm:$0xff]  ;;  %v4638_v61 = vld [vmem:[#allocation2 + $0x45] sm:$0x1] }
 0x408   : > { %4613 = vst.msk [vmem:[#allocation2 + $0xc3] sm:$0xff] %vm309_vm1, %v4573_v50  ;;  %4614 = vst.msk [vmem:[#allocation2 + $0xcb] sm:$0xff] %vm309_vm1, %v4574_v41  ;;  %v4640_v2 = vld [vmem:[#allocation2 + $0x4a] sm:$0x1]  ;;  %v4642_v4 = vld [vmem:[#allocation2 + $0x57] sm:$0x1] }
 0x409   : > { %4615 = vst.msk [vmem:[#allocation2 + $0xd3] sm:$0xff] %vm309_vm1, %v4575_v52  ;;  %4616 = vst.msk [vmem:[#allocation2 + $0xdb] sm:$0xff] %vm309_vm1, %v4576_v31  ;;  %v4644_v9 = vld [vmem:[#allocation2 + $0x5c] sm:$0x1]  ;;  %v4646_v12 = vld [vmem:[#allocation2 + $0x69] sm:$0x1] }
 0x40a   : > { %4617 = vst.msk [vmem:[#allocation2 + $0xe3] sm:$0xff] %vm309_vm1, %v4577_v13  ;;  %4618 = vst.msk [vmem:[#allocation2 + $0xeb] sm:$0xff] %vm309_vm1, %v4578_v53  ;;  %v4648_v18 = vld [vmem:[#allocation2 + $0x6e] sm:$0x1]  ;;  %v4650_v20 = vld [vmem:[#allocation2 + $0x7b] sm:$0x1] }
 0x40b   : > { %4619 = vst.msk [vmem:[#allocation2 + $0xf3] sm:$0xff] %vm309_vm1, %v4579_v1  ;;  %4620 = vst.msk [vmem:[#allocation2 + $0xfb] sm:$0xff] %vm309_vm1, %v4580_v11  ;;  %v4652_v28 = vld [vmem:[#allocation2 + $0x80] sm:$0x1]  ;;  %v4654_v30 = vld [vmem:[#allocation2 + $0x8d] sm:$0x1] }
 0x40c   : > { %4621 = vst.msk [vmem:[#allocation2 + $0x103] sm:$0xff] %vm309_vm1, %v4581_v26  ;;  %4622 = vst.msk [vmem:[#allocation2 + $0x10b] sm:$0xff] %vm309_vm1, %v4582_v21  ;;  %v4656_v37 = vld [vmem:[#allocation2 + $0x92] sm:$0x1]  ;;  %v4658_v0 = vld [vmem:[#allocation2 + $0x9f] sm:$0x1] }
 0x40d   : > { %4623 = vst.msk [vmem:[#allocation2 + $0x113] sm:$0xff] %vm309_vm1, %v4583_v63  ;;  %4624 = vst.msk [vmem:[#allocation2 + $0x11b] sm:$0xff] %vm309_vm1, %v4584_v6  ;;  %v4660_v14 = vld [vmem:[#allocation2 + $0xa4] sm:$0x1]  ;;  %v4662_v16 = vld [vmem:[#allocation2 + $0xb1] sm:$0x1] }
 0x40e   : > { %4626 = vst.msk [vmem:[#allocation2 + $0x12b] sm:$0xff] %vm309_vm1, %v4586_v29  ;;  %4696 = vst.msk [vmem:[#allocation2 + $0x8] sm:$0xff] %vm309_vm1, %v13531_v56  ;;  %v4664_v27 = vld [vmem:[#allocation2 + $0xb6] sm:$0x1]  ;;  %v4744_v38 = vld [vmem:[#allocation2 + $0x19] sm:$0xff] }
 0x40f   : > { %4633 = vst.msk [vmem:[#allocation2 + $0x24] sm:$0x1] %vm4628_vm3, %v4632_v25  ;;  %4629 = vst.msk [vmem:[#allocation2 + $0x12] sm:$0x1] %vm4628_vm3, %v4627_v57  ;;  %v4666_v32 = vld [vmem:[#allocation2 + $0xc3] sm:$0x1] }
 0x410   : > { %4635 = vst.msk [vmem:[#allocation2 + $0x35] sm:$0x1] %vm4628_vm3, %v4634_v55  ;;  %4631 = vst.msk [vmem:[#allocation2 + $0x23] sm:$0x1] %vm4628_vm3, %v4630_v58  ;;  %v4668_v42 = vld [vmem:[#allocation2 + $0xc8] sm:$0x1] }
 0x411   : > { %4637 = vst.msk [vmem:[#allocation2 + $0x36] sm:$0x1] %vm4628_vm3, %v4636_v60  ;;  %4639 = vst.msk [vmem:[#allocation2 + $0x47] sm:$0x1] %vm4628_vm3, %v4638_v61  ;;  %v4670_v44 = vld [vmem:[#allocation2 + $0xd5] sm:$0x1] }
 0x412   : > { %4641 = vst.msk [vmem:[#allocation2 + $0x48] sm:$0x1] %vm4628_vm3, %v4640_v2  ;;  %4643 = vst.msk [vmem:[#allocation2 + $0x59] sm:$0x1] %vm4628_vm3, %v4642_v4  ;;  %v4672_v15 = vld [vmem:[#allocation2 + $0xda] sm:$0x1] }
 0x413   : > { %4645 = vst.msk [vmem:[#allocation2 + $0x5a] sm:$0x1] %vm4628_vm3, %v4644_v9  ;;  %4647 = vst.msk [vmem:[#allocation2 + $0x6b] sm:$0x1] %vm4628_vm3, %v4646_v12  ;;  %v4674_v19 = vld [vmem:[#allocation2 + $0xe7] sm:$0x1] }
 0x414   : > { %4649 = vst.msk [vmem:[#allocation2 + $0x6c] sm:$0x1] %vm4628_vm3, %v4648_v18  ;;  %4651 = vst.msk [vmem:[#allocation2 + $0x7d] sm:$0x1] %vm4628_vm3, %v4650_v20  ;;  %v4676_v33 = vld [vmem:[#allocation2 + $0xec] sm:$0x1] }
 0x415   : > { %4653 = vst.msk [vmem:[#allocation2 + $0x7e] sm:$0x1] %vm4628_vm3, %v4652_v28  ;;  %4655 = vst.msk [vmem:[#allocation2 + $0x8f] sm:$0x1] %vm4628_vm3, %v4654_v30  ;;  %v4678_v43 = vld [vmem:[#allocation2 + $0xf9] sm:$0x1] }
 0x416   : > { %v13547_v40 = vld [vmem:[#allocation2 + $0x24] sm:$0xff]  ;;  %4657 = vst.msk [vmem:[#allocation2 + $0x90] sm:$0x1] %vm4628_vm3, %v4656_v37  ;;  %4659 = vst.msk [vmem:[#allocation2 + $0xa1] sm:$0x1] %vm4628_vm3, %v4658_v0  ;;  %v4748_v23 = vld [vmem:[#allocation2 + $0x39] sm:$0xff] }
 0x417   : > { %4695 = vst.msk [vmem:[#allocation2] sm:$0xff] %vm309_vm1, %v13547_v40  ;;  %v4694_v59 = vld [vmem:[#allocation2 + $0x34] sm:$0x3]  ;;  %v4680_v17 = vld [vmem:[#allocation2 + $0xfe] sm:$0x1]  ;;  %v4745_v8 = vld [vmem:[#allocation2 + $0x21] sm:$0xff] }
 0x418   : > { %4697 = vst.msk [vmem:[#allocation2 + $0x10] sm:$0x3] %vm4589_vm2, %v4694_v59  ;;  %v4682_v5 = vld [vmem:[#allocation2 + $0x10b] sm:$0x1]  ;;  %v4684_v22 = vld [vmem:[#allocation2 + $0x110] sm:$0x1] }
 0x419   : > { %4661 = vst.msk [vmem:[#allocation2 + $0xa2] sm:$0x1] %vm4628_vm3, %v4660_v14  ;;  %4663 = vst.msk [vmem:[#allocation2 + $0xb3] sm:$0x1] %vm4628_vm3, %v4662_v16  ;;  %v4686_v39 = vld [vmem:[#allocation2 + $0x11d] sm:$0x1] }
 0x41a   : > { %4665 = vst.msk [vmem:[#allocation2 + $0xb4] sm:$0x1] %vm4628_vm3, %v4664_v27  ;;  %4667 = vst.msk [vmem:[#allocation2 + $0xc5] sm:$0x1] %vm4628_vm3, %v4666_v32  ;;  %v4746_v10 = vld [vmem:[#allocation2 + $0x29] sm:$0xff]  ;;  %v4747_v34 = vld [vmem:[#allocation2 + $0x31] sm:$0xff] }
 0x41b   : > { %4669 = vst.msk [vmem:[#allocation2 + $0xc6] sm:$0x1] %vm4628_vm3, %v4668_v42  ;;  %4671 = vst.msk [vmem:[#allocation2 + $0xd7] sm:$0x1] %vm4628_vm3, %v4670_v44  ;;  %v4749_v35 = vld [vmem:[#allocation2 + $0x41] sm:$0xff]  ;;  %v4750_v50 = vld [vmem:[#allocation2 + $0x49] sm:$0xff] }
 0x41c   : > { %4673 = vst.msk [vmem:[#allocation2 + $0xd8] sm:$0x1] %vm4628_vm3, %v4672_v15  ;;  %4675 = vst.msk [vmem:[#allocation2 + $0xe9] sm:$0x1] %vm4628_vm3, %v4674_v19  ;;  %v4751_v41 = vld [vmem:[#allocation2 + $0x51] sm:$0xff]  ;;  %v4752_v52 = vld [vmem:[#allocation2 + $0x59] sm:$0xff] }
 0x41d   : > { %4677 = vst.msk [vmem:[#allocation2 + $0xea] sm:$0x1] %vm4628_vm3, %v4676_v33  ;;  %4679 = vst.msk [vmem:[#allocation2 + $0xfb] sm:$0x1] %vm4628_vm3, %v4678_v43  ;;  %v4753_v31 = vld [vmem:[#allocation2 + $0x61] sm:$0xff]  ;;  %v4754_v13 = vld [vmem:[#allocation2 + $0x69] sm:$0xff] }
 0x41e   : > { %v4741_v62 = vld [vmem:[#allocation2 + $0x1] sm:$0xff]  ;;  %4681 = vst.msk [vmem:[#allocation2 + $0xfc] sm:$0x1] %vm4628_vm3, %v4680_v17  ;;  %4683 = vst.msk [vmem:[#allocation2 + $0x10d] sm:$0x1] %vm4628_vm3, %v4682_v5  ;;  %v4755_v53 = vld [vmem:[#allocation2 + $0x71] sm:$0xff] }
 0x41f   : > { %10865 = vmatprep.mubr.msk.f32.mxu1 %vm309_vm1, %v4741_v62  ;;  %v4742_v54 = vld [vmem:[#allocation2 + $0x9] sm:$0xff]  ;;  %v4743_v24 = vld [vmem:[#allocation2 + $0x11] sm:$0xff]  ;;  %4685 = vst.msk [vmem:[#allocation2 + $0x10e] sm:$0x1] %vm4628_vm3, %v4684_v22  ;;  %4687 = vst.msk [vmem:[#allocation2 + $0x11f] sm:$0x1] %vm4628_vm3, %v4686_v39 }
 0x420   : > { %10866 = vmatmul.mubr.msk.f32.vlgmr.msra.gmra.mrb[0].mxu1 %vm309_vm1, %v4742_v54  ;;  %v4756_v1 = vld [vmem:[#allocation2 + $0x79] sm:$0xff]  ;;  %v4757_v11 = vld [vmem:[#allocation2 + $0x81] sm:$0xff]  ;;  %v4690_v26 = vld [vmem:[#allocation2 + $0x12f] sm:$0x1] }
 0x421   : > { %10920 = vmatpush3.msk.msra.mxu1 %vm418_vm0, %v13275_v45  ;;  %10868 = vmatprep.mubr.msk.f32.mxu1 %vm309_vm1, %v4743_v24  ;;  %v4688_v45 = vld [vmem:[#allocation2 + $0x122] sm:$0x1]  ;;  %v4758_v21 = vld [vmem:[#allocation2 + $0x89] sm:$0xff]  ;;  %4691 = vst.msk [vmem:[#allocation2 + $0x131] sm:$0x1] %vm4628_vm3, %v4690_v26  ;;  %v4759_v63 = vld [vmem:[#allocation2 + $0x91] sm:$0xff] }
 0x422   : > { %10975 = vmatprep.subr.msk.mxu1 %vm418_vm0, %v13568_v36  ;;  %4689 = vst.msk [vmem:[#allocation2 + $0x120] sm:$0x1] %vm4628_vm3, %v4688_v45  ;;  %v4760_v6 = vld [vmem:[#allocation2 + $0x99] sm:$0xff]  ;;  %v4761_v29 = vld [vmem:[#allocation2 + $0xa1] sm:$0xff]  ;;  %v4762_v25 = vld [vmem:[#allocation2 + $0xa9] sm:$0xff] }
 0x423   : > { %v4763_v57 = vld [vmem:[#allocation2 + $0xb1] sm:$0xff]  ;;  %v4764_v58 = vld [vmem:[#allocation2 + $0xb9] sm:$0xff]  ;;  %v4765_v60 = vld [vmem:[#allocation2 + $0xc1] sm:$0xff] }
 0x424   : > { %10869 = vmatmul.mubr.msk.f32.gmra.mrb[2].mxu1 %vm309_vm1, %v4744_v38  ;;  %v4766_v61 = vld [vmem:[#allocation2 + $0xc9] sm:$0xff]  ;;  %v4767_v2 = vld [vmem:[#allocation2 + $0xd1] sm:$0xff]  ;;  %v4768_v4 = vld [vmem:[#allocation2 + $0xd9] sm:$0xff] }
 0x425   : > { %10871 = vmatprep.mubr.msk.f32.mxu1 %vm309_vm1, %v4745_v8  ;;  %v4769_v9 = vld [vmem:[#allocation2 + $0xe1] sm:$0xff]  ;;  %v13613_v12 = vld [vmem:[#allocation2 + $0x116] sm:$0xff]  ;;  %v4770_v18 = vld [vmem:[#allocation2 + $0xe9] sm:$0xff] }
 0x426   : > { %v13603_v55 = vld [vmem:[#allocation2 + $0x10e] sm:$0xff]  ;;  %4702 = vst.msk [vmem:[#allocation2 + $0x13a] sm:$0xff] %vm309_vm1, %v13613_v12  ;;  %v4700_v20 = vld [vmem:[#allocation2 + $0x11e] sm:$0x3]  ;;  %v4773_v37 = vld [vmem:[#allocation2 + $0x101] sm:$0xff] }
 0x427   : > { %4701 = vst.msk [vmem:[#allocation2 + $0x132] sm:$0xff] %vm309_vm1, %v13603_v55  ;;  %v4771_v28 = vld [vmem:[#allocation2 + $0xf1] sm:$0xff]  ;;  %v4772_v30 = vld [vmem:[#allocation2 + $0xf9] sm:$0xff]  ;;  %v4774_v59 = vld [vmem:[#allocation2 + $0x109] sm:$0xff] }
 0x428   : > { %10872 = vmatmul.mubr.msk.f32.gmra.mrb[4].mxu1 %vm309_vm1, %v4746_v10  ;;  %4703 = vst.msk [vmem:[#allocation2 + $0x142] sm:$0x3] %vm4589_vm2, %v4700_v20  ;;  %v4775_v0 = vld [vmem:[#allocation2 + $0x111] sm:$0xff]  ;;  %v4704_v16 = vld [vmem:[#allocation2] sm:$0xff]  ;;  %v4705_v27 = vld [vmem:[#allocation2 + $0x8] sm:$0xff] }
 0x429   : > { %10874 = vmatprep.mubr.msk.f32.mxu1 %vm309_vm1, %v4747_v34  ;;  %v4776_v14 = vld [vmem:[#allocation2 + $0x119] sm:$0xff]  ;;  %v13629_v32 = vld [vmem:[%s14690_s2 + $0xc] sm:$0xf]  ;;  %v4706_v42 = vld [vmem:[#allocation2 + $0x10] sm:$0xff] }
 0x42a   : > { %v4707_v44 = vld [vmem:[#allocation2 + $0x18] sm:$0xff]  ;;  %v4708_v15 = vld [vmem:[#allocation2 + $0x20] sm:$0xff]  ;;  %v4709_v62 = vld [vmem:[#allocation2 + $0x28] sm:$0xff] }
 0x42b   : > { %v4710_v19 = vld [vmem:[#allocation2 + $0x30] sm:$0xff]  ;;  %v4711_v33 = vld [vmem:[#allocation2 + $0x38] sm:$0xff]  ;;  %v4712_v54 = vld [vmem:[#allocation2 + $0x40] sm:$0xff] }
 0x42c   : > { %10875 = vmatmul.mubr.msk.f32.gmra.mrb[6].mxu1 %vm309_vm1, %v4748_v23  ;;  %v4714_v24 = vld [vmem:[#allocation2 + $0x50] sm:$0xff]  ;;  %v4715_v43 = vld [vmem:[#allocation2 + $0x58] sm:$0xff]  ;;  %v4716_v17 = vld [vmem:[#allocation2 + $0x60] sm:$0xff] }
 0x42d   : > { %10877 = vmatprep.mubr.msk.f32.mxu1 %vm309_vm1, %v4749_v35  ;;  %v4717_v5 = vld [vmem:[#allocation2 + $0x68] sm:$0xff]  ;;  %v4718_v22 = vld [vmem:[#allocation2 + $0x70] sm:$0xff]  ;;  %v4719_v39 = vld [vmem:[#allocation2 + $0x78] sm:$0xff] }
 0x42e   : > { %v4720_v38 = vld [vmem:[#allocation2 + $0x80] sm:$0xff]  ;;  %v4721_v45 = vld [vmem:[#allocation2 + $0x88] sm:$0xff]  ;;  %v4722_v8 = vld [vmem:[#allocation2 + $0x90] sm:$0xff] }
 0x42f   : > { %v4723_v10 = vld [vmem:[#allocation2 + $0x98] sm:$0xff]  ;;  %v4724_v34 = vld [vmem:[#allocation2 + $0xa0] sm:$0xff]  ;;  %v4725_v23 = vld [vmem:[#allocation2 + $0xa8] sm:$0xff] }
 0x430   : > { %10878 = vmatmul.mubr.msk.f32.gmra.mrb[8].mxu1 %vm309_vm1, %v4750_v50  ;;  %v4726_v35 = vld [vmem:[#allocation2 + $0xb0] sm:$0xff]  ;;  %v4727_v50 = vld [vmem:[#allocation2 + $0xb8] sm:$0xff]  ;;  %v13705_v20 = vld [vmem:[#allocation2 + $0x42] sm:$0xff] }
 0x431   : > { %10880 = vmatprep.mubr.msk.f32.mxu1 %vm309_vm1, %v4751_v41  ;;  %v4728_v41 = vld [vmem:[#allocation2 + $0xc0] sm:$0xff]  ;;  %v4735_v26 = vld [vmem:[#allocation2 + $0xf8] sm:$0xff] }
 0x434   : > { %10881 = vmatmul.mubr.msk.f32.gmra.mrb[10].mxu1 %vm309_vm1, %v4752_v52  ;;  %v4729_v52 = vld [vmem:[#allocation2 + $0xc8] sm:$0xff] }
 0x435   : > { %10883 = vmatprep.mubr.msk.f32.mxu1 %vm309_vm1, %v4753_v31  ;;  %v4730_v31 = vld [vmem:[#allocation2 + $0xd0] sm:$0xff] }
 0x438   : > { %10884 = vmatmul.mubr.msk.f32.gmra.mrb[12].mxu1 %vm309_vm1, %v4754_v13  ;;  %v4731_v13 = vld [vmem:[#allocation2 + $0xd8] sm:$0xff] }
 0x439   : > { %10886 = vmatprep.mubr.msk.f32.mxu1 %vm309_vm1, %v4755_v53  ;;  %v4732_v53 = vld [vmem:[#allocation2 + $0xe0] sm:$0xff] }
 0x43c   : > { %10887 = vmatmul.mubr.msk.f32.gmra.mrb[14].mxu1 %vm309_vm1, %v4756_v1  ;;  %v4733_v1 = vld [vmem:[#allocation2 + $0xe8] sm:$0xff] }
 0x43d   : > { %10889 = vmatprep.mubr.msk.f32.mxu1 %vm309_vm1, %v4757_v11  ;;  %v4734_v11 = vld [vmem:[#allocation2 + $0xf0] sm:$0xff] }
 0x440   : > { %10890 = vmatmul.mubr.msk.f32.gmra.mrb[16].mxu1 %vm309_vm1, %v4758_v21  ;;  %v4736_v21 = vld [vmem:[#allocation2 + $0x100] sm:$0xff] }
 0x441   : > { %10892 = vmatprep.mubr.msk.f32.mxu1 %vm309_vm1, %v4759_v63  ;;  %v4737_v63 = vld [vmem:[#allocation2 + $0x108] sm:$0xff] }
 0x444   : > { %10893 = vmatmul.mubr.msk.f32.gmra.mrb[18].mxu1 %vm309_vm1, %v4760_v6  ;;  %v4738_v6 = vld [vmem:[#allocation2 + $0x110] sm:$0xff] }
 0x445   : > { %10895 = vmatprep.mubr.msk.f32.mxu1 %vm309_vm1, %v4761_v29  ;;  %v4739_v29 = vld [vmem:[#allocation2 + $0x118] sm:$0xff] }
 0x448   : > { %10896 = vmatmul.mubr.msk.f32.gmra.mrb[20].mxu1 %vm309_vm1, %v4762_v25  ;;  %v5491_v25 = vld [vmem:[#allocation2 + $0x2] sm:$0xff] }
 0x449   : > { %10898 = vmatprep.mubr.msk.f32.mxu1 %vm309_vm1, %v4763_v57  ;;  %v5492_v57 = vld [vmem:[#allocation2 + $0xa] sm:$0xff] }
 0x44c   : > { %10899 = vmatmul.mubr.msk.f32.gmra.mrb[22].mxu1 %vm309_vm1, %v4764_v58  ;;  %v13674_v58 = vld [vmem:[%s14690_s2 + $0x10] sm:$0xf] }
 0x44d   : > { %10901 = vmatprep.mubr.msk.f32.mxu1 %vm309_vm1, %v4765_v60  ;;  %v13677_v60 = vld [vmem:[#allocation2 + $0x12] sm:$0xff] }
 0x450   : > { %10902 = vmatmul.mubr.msk.f32.gmra.mrb[24].mxu1 %vm309_vm1, %v4766_v61  ;;  %v13685_v61 = vld [vmem:[#allocation2 + $0x1a] sm:$0xff] }
 0x451   : > { %10904 = vmatprep.mubr.msk.f32.mxu1 %vm309_vm1, %v4767_v2  ;;  %v13689_v2 = vld [vmem:[#allocation2 + $0x22] sm:$0xff] }
 0x454   : > { %10905 = vmatmul.mubr.msk.f32.gmra.mrb[26].mxu1 %vm309_vm1, %v4768_v4  ;;  %v13693_v4 = vld [vmem:[#allocation2 + $0x2a] sm:$0xff] }
 0x455   : > { %10907 = vmatprep.mubr.msk.f32.mxu1 %vm309_vm1, %v4769_v9  ;;  %v13697_v9 = vld [vmem:[#allocation2 + $0x32] sm:$0xff] }
 0x458   : > { %10908 = vmatmul.mubr.msk.f32.gmra.mrb[28].mxu1 %vm309_vm1, %v4770_v18  ;;  %v13701_v18 = vld [vmem:[#allocation2 + $0x3a] sm:$0xff] }
 0x459   : > { %10910 = vmatprep.mubr.msk.f32.mxu1 %vm309_vm1, %v4771_v28  ;;  %v13709_v28 = vld [vmem:[#allocation2 + $0x4a] sm:$0xff] }
 0x45c   : > { %10911 = vmatmul.mubr.msk.f32.gmra.mrb[30].mxu1 %vm309_vm1, %v4772_v30  ;;  %v13713_v30 = vld [vmem:[#allocation2 + $0x52] sm:$0xff] }
 0x45d   : > { %10913 = vmatprep.mubr.msk.f32.mxu1 %vm309_vm1, %v4773_v37  ;;  %v5502_v37 = vld [vmem:[#allocation2 + $0x5a] sm:$0xff] }
 0x460   : > { %10914 = vmatmul.mubr.msk.f32.gmra.mrb[32].mxu1 %vm309_vm1, %v4774_v59  ;;  %v5503_v59 = vld [vmem:[#allocation2 + $0x62] sm:$0xff] }
 0x461   : > { %10916 = vmatprep.mubr.msk.f32.mxu1 %vm309_vm1, %v4775_v0  ;;  %v5504_v0 = vld [vmem:[#allocation2 + $0x6a] sm:$0xff] }
 0x464   : > { %10917 = vmatmul.mubr.msk.f32.gmra.mrb[34].mxu1 %vm309_vm1, %v4776_v14  ;;  %v5505_v14 = vld [vmem:[#allocation2 + $0x72] sm:$0xff] }
 0x465   : > { %10921 = vmatprep.mubr.msk.f32.mxu1 %vm309_vm1, %v4704_v16  ;;  %v5506_v16 = vld [vmem:[#allocation2 + $0x7a] sm:$0xff] }
 0x468   : > { %10922 = vmatmul.mubr.msk.f32.vlgmr.msra.gmra.mrb[0].mxu1 %vm309_vm1, %v4705_v27  ;;  %v5507_v27 = vld [vmem:[#allocation2 + $0x82] sm:$0xff] }
 0x469   : > { %10976 = vmatpush3.msk.msra.mxu1 %vm418_vm0, %v13568_v36  ;;  %10924 = vmatprep.mubr.msk.f32.mxu1 %vm309_vm1, %v4706_v42  ;;  %v4713_v36 = vld [vmem:[#allocation2 + $0x48] sm:$0xff]  ;;  %v5509_v42 = vld [vmem:[#allocation2 + $0x92] sm:$0xff] }
 0x46a   : > { %11031 = vmatprep.subr.msk.mxu1 %vm418_vm0, %v13629_v32 }
 0x46c   : > { %10925 = vmatmul.mubr.msk.f32.gmra.mrb[2].mxu1 %vm309_vm1, %v4707_v44  ;;  %v5510_v44 = vld [vmem:[#allocation2 + $0x9a] sm:$0xff] }
 0x46d   : > { %10927 = vmatprep.mubr.msk.f32.mxu1 %vm309_vm1, %v4708_v15  ;;  %v5511_v15 = vld [vmem:[#allocation2 + $0xa2] sm:$0xff] }
 0x470   : > { %10928 = vmatmul.mubr.msk.f32.gmra.mrb[4].mxu1 %vm309_vm1, %v4709_v62  ;;  %v5512_v62 = vld [vmem:[#allocation2 + $0xaa] sm:$0xff] }
 0x471   : > { %10930 = vmatprep.mubr.msk.f32.mxu1 %vm309_vm1, %v4710_v19  ;;  %v5513_v19 = vld [vmem:[#allocation2 + $0xb2] sm:$0xff] }
 0x474   : > { %10931 = vmatmul.mubr.msk.f32.gmra.mrb[6].mxu1 %vm309_vm1, %v4711_v33  ;;  %v5514_v33 = vld [vmem:[#allocation2 + $0xba] sm:$0xff] }
 0x475   : > { %10933 = vmatprep.mubr.msk.f32.mxu1 %vm309_vm1, %v4712_v54  ;;  %v5515_v54 = vld [vmem:[#allocation2 + $0xc2] sm:$0xff] }
 0x478   : > { %10934 = vmatmul.mubr.msk.f32.gmra.mrb[8].mxu1 %vm309_vm1, %v4713_v36  ;;  %v5516_v36 = vld [vmem:[#allocation2 + $0xca] sm:$0xff] }
 0x479   : > { %10936 = vmatprep.mubr.msk.f32.mxu1 %vm309_vm1, %v4714_v24  ;;  %v5517_v24 = vld [vmem:[#allocation2 + $0xd2] sm:$0xff] }
 0x47c   : > { %10937 = vmatmul.mubr.msk.f32.gmra.mrb[10].mxu1 %vm309_vm1, %v4715_v43  ;;  %v5518_v43 = vld [vmem:[#allocation2 + $0xda] sm:$0xff] }
 0x47d   : > { %10939 = vmatprep.mubr.msk.f32.mxu1 %vm309_vm1, %v4716_v17  ;;  %v5519_v17 = vld [vmem:[#allocation2 + $0xe2] sm:$0xff] }
 0x480   : > { %10940 = vmatmul.mubr.msk.f32.gmra.mrb[12].mxu1 %vm309_vm1, %v4717_v5  ;;  %v5520_v5 = vld [vmem:[#allocation2 + $0xea] sm:$0xff] }
 0x481   : > { %10942 = vmatprep.mubr.msk.f32.mxu1 %vm309_vm1, %v4718_v22  ;;  %v5521_v22 = vld [vmem:[#allocation2 + $0xf2] sm:$0xff] }
 0x484   : > { %10943 = vmatmul.mubr.msk.f32.gmra.mrb[14].mxu1 %vm309_vm1, %v4719_v39  ;;  %v5522_v39 = vld [vmem:[#allocation2 + $0xfa] sm:$0xff] }
 0x485   : > { %10945 = vmatprep.mubr.msk.f32.mxu1 %vm309_vm1, %v4720_v38  ;;  %v5523_v38 = vld [vmem:[#allocation2 + $0x102] sm:$0xff] }
 0x488   : > { %10946 = vmatmul.mubr.msk.f32.gmra.mrb[16].mxu1 %vm309_vm1, %v4721_v45  ;;  %v5524_v45 = vld [vmem:[#allocation2 + $0x10a] sm:$0xff] }
 0x489   : > { %10948 = vmatprep.mubr.msk.f32.mxu1 %vm309_vm1, %v4722_v8  ;;  %v5525_v8 = vld [vmem:[#allocation2 + $0x112] sm:$0xff] }
 0x48c   : > { %10949 = vmatmul.mubr.msk.f32.gmra.mrb[18].mxu1 %vm309_vm1, %v4723_v10  ;;  %v5526_v10 = vld [vmem:[#allocation2 + $0x11a] sm:$0xff] }
 0x48d   : > { %10951 = vmatprep.mubr.msk.f32.mxu1 %vm309_vm1, %v4724_v34  ;;  %v9539_v34 = vld [vmem:[%s14690_s2 + $0x14] sm:$0xf] }
 0x490   : > { %10952 = vmatmul.mubr.msk.f32.gmra.mrb[20].mxu1 %vm309_vm1, %v4725_v23  ;;  %v5955_v23 = vld [vmem:[#allocation2 + $0x122] sm:$0xff] }
 0x491   : > { %10954 = vmatprep.mubr.msk.f32.mxu1 %vm309_vm1, %v4726_v35  ;;  %v5956_v35 = vld [vmem:[#allocation2 + $0x12a] sm:$0xff] }
 0x494   : > { %10955 = vmatmul.mubr.msk.f32.gmra.mrb[22].mxu1 %vm309_vm1, %v4727_v50  ;;  %v6351_v50 = vld [vmem:[#allocation2 + $0x13] sm:$0xff] }
 0x495   : > { %10957 = vmatprep.mubr.msk.f32.mxu1 %vm309_vm1, %v4728_v41  ;;  %v6352_v41 = vld [vmem:[#allocation2 + $0x1b] sm:$0xff] }
 0x498   : > { %10958 = vmatmul.mubr.msk.f32.gmra.mrb[24].mxu1 %vm309_vm1, %v4729_v52  ;;  %v13797_v52 = vld [vmem:[%s14690_s2 + $0x18] sm:$0xf] }
 0x499   : > { %10960 = vmatprep.mubr.msk.f32.mxu1 %vm309_vm1, %v4730_v31  ;;  %v6353_v31 = vld [vmem:[#allocation2 + $0x23] sm:$0xff] }
 0x49c   : > { %10961 = vmatmul.mubr.msk.f32.gmra.mrb[26].mxu1 %vm309_vm1, %v4731_v13  ;;  %v6354_v13 = vld [vmem:[#allocation2 + $0x2b] sm:$0xff] }
 0x49d   : > { %10963 = vmatprep.mubr.msk.f32.mxu1 %vm309_vm1, %v4732_v53  ;;  %v6355_v53 = vld [vmem:[#allocation2 + $0x33] sm:$0xff] }
 0x4a0   : > { %10964 = vmatmul.mubr.msk.f32.gmra.mrb[28].mxu1 %vm309_vm1, %v4733_v1  ;;  %v6356_v1 = vld [vmem:[#allocation2 + $0x3b] sm:$0xff] }
 0x4a1   : > { %10966 = vmatprep.mubr.msk.f32.mxu1 %vm309_vm1, %v4734_v11  ;;  %v6357_v11 = vld [vmem:[#allocation2 + $0x43] sm:$0xff] }
 0x4a4   : > { %10967 = vmatmul.mubr.msk.f32.gmra.mrb[30].mxu1 %vm309_vm1, %v4735_v26  ;;  %v6358_v26 = vld [vmem:[#allocation2 + $0x4b] sm:$0xff] }
 0x4a5   : > { %10969 = vmatprep.mubr.msk.f32.mxu1 %vm309_vm1, %v4736_v21  ;;  %v6359_v21 = vld [vmem:[#allocation2 + $0x53] sm:$0xff] }
 0x4a8   : > { %10970 = vmatmul.mubr.msk.f32.gmra.mrb[32].mxu1 %vm309_vm1, %v4737_v63  ;;  %v6360_v63 = vld [vmem:[#allocation2 + $0x5b] sm:$0xff] }
 0x4a9   : > { %10972 = vmatprep.mubr.msk.f32.mxu1 %vm309_vm1, %v4738_v6  ;;  %v6361_v6 = vld [vmem:[#allocation2 + $0x63] sm:$0xff] }
 0x4ac   : > { %10973 = vmatmul.mubr.msk.f32.gmra.mrb[34].mxu1 %vm309_vm1, %v4739_v29  ;;  %v6362_v29 = vld [vmem:[#allocation2 + $0x6b] sm:$0xff] }
 0x4ad   : > { %10977 = vmatprep.mubr.msk.f32.mxu1 %vm309_vm1, %v5491_v25  ;;  %v6363_v25 = vld [vmem:[#allocation2 + $0x73] sm:$0xff] }
 0x4b0   : > { %10978 = vmatmul.mubr.msk.f32.vlgmr.msra.gmra.mrb[0].mxu1 %vm309_vm1, %v5492_v57  ;;  %v6364_v57 = vld [vmem:[#allocation2 + $0x7b] sm:$0xff] }
 0x4b1   : > { %11032 = vmatpush3.msk.msra.mxu1 %vm418_vm0, %v13629_v32  ;;  %10980 = vmatprep.mubr.msk.f32.mxu1 %vm309_vm1, %v13677_v60  ;;  %v5508_v32 = vld [vmem:[#allocation2 + $0x8a] sm:$0xff] }
 0x4b2   : > { %11087 = vmatprep.subr.msk.mxu1 %vm418_vm0, %v13674_v58 }
 0x4b4   : > { %10981 = vmatmul.mubr.msk.f32.gmra.mrb[2].mxu1 %vm309_vm1, %v13685_v61 }
 0x4b5   : > { %10983 = vmatprep.mubr.msk.f32.mxu1 %vm309_vm1, %v13689_v2 }
 0x4b8   : > { %10984 = vmatmul.mubr.msk.f32.gmra.mrb[4].mxu1 %vm309_vm1, %v13693_v4 }
 0x4b9   : > { %10986 = vmatprep.mubr.msk.f32.mxu1 %vm309_vm1, %v13697_v9 }
 0x4bc   : > { %10987 = vmatmul.mubr.msk.f32.gmra.mrb[6].mxu1 %vm309_vm1, %v13701_v18 }
 0x4bd   : > { %10989 = vmatprep.mubr.msk.f32.mxu1 %vm309_vm1, %v13705_v20 }
 0x4c0   : > { %10990 = vmatmul.mubr.msk.f32.gmra.mrb[8].mxu1 %vm309_vm1, %v13709_v28 }
 0x4c1   : > { %10992 = vmatprep.mubr.msk.f32.mxu1 %vm309_vm1, %v13713_v30 }
 0x4c4   : > { %10993 = vmatmul.mubr.msk.f32.gmra.mrb[10].mxu1 %vm309_vm1, %v5502_v37 }
 0x4c5   : > { %10995 = vmatprep.mubr.msk.f32.mxu1 %vm309_vm1, %v5503_v59 }
 0x4c8   : > { %10996 = vmatmul.mubr.msk.f32.gmra.mrb[12].mxu1 %vm309_vm1, %v5504_v0 }
 0x4c9   : > { %10998 = vmatprep.mubr.msk.f32.mxu1 %vm309_vm1, %v5505_v14 }
 0x4cc   : > { %10999 = vmatmul.mubr.msk.f32.gmra.mrb[14].mxu1 %vm309_vm1, %v5506_v16 }
 0x4cd   : > { %11001 = vmatprep.mubr.msk.f32.mxu1 %vm309_vm1, %v5507_v27 }
 0x4d0   : > { %11002 = vmatmul.mubr.msk.f32.gmra.mrb[16].mxu1 %vm309_vm1, %v5508_v32 }
 0x4d1   : > { %11004 = vmatprep.mubr.msk.f32.mxu1 %vm309_vm1, %v5509_v42 }
 0x4d4   : > { %11005 = vmatmul.mubr.msk.f32.gmra.mrb[18].mxu1 %vm309_vm1, %v5510_v44 }
 0x4d5   : > { %11007 = vmatprep.mubr.msk.f32.mxu1 %vm309_vm1, %v5511_v15 }
 0x4d8   : > { %11008 = vmatmul.mubr.msk.f32.gmra.mrb[20].mxu1 %vm309_vm1, %v5512_v62 }
 0x4d9   : > { %11010 = vmatprep.mubr.msk.f32.mxu1 %vm309_vm1, %v5513_v19 }
 0x4dc   : > { %11011 = vmatmul.mubr.msk.f32.gmra.mrb[22].mxu1 %vm309_vm1, %v5514_v33 }
 0x4dd   : > { %11013 = vmatprep.mubr.msk.f32.mxu1 %vm309_vm1, %v5515_v54 }
 0x4e0   : > { %11014 = vmatmul.mubr.msk.f32.gmra.mrb[24].mxu1 %vm309_vm1, %v5516_v36 }
 0x4e1   : > { %11016 = vmatprep.mubr.msk.f32.mxu1 %vm309_vm1, %v5517_v24 }
 0x4e4   : > { %11017 = vmatmul.mubr.msk.f32.gmra.mrb[26].mxu1 %vm309_vm1, %v5518_v43 }
 0x4e5   : > { %11019 = vmatprep.mubr.msk.f32.mxu1 %vm309_vm1, %v5519_v17 }
 0x4e8   : > { %11020 = vmatmul.mubr.msk.f32.gmra.mrb[28].mxu1 %vm309_vm1, %v5520_v5 }
 0x4e9   : > { %11022 = vmatprep.mubr.msk.f32.mxu1 %vm309_vm1, %v5521_v22 }
 0x4ec   : > { %11023 = vmatmul.mubr.msk.f32.gmra.mrb[30].mxu1 %vm309_vm1, %v5522_v39 }
 0x4ed   : > { %11025 = vmatprep.mubr.msk.f32.mxu1 %vm309_vm1, %v5523_v38 }
 0x4f0   : > { %11026 = vmatmul.mubr.msk.f32.gmra.mrb[32].mxu1 %vm309_vm1, %v5524_v45 }
 0x4f1   : > { %11028 = vmatprep.mubr.msk.f32.mxu1 %vm309_vm1, %v5525_v8 }
 0x4f4   : > { %11029 = vmatmul.mubr.msk.f32.gmra.mrb[34].mxu1 %vm309_vm1, %v5526_v10 }
 0x4f5   : > { %11033 = vmatprep.mubr.msk.f32.mxu1 %vm309_vm1, %v13677_v60  ;;  %v6366_v60 = vld [vmem:[#allocation2 + $0x8b] sm:$0xff] }
 0x4f8   : > { %11034 = vmatmul.mubr.msk.f32.vlgmr.msra.gmra.mrb[0].mxu1 %vm309_vm1, %v13685_v61  ;;  %v6367_v61 = vld [vmem:[#allocation2 + $0x93] sm:$0xff] }
 0x4f9   : > { %11088 = vmatpush3.msk.msra.mxu1 %vm418_vm0, %v13674_v58  ;;  %11036 = vmatprep.mubr.msk.f32.mxu1 %vm309_vm1, %v13689_v2  ;;  %v6365_v58 = vld [vmem:[#allocation2 + $0x83] sm:$0xff]  ;;  %v6368_v2 = vld [vmem:[#allocation2 + $0x9b] sm:$0xff] }
 0x4fa   : > { %11143 = vmatprep.subr.msk.mxu1 %vm418_vm0, %v9539_v34 }
 0x4fc   : > { %11037 = vmatmul.mubr.msk.f32.gmra.mrb[2].mxu1 %vm309_vm1, %v13693_v4  ;;  %v6369_v4 = vld [vmem:[#allocation2 + $0xa3] sm:$0xff] }
 0x4fd   : > { %11039 = vmatprep.mubr.msk.f32.mxu1 %vm309_vm1, %v13697_v9  ;;  %v6370_v9 = vld [vmem:[#allocation2 + $0xab] sm:$0xff] }
 0x500   : > { %11040 = vmatmul.mubr.msk.f32.gmra.mrb[4].mxu1 %vm309_vm1, %v13701_v18  ;;  %v6371_v18 = vld [vmem:[#allocation2 + $0xb3] sm:$0xff] }
 0x501   : > { %11042 = vmatprep.mubr.msk.f32.mxu1 %vm309_vm1, %v13705_v20  ;;  %v6372_v20 = vld [vmem:[#allocation2 + $0xbb] sm:$0xff] }
 0x504   : > { %11043 = vmatmul.mubr.msk.f32.gmra.mrb[6].mxu1 %vm309_vm1, %v13709_v28  ;;  %v6373_v28 = vld [vmem:[#allocation2 + $0xc3] sm:$0xff] }
 0x505   : > { %11045 = vmatprep.mubr.msk.f32.mxu1 %vm309_vm1, %v13713_v30  ;;  %v6374_v30 = vld [vmem:[#allocation2 + $0xcb] sm:$0xff] }
 0x508   : > { %11046 = vmatmul.mubr.msk.f32.gmra.mrb[8].mxu1 %vm309_vm1, %v5502_v37  ;;  %v6375_v37 = vld [vmem:[#allocation2 + $0xd3] sm:$0xff] }
 0x509   : > { %11048 = vmatprep.mubr.msk.f32.mxu1 %vm309_vm1, %v5503_v59  ;;  %v6376_v59 = vld [vmem:[#allocation2 + $0xdb] sm:$0xff] }
 0x50c   : > { %11049 = vmatmul.mubr.msk.f32.gmra.mrb[10].mxu1 %vm309_vm1, %v5504_v0  ;;  %v6377_v0 = vld [vmem:[#allocation2 + $0xe3] sm:$0xff] }
 0x50d   : > { %11051 = vmatprep.mubr.msk.f32.mxu1 %vm309_vm1, %v5505_v14  ;;  %v6378_v14 = vld [vmem:[#allocation2 + $0xeb] sm:$0xff] }
 0x510   : > { %11052 = vmatmul.mubr.msk.f32.gmra.mrb[12].mxu1 %vm309_vm1, %v5506_v16  ;;  %v6379_v16 = vld [vmem:[#allocation2 + $0xf3] sm:$0xff] }
 0x511   : > { %11054 = vmatprep.mubr.msk.f32.mxu1 %vm309_vm1, %v5507_v27  ;;  %v6380_v27 = vld [vmem:[#allocation2 + $0xfb] sm:$0xff] }
 0x514   : > { %11055 = vmatmul.mubr.msk.f32.gmra.mrb[14].mxu1 %vm309_vm1, %v5508_v32  ;;  %v6381_v32 = vld [vmem:[#allocation2 + $0x103] sm:$0xff] }
 0x515   : > { %11057 = vmatprep.mubr.msk.f32.mxu1 %vm309_vm1, %v5509_v42  ;;  %v6382_v42 = vld [vmem:[#allocation2 + $0x10b] sm:$0xff] }
 0x518   : > { %11058 = vmatmul.mubr.msk.f32.gmra.mrb[16].mxu1 %vm309_vm1, %v5510_v44  ;;  %v6383_v44 = vld [vmem:[#allocation2 + $0x113] sm:$0xff] }
 0x519   : > { %11060 = vmatprep.mubr.msk.f32.mxu1 %vm309_vm1, %v5511_v15  ;;  %v6384_v15 = vld [vmem:[#allocation2 + $0x11b] sm:$0xff] }
 0x51c   : > { %11061 = vmatmul.mubr.msk.f32.gmra.mrb[18].mxu1 %vm309_vm1, %v5512_v62  ;;  %v6385_v62 = vld [vmem:[#allocation2 + $0x123] sm:$0xff] }
 0x51d   : > { %11063 = vmatprep.mubr.msk.f32.mxu1 %vm309_vm1, %v5513_v19  ;;  %v6386_v19 = vld [vmem:[#allocation2 + $0x12b] sm:$0xff] }
 0x520   : > { %11064 = vmatmul.mubr.msk.f32.gmra.mrb[20].mxu1 %vm309_vm1, %v5514_v33  ;;  %v6781_v33 = vld [vmem:[#allocation2 + $0x14] sm:$0xff] }
 0x521   : > { %11066 = vmatprep.mubr.msk.f32.mxu1 %vm309_vm1, %v5515_v54  ;;  %v6782_v54 = vld [vmem:[#allocation2 + $0x1c] sm:$0xff] }
 0x524   : > { %11067 = vmatmul.mubr.msk.f32.gmra.mrb[22].mxu1 %vm309_vm1, %v5516_v36  ;;  %v13841_v36 = vld [vmem:[%s14690_s2 + $0x1c] sm:$0xf] }
 0x525   : > { %11069 = vmatprep.mubr.msk.f32.mxu1 %vm309_vm1, %v5517_v24  ;;  %v13852_v24 = vld [vmem:[#allocation2 + $0x34] sm:$0xff] }
 0x528   : > { %11070 = vmatmul.mubr.msk.f32.gmra.mrb[24].mxu1 %vm309_vm1, %v5518_v43  ;;  %v13856_v43 = vld [vmem:[#allocation2 + $0x3c] sm:$0xff] }
 0x529   : > { %11072 = vmatprep.mubr.msk.f32.mxu1 %vm309_vm1, %v5519_v17  ;;  %v13860_v17 = vld [vmem:[#allocation2 + $0x44] sm:$0xff] }
 0x52c   : > { %11073 = vmatmul.mubr.msk.f32.gmra.mrb[26].mxu1 %vm309_vm1, %v5520_v5  ;;  %v13872_v5 = vld [vmem:[#allocation2 + $0x5c] sm:$0xff] }
 0x52d   : > { %11075 = vmatprep.mubr.msk.f32.mxu1 %vm309_vm1, %v5521_v22  ;;  %v13876_v22 = vld [vmem:[#allocation2 + $0x64] sm:$0xff] }
 0x530   : > { %11076 = vmatmul.mubr.msk.f32.gmra.mrb[28].mxu1 %vm309_vm1, %v5522_v39  ;;  %v13880_v39 = vld [vmem:[#allocation2 + $0x6c] sm:$0xff] }
 0x531   : > { %11078 = vmatprep.mubr.msk.f32.mxu1 %vm309_vm1, %v5523_v38  ;;  %v13884_v38 = vld [vmem:[#allocation2 + $0x74] sm:$0xff] }
 0x534   : > { %11079 = vmatmul.mubr.msk.f32.gmra.mrb[30].mxu1 %vm309_vm1, %v5524_v45  ;;  %v6794_v45 = vld [vmem:[#allocation2 + $0x7c] sm:$0xff] }
 0x535   : > { %11081 = vmatprep.mubr.msk.f32.mxu1 %vm309_vm1, %v5525_v8  ;;  %v6795_v8 = vld [vmem:[#allocation2 + $0x84] sm:$0xff] }
 0x538   : > { %11082 = vmatmul.mubr.msk.f32.gmra.mrb[32].mxu1 %vm309_vm1, %v5526_v10  ;;  %v6796_v10 = vld [vmem:[#allocation2 + $0x8c] sm:$0xff] }
 0x539   : > { %11084 = vmatprep.mubr.msk.f32.mxu1 %vm309_vm1, %v5955_v23  ;;  %v6798_v23 = vld [vmem:[#allocation2 + $0x9c] sm:$0xff] }
 0x53c   : > { %11085 = vmatmul.mubr.msk.f32.gmra.mrb[34].mxu1 %vm309_vm1, %v5956_v35  ;;  %v6799_v35 = vld [vmem:[#allocation2 + $0xa4] sm:$0xff] }
 0x53d   : > { %11089 = vmatprep.mubr.msk.f32.mxu1 %vm309_vm1, %v6351_v50  ;;  %v6800_v50 = vld [vmem:[#allocation2 + $0xac] sm:$0xff] }
 0x540   : > { %11090 = vmatmul.mubr.msk.f32.vlgmr.msra.gmra.mrb[0].mxu1 %vm309_vm1, %v6352_v41  ;;  %v6801_v41 = vld [vmem:[#allocation2 + $0xb4] sm:$0xff] }
 0x541   : > { %11144 = vmatpush3.msk.msra.mxu1 %vm418_vm0, %v9539_v34  ;;  %11092 = vmatprep.mubr.msk.f32.mxu1 %vm309_vm1, %v6353_v31  ;;  %v6797_v34 = vld [vmem:[#allocation2 + $0x94] sm:$0xff]  ;;  %v6803_v31 = vld [vmem:[#allocation2 + $0xc4] sm:$0xff] }
 0x542   : > { %11199 = vmatprep.subr.msk.mxu1 %vm418_vm0, %v13797_v52 }
 0x544   : > { %11093 = vmatmul.mubr.msk.f32.gmra.mrb[2].mxu1 %vm309_vm1, %v6354_v13  ;;  %v6804_v13 = vld [vmem:[#allocation2 + $0xcc] sm:$0xff] }
 0x545   : > { %11095 = vmatprep.mubr.msk.f32.mxu1 %vm309_vm1, %v6355_v53  ;;  %v6805_v53 = vld [vmem:[#allocation2 + $0xd4] sm:$0xff] }
 0x548   : > { %11096 = vmatmul.mubr.msk.f32.gmra.mrb[4].mxu1 %vm309_vm1, %v6356_v1  ;;  %v6806_v1 = vld [vmem:[#allocation2 + $0xdc] sm:$0xff] }
 0x549   : > { %11098 = vmatprep.mubr.msk.f32.mxu1 %vm309_vm1, %v6357_v11  ;;  %v6807_v11 = vld [vmem:[#allocation2 + $0xe4] sm:$0xff] }
 0x54c   : > { %11099 = vmatmul.mubr.msk.f32.gmra.mrb[6].mxu1 %vm309_vm1, %v6358_v26  ;;  %v6808_v26 = vld [vmem:[#allocation2 + $0xec] sm:$0xff] }
 0x54d   : > { %11101 = vmatprep.mubr.msk.f32.mxu1 %vm309_vm1, %v6359_v21  ;;  %v6809_v21 = vld [vmem:[#allocation2 + $0xf4] sm:$0xff] }
 0x550   : > { %11102 = vmatmul.mubr.msk.f32.gmra.mrb[8].mxu1 %vm309_vm1, %v6360_v63  ;;  %v6810_v63 = vld [vmem:[#allocation2 + $0xfc] sm:$0xff] }
 0x551   : > { %11104 = vmatprep.mubr.msk.f32.mxu1 %vm309_vm1, %v6361_v6  ;;  %v6811_v6 = vld [vmem:[#allocation2 + $0x104] sm:$0xff] }
 0x554   : > { %11105 = vmatmul.mubr.msk.f32.gmra.mrb[10].mxu1 %vm309_vm1, %v6362_v29  ;;  %v6812_v29 = vld [vmem:[#allocation2 + $0x10c] sm:$0xff] }
 0x555   : > { %11107 = vmatprep.mubr.msk.f32.mxu1 %vm309_vm1, %v6363_v25  ;;  %v6813_v25 = vld [vmem:[#allocation2 + $0x114] sm:$0xff] }
 0x558   : > { %11108 = vmatmul.mubr.msk.f32.gmra.mrb[12].mxu1 %vm309_vm1, %v6364_v57  ;;  %v6814_v57 = vld [vmem:[#allocation2 + $0x11c] sm:$0xff] }
 0x559   : > { %11110 = vmatprep.mubr.msk.f32.mxu1 %vm309_vm1, %v6365_v58  ;;  %v6815_v58 = vld [vmem:[#allocation2 + $0x124] sm:$0xff] }
 0x55c   : > { %11111 = vmatmul.mubr.msk.f32.gmra.mrb[14].mxu1 %vm309_vm1, %v6366_v60  ;;  %v6816_v60 = vld [vmem:[#allocation2 + $0x12c] sm:$0xff] }
 0x55d   : > { %11113 = vmatprep.mubr.msk.f32.mxu1 %vm309_vm1, %v6367_v61  ;;  %v7211_v61 = vld [vmem:[#allocation2 + $0x24] sm:$0xff] }
 0x560   : > { %11114 = vmatmul.mubr.msk.f32.gmra.mrb[16].mxu1 %vm309_vm1, %v6368_v2  ;;  %v7212_v2 = vld [vmem:[#allocation2 + $0x2c] sm:$0xff] }
 0x561   : > { %11116 = vmatprep.mubr.msk.f32.mxu1 %vm309_vm1, %v6369_v4  ;;  %v9653_v4 = vld [vmem:[%s14690_s2 + $0x20] sm:$0xf] }
 0x564   : > { %11117 = vmatmul.mubr.msk.f32.gmra.mrb[18].mxu1 %vm309_vm1, %v6370_v9  ;;  %v7245_v9 = vld [vmem:[#allocation2 + $0x134] sm:$0xff] }
 0x565   : > { %11119 = vmatprep.mubr.msk.f32.mxu1 %vm309_vm1, %v6371_v18  ;;  %v7246_v18 = vld [vmem:[#allocation2 + $0x13c] sm:$0xff] }
 0x568   : > { %11120 = vmatmul.mubr.msk.f32.gmra.mrb[20].mxu1 %vm309_vm1, %v6372_v20  ;;  %v7641_v20 = vld [vmem:[#allocation2 + $0x25] sm:$0xff] }
 0x569   : > { %11122 = vmatprep.mubr.msk.f32.mxu1 %vm309_vm1, %v6373_v28  ;;  %v7642_v28 = vld [vmem:[#allocation2 + $0x2d] sm:$0xff] }
 0x56c   : > { %11123 = vmatmul.mubr.msk.f32.gmra.mrb[22].mxu1 %vm309_vm1, %v6374_v30  ;;  %v7643_v30 = vld [vmem:[#allocation2 + $0x35] sm:$0xff] }
 0x56d   : > { %11125 = vmatprep.mubr.msk.f32.mxu1 %vm309_vm1, %v6375_v37  ;;  %v7644_v37 = vld [vmem:[#allocation2 + $0x3d] sm:$0xff] }
 0x570   : > { %11126 = vmatmul.mubr.msk.f32.gmra.mrb[24].mxu1 %vm309_vm1, %v6376_v59  ;;  %v7645_v59 = vld [vmem:[#allocation2 + $0x45] sm:$0xff] }
 0x571   : > { %11128 = vmatprep.mubr.msk.f32.mxu1 %vm309_vm1, %v6377_v0  ;;  %v7646_v0 = vld [vmem:[#allocation2 + $0x4d] sm:$0xff] }
 0x574   : > { %11129 = vmatmul.mubr.msk.f32.gmra.mrb[26].mxu1 %vm309_vm1, %v6378_v14  ;;  %v7647_v14 = vld [vmem:[#allocation2 + $0x55] sm:$0xff] }
 0x575   : > { %11131 = vmatprep.mubr.msk.f32.mxu1 %vm309_vm1, %v6379_v16  ;;  %v7648_v16 = vld [vmem:[#allocation2 + $0x5d] sm:$0xff] }
 0x578   : > { %11132 = vmatmul.mubr.msk.f32.gmra.mrb[28].mxu1 %vm309_vm1, %v6380_v27  ;;  %v7649_v27 = vld [vmem:[#allocation2 + $0x65] sm:$0xff] }
 0x579   : > { %11134 = vmatprep.mubr.msk.f32.mxu1 %vm309_vm1, %v6381_v32  ;;  %v7650_v32 = vld [vmem:[#allocation2 + $0x6d] sm:$0xff] }
 0x57c   : > { %11135 = vmatmul.mubr.msk.f32.gmra.mrb[30].mxu1 %vm309_vm1, %v6382_v42  ;;  %v7651_v42 = vld [vmem:[#allocation2 + $0x75] sm:$0xff] }
 0x57d   : > { %11137 = vmatprep.mubr.msk.f32.mxu1 %vm309_vm1, %v6383_v44  ;;  %v7652_v44 = vld [vmem:[#allocation2 + $0x7d] sm:$0xff] }
 0x580   : > { %11138 = vmatmul.mubr.msk.f32.gmra.mrb[32].mxu1 %vm309_vm1, %v6384_v15  ;;  %v7653_v15 = vld [vmem:[#allocation2 + $0x85] sm:$0xff] }
 0x581   : > { %11140 = vmatprep.mubr.msk.f32.mxu1 %vm309_vm1, %v6385_v62  ;;  %v7654_v62 = vld [vmem:[#allocation2 + $0x8d] sm:$0xff] }
 0x584   : > { %11141 = vmatmul.mubr.msk.f32.gmra.mrb[34].mxu1 %vm309_vm1, %v6386_v19  ;;  %v7655_v19 = vld [vmem:[#allocation2 + $0x95] sm:$0xff] }
 0x585   : > { %11145 = vmatprep.mubr.msk.f32.mxu1 %vm309_vm1, %v6781_v33  ;;  %v7656_v33 = vld [vmem:[#allocation2 + $0x9d] sm:$0xff] }
 0x588   : > { %11146 = vmatmul.mubr.msk.f32.vlgmr.msra.gmra.mrb[0].mxu1 %vm309_vm1, %v6782_v54  ;;  %v7657_v54 = vld [vmem:[#allocation2 + $0xa5] sm:$0xff] }
 0x589   : > { %11200 = vmatpush3.msk.msra.mxu1 %vm418_vm0, %v13797_v52  ;;  %11148 = vmatprep.mubr.msk.f32.mxu1 %vm309_vm1, %v13547_v40  ;;  %v13864_v40 = vld [vmem:[#allocation2 + $0x4c] sm:$0xff]  ;;  %v6802_v52 = vld [vmem:[#allocation2 + $0xbc] sm:$0xff] }
 0x58a   : > { %11255 = vmatprep.subr.msk.mxu1 %vm418_vm0, %v13841_v36 }
 0x58c   : > { %11149 = vmatmul.mubr.msk.f32.gmra.mrb[2].mxu1 %vm309_vm1, %v13531_v56  ;;  %v13868_v56 = vld [vmem:[#allocation2 + $0x54] sm:$0xff] }
 0x58d   : > { %11151 = vmatprep.mubr.msk.f32.mxu1 %vm309_vm1, %v13852_v24 }
 0x590   : > { %11152 = vmatmul.mubr.msk.f32.gmra.mrb[4].mxu1 %vm309_vm1, %v13856_v43 }
 0x591   : > { %11154 = vmatprep.mubr.msk.f32.mxu1 %vm309_vm1, %v13860_v17 }
 0x594   : > { %11155 = vmatmul.mubr.msk.f32.gmra.mrb[6].mxu1 %vm309_vm1, %v13864_v40 }
 0x595   : > { %11157 = vmatprep.mubr.msk.f32.mxu1 %vm309_vm1, %v13868_v56 }
 0x598   : > { %11158 = vmatmul.mubr.msk.f32.gmra.mrb[8].mxu1 %vm309_vm1, %v13872_v5 }
 0x599   : > { %11160 = vmatprep.mubr.msk.f32.mxu1 %vm309_vm1, %v13876_v22 }
 0x59c   : > { %11161 = vmatmul.mubr.msk.f32.gmra.mrb[10].mxu1 %vm309_vm1, %v13880_v39 }
 0x59d   : > { %11163 = vmatprep.mubr.msk.f32.mxu1 %vm309_vm1, %v13884_v38 }
 0x5a0   : > { %11164 = vmatmul.mubr.msk.f32.gmra.mrb[12].mxu1 %vm309_vm1, %v6794_v45 }
 0x5a1   : > { %11166 = vmatprep.mubr.msk.f32.mxu1 %vm309_vm1, %v6795_v8 }
 0x5a4   : > { %11167 = vmatmul.mubr.msk.f32.gmra.mrb[14].mxu1 %vm309_vm1, %v6796_v10 }
 0x5a5   : > { %11169 = vmatprep.mubr.msk.f32.mxu1 %vm309_vm1, %v6797_v34 }
 0x5a8   : > { %11170 = vmatmul.mubr.msk.f32.gmra.mrb[16].mxu1 %vm309_vm1, %v6798_v23 }
 0x5a9   : > { %11172 = vmatprep.mubr.msk.f32.mxu1 %vm309_vm1, %v6799_v35 }
 0x5ac   : > { %11173 = vmatmul.mubr.msk.f32.gmra.mrb[18].mxu1 %vm309_vm1, %v6800_v50 }
 0x5ad   : > { %11175 = vmatprep.mubr.msk.f32.mxu1 %vm309_vm1, %v6801_v41 }
 0x5b0   : > { %11176 = vmatmul.mubr.msk.f32.gmra.mrb[20].mxu1 %vm309_vm1, %v6802_v52 }
 0x5b1   : > { %11178 = vmatprep.mubr.msk.f32.mxu1 %vm309_vm1, %v6803_v31 }
 0x5b4   : > { %11179 = vmatmul.mubr.msk.f32.gmra.mrb[22].mxu1 %vm309_vm1, %v6804_v13 }
 0x5b5   : > { %11181 = vmatprep.mubr.msk.f32.mxu1 %vm309_vm1, %v6805_v53 }
 0x5b8   : > { %11182 = vmatmul.mubr.msk.f32.gmra.mrb[24].mxu1 %vm309_vm1, %v6806_v1 }
 0x5b9   : > { %11184 = vmatprep.mubr.msk.f32.mxu1 %vm309_vm1, %v6807_v11 }
 0x5bc   : > { %11185 = vmatmul.mubr.msk.f32.gmra.mrb[26].mxu1 %vm309_vm1, %v6808_v26 }
 0x5bd   : > { %11187 = vmatprep.mubr.msk.f32.mxu1 %vm309_vm1, %v6809_v21 }
 0x5c0   : > { %11188 = vmatmul.mubr.msk.f32.gmra.mrb[28].mxu1 %vm309_vm1, %v6810_v63 }
 0x5c1   : > { %11190 = vmatprep.mubr.msk.f32.mxu1 %vm309_vm1, %v6811_v6 }
 0x5c4   : > { %11191 = vmatmul.mubr.msk.f32.gmra.mrb[30].mxu1 %vm309_vm1, %v6812_v29 }
 0x5c5   : > { %11193 = vmatprep.mubr.msk.f32.mxu1 %vm309_vm1, %v6813_v25 }
 0x5c8   : > { %11194 = vmatmul.mubr.msk.f32.gmra.mrb[32].mxu1 %vm309_vm1, %v6814_v57 }
 0x5c9   : > { %11196 = vmatprep.mubr.msk.f32.mxu1 %vm309_vm1, %v6815_v58 }
 0x5cc   : > { %11197 = vmatmul.mubr.msk.f32.gmra.mrb[34].mxu1 %vm309_vm1, %v6816_v60 }
 0x5cd   : > { %11201 = vmatprep.mubr.msk.f32.mxu1 %vm309_vm1, %v7211_v61  ;;  %v8085_v61 = vld [vmem:[#allocation2 + $0x96] sm:$0xff] }
 0x5d0   : > { %11202 = vmatmul.mubr.msk.f32.vlgmr.msra.gmra.mrb[0].mxu1 %vm309_vm1, %v7212_v2  ;;  %v8086_v2 = vld [vmem:[#allocation2 + $0x9e] sm:$0xff] }
 0x5d1   : > { %11256 = vmatpush3.msk.msra.mxu1 %vm418_vm0, %v13841_v36  ;;  %11204 = vmatprep.mubr.msk.f32.mxu1 %vm309_vm1, %v13852_v24  ;;  %v7658_v36 = vld [vmem:[#allocation2 + $0xad] sm:$0xff]  ;;  %v7659_v24 = vld [vmem:[#allocation2 + $0xb5] sm:$0xff] }
 0x5d2   : > { %11311 = vmatprep.subr.msk.mxu1 %vm418_vm0, %v9653_v4 }
 0x5d4   : > { %11205 = vmatmul.mubr.msk.f32.gmra.mrb[2].mxu1 %vm309_vm1, %v13856_v43  ;;  %v7660_v43 = vld [vmem:[#allocation2 + $0xbd] sm:$0xff] }
 0x5d5   : > { %11207 = vmatprep.mubr.msk.f32.mxu1 %vm309_vm1, %v13860_v17  ;;  %v7661_v17 = vld [vmem:[#allocation2 + $0xc5] sm:$0xff] }
 0x5d8   : > { %11208 = vmatmul.mubr.msk.f32.gmra.mrb[4].mxu1 %vm309_vm1, %v13864_v40  ;;  %v7662_v40 = vld [vmem:[#allocation2 + $0xcd] sm:$0xff] }
 0x5d9   : > { %11210 = vmatprep.mubr.msk.f32.mxu1 %vm309_vm1, %v13868_v56  ;;  %v7663_v56 = vld [vmem:[#allocation2 + $0xd5] sm:$0xff] }
 0x5dc   : > { %11211 = vmatmul.mubr.msk.f32.gmra.mrb[6].mxu1 %vm309_vm1, %v13872_v5  ;;  %v7664_v5 = vld [vmem:[#allocation2 + $0xdd] sm:$0xff] }
 0x5dd   : > { %11213 = vmatprep.mubr.msk.f32.mxu1 %vm309_vm1, %v13876_v22  ;;  %v7665_v22 = vld [vmem:[#allocation2 + $0xe5] sm:$0xff] }
 0x5e0   : > { %11214 = vmatmul.mubr.msk.f32.gmra.mrb[8].mxu1 %vm309_vm1, %v13880_v39  ;;  %v7666_v39 = vld [vmem:[#allocation2 + $0xed] sm:$0xff] }
 0x5e1   : > { %11216 = vmatprep.mubr.msk.f32.mxu1 %vm309_vm1, %v13884_v38  ;;  %v7667_v38 = vld [vmem:[#allocation2 + $0xf5] sm:$0xff] }
 0x5e4   : > { %11217 = vmatmul.mubr.msk.f32.gmra.mrb[10].mxu1 %vm309_vm1, %v6794_v45  ;;  %v7668_v45 = vld [vmem:[#allocation2 + $0xfd] sm:$0xff] }
 0x5e5   : > { %11219 = vmatprep.mubr.msk.f32.mxu1 %vm309_vm1, %v6795_v8  ;;  %v7669_v8 = vld [vmem:[#allocation2 + $0x105] sm:$0xff] }
 0x5e8   : > { %11220 = vmatmul.mubr.msk.f32.gmra.mrb[12].mxu1 %vm309_vm1, %v6796_v10  ;;  %v7670_v10 = vld [vmem:[#allocation2 + $0x10d] sm:$0xff] }
 0x5e9   : > { %11222 = vmatprep.mubr.msk.f32.mxu1 %vm309_vm1, %v6797_v34  ;;  %v7671_v34 = vld [vmem:[#allocation2 + $0x115] sm:$0xff] }
 0x5ec   : > { %11223 = vmatmul.mubr.msk.f32.gmra.mrb[14].mxu1 %vm309_vm1, %v6798_v23  ;;  %v7672_v23 = vld [vmem:[#allocation2 + $0x11d] sm:$0xff] }
 0x5ed   : > { %11225 = vmatprep.mubr.msk.f32.mxu1 %vm309_vm1, %v6799_v35  ;;  %v7673_v35 = vld [vmem:[#allocation2 + $0x125] sm:$0xff] }
 0x5f0   : > { %11226 = vmatmul.mubr.msk.f32.gmra.mrb[16].mxu1 %vm309_vm1, %v6800_v50  ;;  %v7674_v50 = vld [vmem:[#allocation2 + $0x12d] sm:$0xff] }
 0x5f1   : > { %11228 = vmatprep.mubr.msk.f32.mxu1 %vm309_vm1, %v6801_v41  ;;  %v7675_v41 = vld [vmem:[#allocation2 + $0x135] sm:$0xff] }
 0x5f4   : > { %11229 = vmatmul.mubr.msk.f32.gmra.mrb[18].mxu1 %vm309_vm1, %v6802_v52  ;;  %v7676_v52 = vld [vmem:[#allocation2 + $0x13d] sm:$0xff] }
 0x5f5   : > { %11231 = vmatprep.mubr.msk.f32.mxu1 %vm309_vm1, %v6803_v31  ;;  %v8071_v31 = vld [vmem:[#allocation2 + $0x26] sm:$0xff] }
 0x5f8   : > { %11232 = vmatmul.mubr.msk.f32.gmra.mrb[20].mxu1 %vm309_vm1, %v6804_v13  ;;  %v8072_v13 = vld [vmem:[#allocation2 + $0x2e] sm:$0xff] }
 0x5f9   : > { %11234 = vmatprep.mubr.msk.f32.mxu1 %vm309_vm1, %v6805_v53  ;;  %v8073_v53 = vld [vmem:[#allocation2 + $0x36] sm:$0xff] }
 0x5fc   : > { %11235 = vmatmul.mubr.msk.f32.gmra.mrb[22].mxu1 %vm309_vm1, %v6806_v1  ;;  %v8074_v1 = vld [vmem:[#allocation2 + $0x3e] sm:$0xff] }
 0x5fd   : > { %11237 = vmatprep.mubr.msk.f32.mxu1 %vm309_vm1, %v6807_v11  ;;  %v8075_v11 = vld [vmem:[#allocation2 + $0x46] sm:$0xff] }
 0x600   : > { %11238 = vmatmul.mubr.msk.f32.gmra.mrb[24].mxu1 %vm309_vm1, %v6808_v26  ;;  %v8076_v26 = vld [vmem:[#allocation2 + $0x4e] sm:$0xff] }
 0x601   : > { %11240 = vmatprep.mubr.msk.f32.mxu1 %vm309_vm1, %v6809_v21  ;;  %v8077_v21 = vld [vmem:[#allocation2 + $0x56] sm:$0xff] }
 0x604   : > { %11241 = vmatmul.mubr.msk.f32.gmra.mrb[26].mxu1 %vm309_vm1, %v6810_v63  ;;  %v8078_v63 = vld [vmem:[#allocation2 + $0x5e] sm:$0xff] }
 0x605   : > { %11243 = vmatprep.mubr.msk.f32.mxu1 %vm309_vm1, %v6811_v6  ;;  %v8079_v6 = vld [vmem:[#allocation2 + $0x66] sm:$0xff] }
 0x608   : > { %11244 = vmatmul.mubr.msk.f32.gmra.mrb[28].mxu1 %vm309_vm1, %v6812_v29  ;;  %v8080_v29 = vld [vmem:[#allocation2 + $0x6e] sm:$0xff] }
 0x609   : > { %11246 = vmatprep.mubr.msk.f32.mxu1 %vm309_vm1, %v6813_v25  ;;  %v8081_v25 = vld [vmem:[#allocation2 + $0x76] sm:$0xff] }
 0x60c   : > { %11247 = vmatmul.mubr.msk.f32.gmra.mrb[30].mxu1 %vm309_vm1, %v6814_v57  ;;  %v8082_v57 = vld [vmem:[#allocation2 + $0x7e] sm:$0xff] }
 0x60d   : > { %11249 = vmatprep.mubr.msk.f32.mxu1 %vm309_vm1, %v6815_v58  ;;  %v8083_v58 = vld [vmem:[#allocation2 + $0x86] sm:$0xff] }
 0x610   : > { %11250 = vmatmul.mubr.msk.f32.gmra.mrb[32].mxu1 %vm309_vm1, %v6816_v60  ;;  %v8084_v60 = vld [vmem:[#allocation2 + $0x8e] sm:$0xff] }
 0x611   : > { %11252 = vmatprep.mubr.msk.f32.mxu1 %vm309_vm1, %v7245_v9  ;;  %v8088_v9 = vld [vmem:[#allocation2 + $0xae] sm:$0xff] }
 0x614   : > { %11253 = vmatmul.mubr.msk.f32.gmra.mrb[34].mxu1 %vm309_vm1, %v7246_v18  ;;  %v8089_v18 = vld [vmem:[#allocation2 + $0xb6] sm:$0xff] }
 0x615   : > { %11257 = vmatprep.mubr.msk.f32.mxu1 %vm309_vm1, %v7641_v20  ;;  %v8090_v20 = vld [vmem:[#allocation2 + $0xbe] sm:$0xff] }
 0x618   : > { %11258 = vmatmul.mubr.msk.f32.vlgmr.msra.gmra.mrb[0].mxu1 %vm309_vm1, %v7642_v28  ;;  %v8091_v28 = vld [vmem:[#allocation2 + $0xc6] sm:$0xff] }
 0x619   : > { %11312 = vmatpush3.msk.msra.mxu1 %vm418_vm0, %v9653_v4  ;;  %11260 = vmatprep.mubr.msk.f32.mxu1 %vm309_vm1, %v7643_v30  ;;  %v8087_v4 = vld [vmem:[#allocation2 + $0xa6] sm:$0xff]  ;;  %v8092_v30 = vld [vmem:[#allocation2 + $0xce] sm:$0xff] }
 0x61c   : > { %11261 = vmatmul.mubr.msk.f32.gmra.mrb[2].mxu1 %vm309_vm1, %v7644_v37  ;;  %v8093_v37 = vld [vmem:[#allocation2 + $0xd6] sm:$0xff] }
 0x61d   : > { %11263 = vmatprep.mubr.msk.f32.mxu1 %vm309_vm1, %v7645_v59  ;;  %v8094_v59 = vld [vmem:[#allocation2 + $0xde] sm:$0xff] }
 0x620   : > { %11264 = vmatmul.mubr.msk.f32.gmra.mrb[4].mxu1 %vm309_vm1, %v7646_v0  ;;  %v8095_v0 = vld [vmem:[#allocation2 + $0xe6] sm:$0xff] }
 0x621   : > { %11266 = vmatprep.mubr.msk.f32.mxu1 %vm309_vm1, %v7647_v14  ;;  %v8096_v14 = vld [vmem:[#allocation2 + $0xee] sm:$0xff] }
 0x624   : > { %11267 = vmatmul.mubr.msk.f32.gmra.mrb[6].mxu1 %vm309_vm1, %v7648_v16  ;;  %v8097_v16 = vld [vmem:[#allocation2 + $0xf6] sm:$0xff] }
 0x625   : > { %11269 = vmatprep.mubr.msk.f32.mxu1 %vm309_vm1, %v7649_v27  ;;  %v8098_v27 = vld [vmem:[#allocation2 + $0xfe] sm:$0xff] }
 0x628   : > { %11270 = vmatmul.mubr.msk.f32.gmra.mrb[8].mxu1 %vm309_vm1, %v7650_v32  ;;  %v8099_v32 = vld [vmem:[#allocation2 + $0x106] sm:$0xff] }
 0x629   : > { %11272 = vmatprep.mubr.msk.f32.mxu1 %vm309_vm1, %v7651_v42  ;;  %v8102_v42 = vld [vmem:[#allocation2 + $0x11e] sm:$0xff] }
 0x62c   : > { %11273 = vmatmul.mubr.msk.f32.gmra.mrb[10].mxu1 %vm309_vm1, %v7652_v44  ;;  %v8103_v44 = vld [vmem:[#allocation2 + $0x126] sm:$0xff] }
 0x62d   : > { %11275 = vmatprep.mubr.msk.f32.mxu1 %vm309_vm1, %v7653_v15  ;;  %v8104_v15 = vld [vmem:[#allocation2 + $0x12e] sm:$0xff] }
 0x630   : > { %11276 = vmatmul.mubr.msk.f32.gmra.mrb[12].mxu1 %vm309_vm1, %v7654_v62  ;;  %v8105_v62 = vld [vmem:[#allocation2 + $0x136] sm:$0xff] }
 0x631   : > { %11278 = vmatprep.mubr.msk.f32.mxu1 %vm309_vm1, %v7655_v19  ;;  %v8106_v19 = vld [vmem:[#allocation2 + $0x13e] sm:$0xff] }
 0x634   : > { %11279 = vmatmul.mubr.msk.f32.gmra.mrb[14].mxu1 %vm309_vm1, %v7656_v33 }
 0x635   : > { %11281 = vmatprep.mubr.msk.f32.mxu1 %vm309_vm1, %v7657_v54 }
 0x638   : > { %11282 = vmatmul.mubr.msk.f32.gmra.mrb[16].mxu1 %vm309_vm1, %v7658_v36 }
 0x639   : > { %11284 = vmatprep.mubr.msk.f32.mxu1 %vm309_vm1, %v7659_v24 }
 0x63c   : > { %11285 = vmatmul.mubr.msk.f32.gmra.mrb[18].mxu1 %vm309_vm1, %v7660_v43 }
 0x63d   : > { %11287 = vmatprep.mubr.msk.f32.mxu1 %vm309_vm1, %v7661_v17 }
 0x640   : > { %11288 = vmatmul.mubr.msk.f32.gmra.mrb[20].mxu1 %vm309_vm1, %v7662_v40 }
 0x641   : > { %11290 = vmatprep.mubr.msk.f32.mxu1 %vm309_vm1, %v7663_v56 }
 0x644   : > { %11291 = vmatmul.mubr.msk.f32.gmra.mrb[22].mxu1 %vm309_vm1, %v7664_v5 }
 0x645   : > { %11293 = vmatprep.mubr.msk.f32.mxu1 %vm309_vm1, %v7665_v22 }
 0x648   : > { %11294 = vmatmul.mubr.msk.f32.gmra.mrb[24].mxu1 %vm309_vm1, %v7666_v39 }
 0x649   : > { %11296 = vmatprep.mubr.msk.f32.mxu1 %vm309_vm1, %v7667_v38 }
 0x64c   : > { %11297 = vmatmul.mubr.msk.f32.gmra.mrb[26].mxu1 %vm309_vm1, %v7668_v45 }
 0x64d   : > { %11299 = vmatprep.mubr.msk.f32.mxu1 %vm309_vm1, %v7669_v8 }
 0x650   : > { %11300 = vmatmul.mubr.msk.f32.gmra.mrb[28].mxu1 %vm309_vm1, %v7670_v10 }
 0x651   : > { %11302 = vmatprep.mubr.msk.f32.mxu1 %vm309_vm1, %v7671_v34  ;;  %v14810_v34 = vld [vmem:[#allocation3_spill] sm:$0xff] }
 0x654   : > { %11303 = vmatmul.mubr.msk.f32.gmra.mrb[30].mxu1 %vm309_vm1, %v7672_v23 }
 0x655   : > { %11305 = vmatprep.mubr.msk.f32.mxu1 %vm309_vm1, %v7673_v35 }
 0x658   : > { %11306 = vmatmul.mubr.msk.f32.gmra.mrb[32].mxu1 %vm309_vm1, %v7674_v50 }
 0x659   : > { %11308 = vmatprep.mubr.msk.f32.mxu1 %vm309_vm1, %v7675_v41 }
 0x65c   : > { %11309 = vmatmul.mubr.msk.f32.gmra.mrb[34].mxu1 %vm309_vm1, %v7676_v52 }
 0x65d   : > { %11313 = vmatprep.mubr.msk.f32.mxu1 %vm309_vm1, %v8071_v31 }
 0x660   : > { %11314 = vmatmul.mubr.msk.f32.vlgmr.msra.gmra.mrb[0].mxu1 %vm309_vm1, %v8072_v13 }
 0x661   : > { %11316 = vmatprep.mubr.msk.f32.mxu1 %vm309_vm1, %v8073_v53  ;;  %v14811_v53 = vld [vmem:[#allocation5_spill] sm:$0xff] }
 0x664   : > { %11317 = vmatmul.mubr.msk.f32.gmra.mrb[2].mxu1 %vm309_vm1, %v8074_v1 }
 0x665   : > { %11319 = vmatprep.mubr.msk.f32.mxu1 %vm309_vm1, %v8075_v11  ;;  %v14812_v11 = vld [vmem:[#allocation4_spill] sm:$0xff] }
 0x668   : > { %11320 = vmatmul.mubr.msk.f32.gmra.mrb[4].mxu1 %vm309_vm1, %v8076_v26 }
 0x669   : > { %11322 = vmatprep.mubr.msk.f32.mxu1 %vm309_vm1, %v8077_v21 }
 0x66c   : > { %11323 = vmatmul.mubr.msk.f32.gmra.mrb[6].mxu1 %vm309_vm1, %v8078_v63 }
 0x66d   : > { %11325 = vmatprep.mubr.msk.f32.mxu1 %vm309_vm1, %v8079_v6 }
 0x670   : > { %11326 = vmatmul.mubr.msk.f32.gmra.mrb[8].mxu1 %vm309_vm1, %v8080_v29 }
 0x671   : > { %11328 = vmatprep.mubr.msk.f32.mxu1 %vm309_vm1, %v8081_v25 }
 0x674   : > { %11329 = vmatmul.mubr.msk.f32.gmra.mrb[10].mxu1 %vm309_vm1, %v8082_v57 }
 0x675   : > { %11331 = vmatprep.mubr.msk.f32.mxu1 %vm309_vm1, %v8083_v58  ;;  %v14813_v58 = vld [vmem:[#allocation7_spill] sm:$0xff] }
 0x678   : > { %11332 = vmatmul.mubr.msk.f32.gmra.mrb[12].mxu1 %vm309_vm1, %v8084_v60 }
 0x679   : > { %11334 = vmatprep.mubr.msk.f32.mxu1 %vm309_vm1, %v8085_v61  ;;  %v14814_v61 = vld [vmem:[#allocation6_spill] sm:$0xff] }
 0x67c   : > { %11335 = vmatmul.mubr.msk.f32.gmra.mrb[14].mxu1 %vm309_vm1, %v8086_v2 }
 0x67d   : > { %11337 = vmatprep.mubr.msk.f32.mxu1 %vm309_vm1, %v8087_v4 }
 0x680   : > { %11338 = vmatmul.mubr.msk.f32.gmra.mrb[16].mxu1 %vm309_vm1, %v8088_v9 }
 0x681   : > { %11340 = vmatprep.mubr.msk.f32.mxu1 %vm309_vm1, %v8089_v18 }
 0x684   : > { %11341 = vmatmul.mubr.msk.f32.gmra.mrb[18].mxu1 %vm309_vm1, %v8090_v20 }
 0x685   : > { %11343 = vmatprep.mubr.msk.f32.mxu1 %vm309_vm1, %v8091_v28 }
 0x688   : > { %11344 = vmatmul.mubr.msk.f32.gmra.mrb[20].mxu1 %vm309_vm1, %v8092_v30 }
 0x689   : > { %11346 = vmatprep.mubr.msk.f32.mxu1 %vm309_vm1, %v8093_v37  ;;  %v14815_v37 = vld [vmem:[#allocation9_spill] sm:$0xff] }
 0x68c   : > { %11347 = vmatmul.mubr.msk.f32.gmra.mrb[22].mxu1 %vm309_vm1, %v8094_v59 }
 0x68d   : > { %11349 = vmatprep.mubr.msk.f32.mxu1 %vm309_vm1, %v8095_v0  ;;  %v14816_v0 = vld [vmem:[#allocation8_spill] sm:$0xff] }
 0x690   : > { %11350 = vmatmul.mubr.msk.f32.gmra.mrb[24].mxu1 %vm309_vm1, %v8096_v14 }
 0x691   : > { %11352 = vmatprep.mubr.msk.f32.mxu1 %vm309_vm1, %v8097_v16 }
 0x694   : > { %11353 = vmatmul.mubr.msk.f32.gmra.mrb[26].mxu1 %vm309_vm1, %v8098_v27 }
 0x695   : > { %11355 = vmatprep.mubr.msk.f32.mxu1 %vm309_vm1, %v8099_v32 }
 0x698   : > { %11356 = vmatmul.mubr.msk.f32.gmra.mrb[28].mxu1 %vm309_vm1, %v13603_v55 }
 0x699   : > { %11358 = vmatprep.mubr.msk.f32.mxu1 %vm309_vm1, %v13613_v12 }
 0x69c   : > { %11359 = vmatmul.mubr.msk.f32.gmra.mrb[30].mxu1 %vm309_vm1, %v8102_v42 }
 0x69d   : > { %11361 = vmatprep.mubr.msk.f32.mxu1 %vm309_vm1, %v8103_v44 }
 0x6a0   : > { %11362 = vmatmul.mubr.msk.f32.gmra.mrb[32].mxu1 %vm309_vm1, %v8104_v15 }
 0x6a1   : > { %11364 = vmatprep.mubr.msk.f32.mxu1 %vm309_vm1, %v8105_v62  ;;  %v14817_v62 = vld [vmem:[#allocation11_spill] sm:$0xff] }
 0x6a4   : > { %11365 = vmatmul.mubr.msk.f32.gmra.mrb[34].mxu1 %vm309_vm1, %v8106_v19 }
 0x733   : > { %v14037_v33 = vpop.f32.mrb[0].mxu1 }
 0x734   : > { %v8502_v55 = vmul.f32 %v14037_v33, %v12901_v48  ;;  %v14041_v12 = vpop.f32.mrb[1].mxu1 }
 0x735   : > { %v8501_v54 = vmul.f32 %v14041_v12, %v12897_v46 }
 0x736   : > { %v8538_v36 = vsel %vm309_vm1, %v8502_v55, 0.0  ;;  %v14818_v55 = vld [vmem:[#allocation10_spill] sm:$0xff] }
 0x737   : > { %v8537_v24 = vsel %vm309_vm1, %v8501_v54, 0.0  ;;  %v14047_v43 = vpop.f32.mrb[2].mxu1 }
 0x738   : > { %v8539_v17 = vadd.f32 %v8538_v36, %v8537_v24  ;;  %v14049_v40 = vpop.f32.mrb[3].mxu1  ;;  %v8504_v56 = vmul.f32 %v14047_v43, %v12903_v49 }
 0x739   : > { %v8503_v5 = vmul.f32 %v14049_v40, %v12899_v47 }
 0x73a   : > { %v8542_v8 = vsel %vm309_vm1, %v8504_v56, 0.0 }
 0x73b   : > { %v8540_v22 = vsel %vm309_vm1, %v8503_v5, 0.0  ;;  %v14056_v39 = vpop.f32.mrb[4].mxu1 }
 0x73c   : > { %v8541_v38 = vadd.f32 %v8540_v22, %v8539_v17  ;;  %v14058_v45 = vpop.f32.mrb[5].mxu1  ;;  %v8506_v10 = vmul.f32 %v14056_v39, %v12907_v51 }
 0x73d   : > { %v8505_v23 = vmul.f32 %v14058_v45, %v14810_v34 }
 0x73e   : > { %v8543_v35 = vadd.f32 %v8542_v8, %v8541_v38  ;;  %v8546_v13 = vsel %vm309_vm1, %v8506_v10, 0.0  ;;  %v14819_v38 = vld [vmem:[#allocation13_spill] sm:$0xff]  ;;  %v14820_v10 = vld [vmem:[#allocation12_spill] sm:$0xff] }
 0x73f   : > { %v8544_v50 = vsel %vm309_vm1, %v8505_v23, 0.0  ;;  %v14066_v41 = vpop.f32.mrb[6].mxu1 }
 0x740   : > { %v8545_v52 = vadd.f32 %v8544_v50, %v8543_v35  ;;  %v14068_v31 = vpop.f32.mrb[7].mxu1  ;;  %v8508_v1 = vmul.f32 %v14066_v41, %v14811_v53 }
 0x741   : > { %v8507_v26 = vmul.f32 %v14068_v31, %v14812_v11 }
 0x742   : > { %v8547_v21 = vadd.f32 %v8546_v13, %v8545_v52  ;;  %v8550_v57 = vsel %vm309_vm1, %v8508_v1, 0.0 }
 0x743   : > { %v8548_v63 = vsel %vm309_vm1, %v8507_v26, 0.0  ;;  %v14076_v6 = vpop.f32.mrb[8].mxu1 }
 0x744   : > { %v8549_v29 = vadd.f32 %v8548_v63, %v8547_v21  ;;  %v14078_v25 = vpop.f32.mrb[9].mxu1  ;;  %v8510_v60 = vmul.f32 %v14076_v6, %v14813_v58  ;;  %v14821_v21 = vld [vmem:[#allocation15_spill] sm:$0xff] }
 0x745   : > { %v8509_v2 = vmul.f32 %v14078_v25, %v14814_v61 }
 0x746   : > { %v8551_v4 = vadd.f32 %v8550_v57, %v8549_v29  ;;  %v8554_v30 = vsel %vm309_vm1, %v8510_v60, 0.0  ;;  %v14822_v29 = vld [vmem:[#allocation14_spill] sm:$0xff] }
 0x747   : > { %v8552_v9 = vsel %vm309_vm1, %v8509_v2, 0.0  ;;  %v14086_v18 = vpop.f32.mrb[10].mxu1 }
 0x748   : > { %v8553_v20 = vadd.f32 %v8552_v9, %v8551_v4  ;;  %v14088_v28 = vpop.f32.mrb[11].mxu1  ;;  %v8512_v59 = vmul.f32 %v14086_v18, %v14815_v37 }
 0x749   : > { %v8511_v14 = vmul.f32 %v14088_v28, %v14816_v0 }
 0x74a   : > { %v8555_v16 = vadd.f32 %v8554_v30, %v8553_v20  ;;  %v8558_v15 = vsel %vm309_vm1, %v8512_v59, 0.0  ;;  %v14823_v59 = vld [vmem:[#allocation17_spill] sm:$0xff] }
 0x74b   : > { %v8556_v27 = vsel %vm309_vm1, %v8511_v14, 0.0  ;;  %v14096_v32 = vpop.f32.mrb[12].mxu1 }
 0x74c   : > { %v8557_v42 = vadd.f32 %v8556_v27, %v8555_v16  ;;  %v14098_v44 = vpop.f32.mrb[13].mxu1  ;;  %v8514_v19 = vmul.f32 %v14096_v32, %v14817_v62  ;;  %v14824_v16 = vld [vmem:[#allocation16_spill] sm:$0xff] }
 0x74d   : > { %v8513_v54 = vmul.f32 %v14098_v44, %v14818_v55  ;;  %v14838_v55 = vld [vmem:[#allocation30_spill] sm:$0xff] }
 0x74e   : > { %v8559_v36 = vadd.f32 %v8558_v15, %v8557_v42  ;;  %v8562_v22 = vsel %vm309_vm1, %v8514_v19, 0.0 }
 0x74f   : > { %v8560_v24 = vsel %vm309_vm1, %v8513_v54, 0.0  ;;  %v14106_v17 = vpop.f32.mrb[14].mxu1 }
 0x750   : > { %v8561_v56 = vadd.f32 %v8560_v24, %v8559_v36  ;;  %v14108_v5 = vpop.f32.mrb[15].mxu1  ;;  %v8516_v8 = vmul.f32 %v14106_v17, %v14819_v38 }
 0x751   : > { %v8515_v23 = vmul.f32 %v14108_v5, %v14820_v10 }
 0x752   : > { %v8563_v35 = vadd.f32 %v8562_v22, %v8561_v56  ;;  %v8566_v26 = vsel %vm309_vm1, %v8516_v8, 0.0  ;;  %v14825_v56 = vld [vmem:[#allocation19_spill] sm:$0xff]  ;;  %v14826_v8 = vld [vmem:[#allocation18_spill] sm:$0xff] }
 0x753   : > { %v8564_v50 = vsel %vm309_vm1, %v8515_v23, 0.0  ;;  %v14116_v52 = vpop.f32.mrb[16].mxu1 }
 0x754   : > { %v8565_v13 = vadd.f32 %v8564_v50, %v8563_v35  ;;  %v14118_v1 = vpop.f32.mrb[17].mxu1  ;;  %v8518_v63 = vmul.f32 %v14116_v52, %v14821_v21 }
 0x755   : > { %v8517_v57 = vmul.f32 %v14118_v1, %v14822_v29  ;;  %v14836_v29 = vld [vmem:[#allocation28_spill] sm:$0xff] }
 0x756   : > { %v8567_v60 = vadd.f32 %v8566_v26, %v8565_v13  ;;  %v8570_v30 = vsel %vm309_vm1, %v8518_v63, 0.0 }
 0x757   : > { %v8568_v2 = vsel %vm309_vm1, %v8517_v57, 0.0  ;;  %v14126_v4 = vpop.f32.mrb[18].mxu1 }
 0x758   : > { %v8569_v9 = vadd.f32 %v8568_v2, %v8567_v60  ;;  %v14128_v20 = vpop.f32.mrb[19].mxu1  ;;  %v8520_v14 = vmul.f32 %v14126_v4, %v14823_v59  ;;  %v14827_v60 = vld [vmem:[#allocation21_spill] sm:$0xff] }
 0x759   : > { %v8519_v27 = vmul.f32 %v14128_v20, %v14824_v16 }
 0x75a   : > { %v8571_v42 = vadd.f32 %v8570_v30, %v8569_v9  ;;  %v8574_v24 = vsel %vm309_vm1, %v8520_v14, 0.0  ;;  %v14828_v9 = vld [vmem:[#allocation20_spill] sm:$0xff] }
 0x75b   : > { %v8572_v15 = vsel %vm309_vm1, %v8519_v27, 0.0  ;;  %v14136_v19 = vpop.f32.mrb[20].mxu1 }
 0x75c   : > { %v8573_v54 = vadd.f32 %v8572_v15, %v8571_v42  ;;  %v14138_v36 = vpop.f32.mrb[21].mxu1  ;;  %v8522_v22 = vmul.f32 %v14136_v19, %v14825_v56 }
 0x75d   : > { %v8521_v23 = vmul.f32 %v14138_v36, %v14826_v8 }
 0x75e   : > { %v8575_v35 = vadd.f32 %v8574_v24, %v8573_v54  ;;  %v8578_v57 = vsel %vm309_vm1, %v8522_v22, 0.0  ;;  %v14830_v22 = vld [vmem:[#allocation22_spill] sm:$0xff] }
 0x75f   : > { %v8576_v50 = vsel %vm309_vm1, %v8521_v23, 0.0  ;;  %v14146_v13 = vpop.f32.mrb[22].mxu1  ;;  %v14829_v23 = vld [vmem:[#allocation23_spill] sm:$0xff] }
 0x760   : > { %v8577_v26 = vadd.f32 %v8576_v50, %v8575_v35  ;;  %v14148_v63 = vpop.f32.mrb[23].mxu1  ;;  %v8524_v2 = vmul.f32 %v14146_v13, %v14827_v60 }
 0x761   : > { %v8523_v30 = vmul.f32 %v14148_v63, %v14828_v9 }
 0x762   : > { %v8579_v14 = vadd.f32 %v8578_v57, %v8577_v26  ;;  %v8582_v24 = vsel %vm309_vm1, %v8524_v2, 0.0  ;;  %v14832_v2 = vld [vmem:[#allocation24_spill] sm:$0xff] }
 0x763   : > { %v8580_v27 = vsel %vm309_vm1, %v8523_v30, 0.0  ;;  %v14156_v42 = vpop.f32.mrb[24].mxu1 }
 0x764   : > { %v8581_v15 = vadd.f32 %v8580_v27, %v8579_v14  ;;  %v14158_v54 = vpop.f32.mrb[25].mxu1  ;;  %v8526_v35 = vmul.f32 %v14156_v42, %v14829_v23  ;;  %v14831_v14 = vld [vmem:[#allocation25_spill] sm:$0xff] }
 0x765   : > { %v8525_v50 = vmul.f32 %v14158_v54, %v14830_v22 }
 0x766   : > { %v8583_v60 = vadd.f32 %v8582_v24, %v8581_v15  ;;  %v8586_v30 = vsel %vm309_vm1, %v8526_v35, 0.0  ;;  %v14834_v35 = vld [vmem:[#allocation26_spill] sm:$0xff] }
 0x767   : > { %v8584_v56 = vsel %vm309_vm1, %v8525_v50, 0.0  ;;  %v14166_v9 = vpop.f32.mrb[26].mxu1 }
 0x768   : > { %v8585_v26 = vadd.f32 %v8584_v56, %v8583_v60  ;;  %v14168_v57 = vpop.f32.mrb[27].mxu1  ;;  %v8528_v27 = vmul.f32 %v14166_v9, %v14831_v14  ;;  %v14833_v60 = vld [vmem:[#allocation27_spill] sm:$0xff] }
 0x769   : > { %v8527_v8 = vmul.f32 %v14168_v57, %v14832_v2 }
 0x76a   : > { %v8587_v23 = vadd.f32 %v8586_v30, %v8585_v26  ;;  %v8590_v56 = vsel %vm309_vm1, %v8528_v27, 0.0 }
 0x76b   : > { %v8588_v59 = vsel %vm309_vm1, %v8527_v8, 0.0  ;;  %v14176_v22 = vpop.f32.mrb[28].mxu1 }
 0x76c   : > { %v8589_v15 = vadd.f32 %v8588_v59, %v8587_v23  ;;  %v14178_v24 = vpop.f32.mrb[29].mxu1  ;;  %v8530_v50 = vmul.f32 %v14176_v22, %v14833_v60  ;;  %v14835_v59 = vld [vmem:[#allocation29_spill] sm:$0xff] }
 0x76d   : > { %v8529_v16 = vmul.f32 %v14178_v24, %v14834_v35 }
 0x76e   : > { %v8591_v14 = vadd.f32 %v8590_v56, %v8589_v15  ;;  %v8594_v30 = vsel %vm309_vm1, %v8530_v50, 0.0 }
 0x76f   : > { %v8592_v21 = vsel %vm309_vm1, %v8529_v16, 0.0  ;;  %v14186_v2 = vpop.f32.mrb[30].mxu1  ;;  %v14837_v16 = vld [vmem:[#allocation31_spill] sm:$0xff] }
 0x770   : > { %v8593_v26 = vadd.f32 %v8592_v21, %v8591_v14  ;;  %v8436_v8 = vpop.f32.mrb[31].mxu1  ;;  %v8532_v23 = vmul.f32 %v14186_v2, %v14835_v59 }
 0x771   : > { %v8531_v27 = vmul.f32 %v8436_v8, %v14836_v29 }
 0x772   : > { %v8595_v38 = vadd.f32 %v8594_v30, %v8593_v26  ;;  %v8598_v15 = vsel %vm309_vm1, %v8532_v23, 0.0 }
 0x773   : > { %v8596_v60 = vsel %vm309_vm1, %v8531_v27, 0.0  ;;  %v11363_v10 = vpop.f32.mrb[32].mxu1 }
 0x774   : > { %v8597_v62 = vadd.f32 %v8596_v60, %v8595_v38  ;;  %v8446_v35 = vpop.f32.mrb[33].mxu1  ;;  %v8534_v56 = vmul.f32 %v11363_v10, %v14837_v16 }
 0x775   : > { %v8533_v21 = vmul.f32 %v8446_v35, %v14838_v55 }
 0x776   : > { %v8599_v14 = vadd.f32 %v8598_v15, %v8597_v62  ;;  %v8602_v29 = vsel %vm309_vm1, %v8534_v56, 0.0 }
 0x777   : > { %v8600_v50 = vsel %vm309_vm1, %v8533_v21, 0.0  ;;  %v11366_v37 = vpop.f32.mrb[34].mxu1 }
 0x778   : > { %v8601_v0 = vadd.f32 %v8600_v50, %v8599_v14  ;;  %v8456_v59 = vpop.f32.mrb[35].mxu1  ;;  %v8536_v26 = vmul.f32 %v11366_v37, %v14809_v3 }
 0x779   : > { %v8535_v30 = vmul.f32 %v8456_v59, %v13127_v7 }
 0x77a   : > { %v8603_v38 = vadd.f32 %v8602_v29, %v8601_v0  ;;  %v8606_v27 = vsel %vm309_vm1, %v8536_v26, 0.0 }
 0x77b   : > { %v8604_v60 = vsel %vm309_vm1, %v8535_v30, 0.0 }
 0x77c   : > { %v8605_v23 = vadd.f32 %v8604_v60, %v8603_v38 }
 0x77e   : > { %v8607_v16 = vadd.f32 %v8606_v27, %v8605_v23 }
 0x780   : > { %v8608_v55 = vrot.slane %v8607_v16, 4 }
 0x782   : > { %v8609_v62 = vadd.f32 %v8608_v55, %v8607_v16 }
 0x784   : > { %v8610_v15 = vrot.slane %v8609_v62, 2 }
 0x786   : > { %v8611_v21 = vadd.f32 %v8610_v15, %v8609_v62 }
 0x788   : > { %v8612_v58 = vrot.slane %v8611_v21, 1 }
 0x78a   : > { %v8613_v14 = vadd.f32 %v8612_v58, %v8611_v21 }
 0x78c   : > { %v8614_v50 = vmul.f32 0.00390625, %v8613_v14 }
 0x78e   : > { %v14203_v56 = vsub.f32 %v14041_v12, %v8614_v50  ;;  %v14206_v3 = vsub.f32 %v14037_v33, %v8614_v50  ;;  %v14209_v0 = vsub.f32 %v14049_v40, %v8614_v50  ;;  %v14212_v29 = vsub.f32 %v14047_v43, %v8614_v50 }
 0x78f   : > { %v14215_v26 = vsub.f32 %v14058_v45, %v8614_v50  ;;  %v14218_v55 = vsub.f32 %v14056_v39, %v8614_v50  ;;  %v14221_v58 = vsub.f32 %v14068_v31, %v8614_v50  ;;  %v14224_v12 = vsub.f32 %v14066_v41, %v8614_v50 }
 0x790   : > { %v14227_v33 = vsub.f32 %v14078_v25, %v8614_v50  ;;  %v14230_v40 = vsub.f32 %v14076_v6, %v8614_v50  ;;  %v14233_v43 = vsub.f32 %v14088_v28, %v8614_v50  ;;  %v14236_v45 = vsub.f32 %v14086_v18, %v8614_v50 }
 0x791   : > { %v14239_v39 = vsub.f32 %v14098_v44, %v8614_v50  ;;  %v14242_v31 = vsub.f32 %v14096_v32, %v8614_v50  ;;  %v14245_v41 = vsub.f32 %v14108_v5, %v8614_v50  ;;  %v14248_v25 = vsub.f32 %v14106_v17, %v8614_v50 }
 0x792   : > { %v14251_v6 = vsub.f32 %v14118_v1, %v8614_v50  ;;  %v14254_v28 = vsub.f32 %v14116_v52, %v8614_v50  ;;  %v14257_v18 = vsub.f32 %v14128_v20, %v8614_v50  ;;  %v14260_v44 = vsub.f32 %v14126_v4, %v8614_v50 }
 0x793   : > { %v14263_v32 = vsub.f32 %v14138_v36, %v8614_v50  ;;  %v14266_v5 = vsub.f32 %v14136_v19, %v8614_v50  ;;  %v14269_v17 = vsub.f32 %v14148_v63, %v8614_v50  ;;  %v14272_v1 = vsub.f32 %v14146_v13, %v8614_v50 }
 0x794   : > { %v14275_v52 = vsub.f32 %v14158_v54, %v8614_v50  ;;  %v14278_v20 = vsub.f32 %v14156_v42, %v8614_v50  ;;  %v14281_v4 = vsub.f32 %v14168_v57, %v8614_v50  ;;  %v14284_v36 = vsub.f32 %v14166_v9, %v8614_v50 }
 0x795   : > { %v14287_v19 = vsub.f32 %v14178_v24, %v8614_v50  ;;  %v14290_v63 = vsub.f32 %v14176_v22, %v8614_v50  ;;  %v14292_v13 = vsub.f32 %v8436_v8, %v8614_v50  ;;  %v14295_v54 = vsub.f32 %v14186_v2, %v8614_v50 }
 0x796   : > { %v14297_v16 = vsub.f32 %v8446_v35, %v8614_v50  ;;  %v14299_v42 = vsub.f32 %v11363_v10, %v8614_v50  ;;  %v14301_v57 = vsub.f32 %v8456_v59, %v8614_v50  ;;  %v14303_v30 = vsub.f32 %v11366_v37, %v8614_v50 }
 0x797   : > { %v8651_v9 = vmul.f32 %v14203_v56, %v14203_v56  ;;  %v8652_v22 = vmul.f32 %v14206_v3, %v14206_v3  ;;  %v8653_v24 = vmul.f32 %v14209_v0, %v14209_v0  ;;  %v8654_v2 = vmul.f32 %v14212_v29, %v14212_v29 }
 0x798   : > { %v8655_v37 = vmul.f32 %v14215_v26, %v14215_v26  ;;  %v8656_v59 = vmul.f32 %v14218_v55, %v14218_v55  ;;  %v8659_v50 = vmul.f32 %v14227_v33, %v14227_v33 }
 0x799   : > { %v8687_v35 = vmul.f32 %v8651_v9, %v12897_v46  ;;  %v8688_v10 = vmul.f32 %v8652_v22, %v12901_v48  ;;  %v8689_v8 = vmul.f32 %v8653_v24, %v12899_v47  ;;  %v8690_v38 = vmul.f32 %v8654_v2, %v12903_v49 }
 0x79a   : > { %v8657_v46 = vmul.f32 %v14221_v58, %v14221_v58  ;;  %v8691_v48 = vmul.f32 %v8655_v37, %v14810_v34  ;;  %v8658_v47 = vmul.f32 %v14224_v12, %v14224_v12  ;;  %v8692_v21 = vmul.f32 %v8656_v59, %v12907_v51 }
 0x79b   : > { %v8723_v60 = vsel %vm309_vm1, %v8687_v35, 0.0  ;;  %v8724_v23 = vsel %vm309_vm1, %v8688_v10, 0.0  ;;  %v8726_v62 = vsel %vm309_vm1, %v8689_v8, 0.0  ;;  %v8728_v49 = vsel %vm309_vm1, %v8690_v38, 0.0  ;;  %v14839_v38 = vld [vmem:[#allocation7_spill] sm:$0xff] }
 0x79c   : > { %v8725_v27 = vadd.f32 %v8724_v23, %v8723_v60  ;;  %v8693_v9 = vmul.f32 %v8657_v46, %v14812_v11  ;;  %v8730_v22 = vsel %vm309_vm1, %v8691_v48, 0.0  ;;  %v8660_v34 = vmul.f32 %v14230_v40, %v14230_v40  ;;  %v14840_v46 = vld [vmem:[#allocation8_spill] sm:$0xff] }
 0x79d   : > { %v8694_v2 = vmul.f32 %v8658_v47, %v14811_v53  ;;  %v8732_v35 = vsel %vm309_vm1, %v8692_v21, 0.0  ;;  %v8661_v51 = vmul.f32 %v14233_v43, %v14233_v43  ;;  %v8695_v37 = vmul.f32 %v8659_v50, %v14814_v61  ;;  %v14841_v47 = vld [vmem:[#allocation9_spill] sm:$0xff] }
 0x79e   : > { %v8727_v15 = vadd.f32 %v8726_v62, %v8725_v27  ;;  %v8734_v8 = vsel %vm309_vm1, %v8693_v9, 0.0  ;;  %v8662_v11 = vmul.f32 %v14236_v45, %v14236_v45  ;;  %v8696_v60 = vmul.f32 %v8660_v34, %v14839_v38  ;;  %v14842_v9 = vld [vmem:[#allocation10_spill] sm:$0xff] }
 0x79f   : > { %v8736_v23 = vsel %vm309_vm1, %v8694_v2, 0.0  ;;  %v8663_v53 = vmul.f32 %v14239_v39, %v14239_v39  ;;  %v8697_v48 = vmul.f32 %v8661_v51, %v14840_v46  ;;  %v8738_v62 = vsel %vm309_vm1, %v8695_v37, 0.0 }
 0x7a0   : > { %v8729_v14 = vadd.f32 %v8728_v49, %v8727_v15  ;;  %v8664_v61 = vmul.f32 %v14242_v31, %v14242_v31  ;;  %v8698_v21 = vmul.f32 %v8662_v11, %v14841_v47  ;;  %v8740_v49 = vsel %vm309_vm1, %v8696_v60, 0.0 }
 0x7a1   : > { %v8665_v50 = vmul.f32 %v14245_v41, %v14245_v41  ;;  %v8666_v2 = vmul.f32 %v14248_v25, %v14248_v25 }
 0x7a2   : > { %v8731_v24 = vadd.f32 %v8730_v22, %v8729_v14  ;;  %v8699_v22 = vmul.f32 %v8663_v53, %v14842_v9  ;;  %v8744_v51 = vsel %vm309_vm1, %v8698_v21, 0.0 }
 0x7a4   : > { %v8733_v10 = vadd.f32 %v8732_v35, %v8731_v24  ;;  %v8742_v24 = vsel %vm309_vm1, %v8697_v48, 0.0  ;;  %v14843_v35 = vld [vmem:[#allocation11_spill] sm:$0xff]  ;;  %v8746_v38 = vsel %vm309_vm1, %v8699_v22, 0.0 }
 0x7a6   : > { %v8735_v59 = vadd.f32 %v8734_v8, %v8733_v10  ;;  %v8700_v10 = vmul.f32 %v8664_v61, %v14843_v35  ;;  %v8667_v8 = vmul.f32 %v14251_v6, %v14251_v6 }
 0x7a8   : > { %v8737_v27 = vadd.f32 %v8736_v23, %v8735_v59  ;;  %v14844_v59 = vld [vmem:[#allocation12_spill] sm:$0xff]  ;;  %v8668_v23 = vmul.f32 %v14254_v28, %v14254_v28  ;;  %v8748_v46 = vsel %vm309_vm1, %v8700_v10, 0.0 }
 0x7a9   : > { %v8701_v11 = vmul.f32 %v8665_v50, %v14844_v59 }
 0x7aa   : > { %v8739_v15 = vadd.f32 %v8738_v62, %v8737_v27  ;;  %v14845_v27 = vld [vmem:[#allocation13_spill] sm:$0xff]  ;;  %v8669_v62 = vmul.f32 %v14257_v18, %v14257_v18 }
 0x7ab   : > { %v8702_v53 = vmul.f32 %v8666_v2, %v14845_v27  ;;  %v8750_v47 = vsel %vm309_vm1, %v8701_v11, 0.0 }
 0x7ac   : > { %v8741_v14 = vadd.f32 %v8740_v49, %v8739_v15  ;;  %v14846_v15 = vld [vmem:[#allocation14_spill] sm:$0xff]  ;;  %v8670_v49 = vmul.f32 %v14260_v44, %v14260_v44 }
 0x7ad   : > { %v8703_v61 = vmul.f32 %v8667_v8, %v14846_v15  ;;  %v8752_v9 = vsel %vm309_vm1, %v8702_v53, 0.0 }
 0x7ae   : > { %v8743_v34 = vadd.f32 %v8742_v24, %v8741_v14  ;;  %v14847_v14 = vld [vmem:[#allocation15_spill] sm:$0xff]  ;;  %v8671_v24 = vmul.f32 %v14263_v32, %v14263_v32 }
 0x7af   : > { %v8704_v50 = vmul.f32 %v8668_v23, %v14847_v14  ;;  %v8754_v35 = vsel %vm309_vm1, %v8703_v61, 0.0 }
 0x7b0   : > { %v8745_v37 = vadd.f32 %v8744_v51, %v8743_v34  ;;  %v14848_v34 = vld [vmem:[#allocation16_spill] sm:$0xff]  ;;  %v8672_v51 = vmul.f32 %v14266_v5, %v14266_v5 }
 0x7b1   : > { %v8705_v2 = vmul.f32 %v8669_v62, %v14848_v34  ;;  %v8756_v59 = vsel %vm309_vm1, %v8704_v50, 0.0 }
 0x7b2   : > { %v8747_v60 = vadd.f32 %v8746_v38, %v8745_v37  ;;  %v14849_v37 = vld [vmem:[#allocation17_spill] sm:$0xff]  ;;  %v8673_v38 = vmul.f32 %v14269_v17, %v14269_v17 }
 0x7b3   : > { %v8706_v8 = vmul.f32 %v8670_v49, %v14849_v37  ;;  %v8758_v27 = vsel %vm309_vm1, %v8705_v2, 0.0 }
 0x7b4   : > { %v8749_v48 = vadd.f32 %v8748_v46, %v8747_v60  ;;  %v14850_v60 = vld [vmem:[#allocation18_spill] sm:$0xff]  ;;  %v8674_v46 = vmul.f32 %v14272_v1, %v14272_v1 }
 0x7b5   : > { %v8707_v23 = vmul.f32 %v8671_v24, %v14850_v60  ;;  %v8760_v15 = vsel %vm309_vm1, %v8706_v8, 0.0 }
 0x7b6   : > { %v8751_v21 = vadd.f32 %v8750_v47, %v8749_v48  ;;  %v14851_v48 = vld [vmem:[#allocation19_spill] sm:$0xff]  ;;  %v8675_v47 = vmul.f32 %v14275_v52, %v14275_v52 }
 0x7b7   : > { %v8708_v62 = vmul.f32 %v8672_v51, %v14851_v48  ;;  %v8762_v14 = vsel %vm309_vm1, %v8707_v23, 0.0 }
 0x7b8   : > { %v8753_v22 = vadd.f32 %v8752_v9, %v8751_v21  ;;  %v14852_v21 = vld [vmem:[#allocation20_spill] sm:$0xff]  ;;  %v8676_v9 = vmul.f32 %v14278_v20, %v14278_v20 }
 0x7b9   : > { %v8709_v49 = vmul.f32 %v8673_v38, %v14852_v21  ;;  %v8764_v34 = vsel %vm309_vm1, %v8708_v62, 0.0 }
 0x7ba   : > { %v8755_v10 = vadd.f32 %v8754_v35, %v8753_v22  ;;  %v14853_v22 = vld [vmem:[#allocation21_spill] sm:$0xff]  ;;  %v8677_v35 = vmul.f32 %v14281_v4, %v14281_v4 }
 0x7bb   : > { %v8710_v24 = vmul.f32 %v8674_v46, %v14853_v22  ;;  %v8766_v37 = vsel %vm309_vm1, %v8709_v49, 0.0 }
 0x7bc   : > { %v8757_v11 = vadd.f32 %v8756_v59, %v8755_v10  ;;  %v14854_v10 = vld [vmem:[#allocation22_spill] sm:$0xff]  ;;  %v8678_v59 = vmul.f32 %v14284_v36, %v14284_v36 }
 0x7bd   : > { %v8711_v51 = vmul.f32 %v8675_v47, %v14854_v10  ;;  %v8768_v60 = vsel %vm309_vm1, %v8710_v24, 0.0 }
 0x7be   : > { %v8759_v53 = vadd.f32 %v8758_v27, %v8757_v11  ;;  %v14855_v11 = vld [vmem:[#allocation23_spill] sm:$0xff]  ;;  %v8679_v27 = vmul.f32 %v14287_v19, %v14287_v19 }
 0x7bf   : > { %v8712_v38 = vmul.f32 %v8676_v9, %v14855_v11  ;;  %v8770_v48 = vsel %vm309_vm1, %v8711_v51, 0.0 }
 0x7c0   : > { %v8761_v61 = vadd.f32 %v8760_v15, %v8759_v53  ;;  %v14856_v53 = vld [vmem:[#allocation24_spill] sm:$0xff]  ;;  %v8680_v15 = vmul.f32 %v14290_v63, %v14290_v63 }
 0x7c1   : > { %v8713_v46 = vmul.f32 %v8677_v35, %v14856_v53  ;;  %v8772_v21 = vsel %vm309_vm1, %v8712_v38, 0.0 }
 0x7c2   : > { %v8763_v50 = vadd.f32 %v8762_v14, %v8761_v61  ;;  %v14857_v61 = vld [vmem:[#allocation25_spill] sm:$0xff]  ;;  %v8681_v14 = vmul.f32 %v14292_v13, %v14292_v13 }
 0x7c3   : > { %v8714_v47 = vmul.f32 %v8678_v59, %v14857_v61  ;;  %v8774_v22 = vsel %vm309_vm1, %v8713_v46, 0.0 }
 0x7c4   : > { %v8765_v2 = vadd.f32 %v8764_v34, %v8763_v50  ;;  %v14858_v50 = vld [vmem:[#allocation26_spill] sm:$0xff]  ;;  %v8682_v34 = vmul.f32 %v14295_v54, %v14295_v54 }
 0x7c5   : > { %v8715_v9 = vmul.f32 %v8679_v27, %v14858_v50  ;;  %v8776_v10 = vsel %vm309_vm1, %v8714_v47, 0.0 }
 0x7c6   : > { %v8767_v8 = vadd.f32 %v8766_v37, %v8765_v2  ;;  %v14859_v2 = vld [vmem:[#allocation27_spill] sm:$0xff]  ;;  %v8683_v37 = vmul.f32 %v14297_v16, %v14297_v16 }
 0x7c7   : > { %v8716_v35 = vmul.f32 %v8680_v15, %v14859_v2  ;;  %v8778_v11 = vsel %vm309_vm1, %v8715_v9, 0.0  ;;  %v14864_v2 = vld [vmem:[#allocation32_spill] sm:$0xff] }
 0x7c8   : > { %v8769_v23 = vadd.f32 %v8768_v60, %v8767_v8  ;;  %v14860_v8 = vld [vmem:[#allocation28_spill] sm:$0xff]  ;;  %v8684_v60 = vmul.f32 %v14299_v42, %v14299_v42 }
 0x7c9   : > { %v8717_v59 = vmul.f32 %v8681_v14, %v14860_v8  ;;  %v8780_v53 = vsel %vm309_vm1, %v8716_v35, 0.0 }
 0x7ca   : > { %v8771_v62 = vadd.f32 %v8770_v48, %v8769_v23  ;;  %v14861_v23 = vld [vmem:[#allocation29_spill] sm:$0xff]  ;;  %v8685_v48 = vmul.f32 %v14301_v57, %v14301_v57 }
 0x7cb   : > { %v8718_v27 = vmul.f32 %v8682_v34, %v14861_v23  ;;  %v8782_v61 = vsel %vm309_vm1, %v8717_v59, 0.0 }
 0x7cc   : > { %v8773_v49 = vadd.f32 %v8772_v21, %v8771_v62  ;;  %v14862_v62 = vld [vmem:[#allocation30_spill] sm:$0xff]  ;;  %v8686_v21 = vmul.f32 %v14303_v30, %v14303_v30 }
 0x7cd   : > { %v8719_v15 = vmul.f32 %v8683_v37, %v14862_v62  ;;  %v8784_v50 = vsel %vm309_vm1, %v8718_v27, 0.0 }
 0x7ce   : > { %v8775_v24 = vadd.f32 %v8774_v22, %v8773_v49  ;;  %v14863_v49 = vld [vmem:[#allocation31_spill] sm:$0xff]  ;;  %v8721_v22 = vmul.f32 %v8685_v48, %v13127_v7  ;;  %v8722_v35 = vmul.f32 %v8686_v21, %v14864_v2  ;;  %v8846_v2 = vld [vmem:[%s12019_s24 + $0x4b] sm:$0xff] }
 0x7cf   : > { %v8720_v14 = vmul.f32 %v8684_v60, %v14863_v49 }
 0x7d0   : > { %v8777_v51 = vadd.f32 %v8776_v10, %v8775_v24  ;;  %v8786_v24 = vsel %vm309_vm1, %v8719_v15, 0.0  ;;  %v8790_v37 = vsel %vm309_vm1, %v8721_v22, 0.0  ;;  %v8792_v59 = vsel %vm309_vm1, %v8722_v35, 0.0  ;;  %v8843_v22 = vld [vmem:[%s12019_s24 + $0x33] sm:$0xff] }
 0x7d1   : > { %v8788_v10 = vsel %vm309_vm1, %v8720_v14, 0.0  ;;  %v8847_v35 = vld [vmem:[%s12019_s24 + $0x53] sm:$0xff] }
 0x7d2   : > { %v8779_v38 = vadd.f32 %v8778_v11, %v8777_v51 }
 0x7d4   : > { %v8781_v46 = vadd.f32 %v8780_v53, %v8779_v38 }
 0x7d6   : > { %v8783_v47 = vadd.f32 %v8782_v61, %v8781_v46 }
 0x7d8   : > { %v8785_v9 = vadd.f32 %v8784_v50, %v8783_v47 }
 0x7da   : > { %v8787_v34 = vadd.f32 %v8786_v24, %v8785_v9  ;;  %v8844_v24 = vld [vmem:[%s12019_s24 + $0x3b] sm:$0xff] }
 0x7dc   : > { %v8789_v51 = vadd.f32 %v8788_v10, %v8787_v34  ;;  %v8845_v34 = vld [vmem:[%s12019_s24 + $0x43] sm:$0xff]  ;;  %v8848_v10 = vld [vmem:[%s12019_s24 + $0x5b] sm:$0xff] }
 0x7de   : > { %v8791_v8 = vadd.f32 %v8790_v37, %v8789_v51  ;;  %v8849_v51 = vld [vmem:[%s12019_s24 + $0x63] sm:$0xff]  ;;  %v8850_v37 = vld [vmem:[%s12019_s24 + $0x6b] sm:$0xff] }
 0x7e0   : > { %v8793_v11 = vadd.f32 %v8792_v59, %v8791_v8  ;;  %v8851_v8 = vld [vmem:[%s12019_s24 + $0x73] sm:$0xff]  ;;  %v8852_v59 = vld [vmem:[%s12019_s24 + $0x7b] sm:$0xff] }
 0x7e2   : > { %v8794_v38 = vrot.slane %v8793_v11, 4 }
 0x7e4   : > { %v8795_v60 = vadd.f32 %v8794_v38, %v8793_v11  ;;  %v8853_v11 = vld [vmem:[%s12019_s24 + $0x83] sm:$0xff]  ;;  %v8854_v38 = vld [vmem:[%s12019_s24 + $0x8b] sm:$0xff] }
 0x7e6   : > { %v8796_v23 = vrot.slane %v8795_v60, 2 }
 0x7e8   : > { %v8797_v27 = vadd.f32 %v8796_v23, %v8795_v60  ;;  %v8855_v60 = vld [vmem:[%s12019_s24 + $0x93] sm:$0xff]  ;;  %v8856_v23 = vld [vmem:[%s12019_s24 + $0x9b] sm:$0xff] }
 0x7ea   : > { %v8798_v53 = vrot.slane %v8797_v27, 1 }
 0x7ec   : > { %v8799_v7 = vadd.f32 %v8798_v53, %v8797_v27  ;;  %v8857_v27 = vld [vmem:[%s12019_s24 + $0xa3] sm:$0xff]  ;;  %v8858_v53 = vld [vmem:[%s12019_s24 + $0xab] sm:$0xff] }
 0x7ee   : > { %v8800_v46 = vmul.f32 0.00390625, %v8799_v7 }
 0x7f0   : > { %v8801_v48 = vadd.f32 1e-05, %v8800_v46 }
 0x7f2   : > { %11959 = vrsqrt.f32 %v8801_v48 }
 0x7fc   : > { %v11960_v62 = vpop.eup %11959 }
 0x7fd   : > { %v8803_v15 = vmul.f32 %v11960_v62, %v14203_v56  ;;  %v8804_v61 = vmul.f32 %v11960_v62, %v14206_v3  ;;  %v8805_v47 = vmul.f32 %v11960_v62, %v14209_v0  ;;  %v8806_v21 = vmul.f32 %v11960_v62, %v14212_v29 }
 0x7fe   : > { %v8807_v49 = vmul.f32 %v11960_v62, %v14215_v26  ;;  %v8808_v14 = vmul.f32 %v11960_v62, %v14218_v55  ;;  %v8809_v50 = vmul.f32 %v11960_v62, %v14221_v58  ;;  %v8810_v9 = vmul.f32 %v11960_v62, %v14224_v12 }
 0x7ff   : > { %v14458_v56 = vmul.f32 %v11960_v62, %v14227_v33  ;;  %v14461_v3 = vmul.f32 %v11960_v62, %v14230_v40  ;;  %v14464_v0 = vmul.f32 %v11960_v62, %v14233_v43  ;;  %v14467_v29 = vmul.f32 %v11960_v62, %v14236_v45 }
 0x800   : > { %v14470_v26 = vmul.f32 %v11960_v62, %v14239_v39  ;;  %v14473_v55 = vmul.f32 %v11960_v62, %v14242_v31  ;;  %v14476_v58 = vmul.f32 %v11960_v62, %v14245_v41  ;;  %v14479_v12 = vmul.f32 %v11960_v62, %v14248_v25  ;;  %v8839_v39 = vld [vmem:[%s12019_s24 + $0x13] sm:$0xff]  ;;  %v8840_v31 = vld [vmem:[%s12019_s24 + $0x1b] sm:$0xff]  ;;  %v8841_v41 = vld [vmem:[%s12019_s24 + $0x23] sm:$0xff] }
 0x801   : > { %v14483_v33 = vmul.f32 %v11960_v62, %v14251_v6  ;;  %v14486_v40 = vmul.f32 %v11960_v62, %v14254_v28  ;;  %v14489_v43 = vmul.f32 %v11960_v62, %v14257_v18  ;;  %v14492_v45 = vmul.f32 %v11960_v62, %v14260_v44  ;;  %v8842_v25 = vld [vmem:[%s12019_s24 + $0x2b] sm:$0xff] }
 0x802   : > { %v14499_v6 = vmul.f32 %v11960_v62, %v14263_v32  ;;  %v14502_v28 = vmul.f32 %v11960_v62, %v14266_v5  ;;  %v14505_v18 = vmul.f32 %v11960_v62, %v14269_v17  ;;  %v14508_v44 = vmul.f32 %v11960_v62, %v14272_v1 }
 0x803   : > { %v14515_v32 = vmul.f32 %v11960_v62, %v14275_v52  ;;  %v14518_v5 = vmul.f32 %v11960_v62, %v14278_v20  ;;  %v14521_v17 = vmul.f32 %v11960_v62, %v14281_v4  ;;  %v14524_v1 = vmul.f32 %v11960_v62, %v14284_v36 }
 0x804   : > { %v14531_v52 = vmul.f32 %v11960_v62, %v14287_v19  ;;  %v14534_v20 = vmul.f32 %v11960_v62, %v14290_v63  ;;  %v14537_v4 = vmul.f32 %v11960_v62, %v14292_v13  ;;  %v14540_v36 = vmul.f32 %v11960_v62, %v14295_v54 }
 0x805   : > { %v14553_v19 = vmul.f32 %v11960_v62, %v14297_v16  ;;  %v14556_v63 = vmul.f32 %v11960_v62, %v14299_v42  ;;  %v14559_v13 = vmul.f32 %v11960_v62, %v14301_v57  ;;  %v14562_v54 = vmul.f32 %v11960_v62, %v14303_v30  ;;  %v8859_v16 = vld [vmem:[%s12019_s24 + $0xb3] sm:$0xff]  ;;  %v8860_v57 = vld [vmem:[%s12019_s24 + $0xbb] sm:$0xff]  ;;  %v8862_v30 = vld [vmem:[%s12019_s24 + $0xcb] sm:$0xff] }
 0x806   : > { %14865 = vst [vmem:[#allocation3_spill] sm:$0xff] %v14537_v4  ;;  %14866 = vst [vmem:[#allocation5_spill] sm:$0xff] %v14540_v36  ;;  %v8875_v7 = vadd.f32 %v8839_v39, %v8803_v15  ;;  %v8876_v46 = vadd.f32 %v8840_v31, %v8804_v61  ;;  %v8877_v48 = vadd.f32 %v8841_v41, %v8805_v47  ;;  %v8863_v36 = vld [vmem:[%s12019_s24 + $0xd3] sm:$0xff]  ;;  %v8864_v4 = vld [vmem:[%s12019_s24 + $0xdb] sm:$0xff] }
 0x807   : > { %14867 = vst [vmem:[#allocation4_spill] sm:$0xff] %v14553_v19  ;;  %14868 = vst [vmem:[#allocation6_spill] sm:$0xff] %v14556_v63  ;;  %v8878_v42 = vadd.f32 %v8842_v25, %v8806_v21  ;;  %v8879_v62 = vadd.f32 %v8843_v22, %v8807_v49  ;;  %v8881_v63 = vadd.f32 %v8845_v34, %v8809_v50  ;;  %v8865_v15 = vld [vmem:[%s12019_s24 + $0xe3] sm:$0xff]  ;;  %v8867_v50 = vld [vmem:[%s12019_s24 + $0xf3] sm:$0xff] }
 0x808   : > { %14869 = vst [vmem:[#allocation7_spill] sm:$0xff] %v14559_v13  ;;  %14870 = vst [vmem:[#allocation8_spill] sm:$0xff] %v14562_v54  ;;  %v8861_v13 = vld [vmem:[%s12019_s24 + $0xc3] sm:$0xff]  ;;  %v8880_v54 = vadd.f32 %v8844_v24, %v8808_v14  ;;  %v8882_v19 = vadd.f32 %v8846_v2, %v8810_v9  ;;  %v8883_v61 = vadd.f32 %v8847_v35, %v14458_v56  ;;  %v8866_v14 = vld [vmem:[%s12019_s24 + $0xeb] sm:$0xff] }
 0x809   : > { %v8884_v47 = vadd.f32 %v8848_v10, %v14461_v3  ;;  %v8885_v21 = vadd.f32 %v8849_v51, %v14464_v0  ;;  %v8886_v49 = vadd.f32 %v8850_v37, %v14467_v29  ;;  %8911 = vst.msk [vmem:[%s14550_s14] sm:$0xff] %vm309_vm1, %v8875_v7  ;;  %8912 = vst.msk [vmem:[%s14550_s14 + $0x8] sm:$0xff] %vm309_vm1, %v8876_v46  ;;  %v8868_v9 = vld [vmem:[%s12019_s24 + $0xfb] sm:$0xff]  ;;  %v8870_v39 = vld [vmem:[%s12019_s24 + $0x10b] sm:$0xff] }
 0x80a   : > { %8913 = vst.msk [vmem:[%s14550_s14 + $0x10] sm:$0xff] %vm309_vm1, %v8877_v48  ;;  %8914 = vst.msk [vmem:[%s14550_s14 + $0x18] sm:$0xff] %vm309_vm1, %v8878_v42  ;;  %v8887_v56 = vadd.f32 %v8851_v8, %v14470_v26  ;;  %v8888_v3 = vadd.f32 %v8852_v59, %v14473_v55  ;;  %v8889_v0 = vadd.f32 %v8853_v11, %v14476_v58  ;;  %v8869_v26 = vld [vmem:[%s12019_s24 + $0x103] sm:$0xff]  ;;  %v8871_v55 = vld [vmem:[%s12019_s24 + $0x113] sm:$0xff] }
 0x80b   : > { %v8890_v29 = vadd.f32 %v8854_v38, %v14479_v12  ;;  %8915 = vst.msk [vmem:[%s14550_s14 + $0x20] sm:$0xff] %vm309_vm1, %v8879_v62  ;;  %8916 = vst.msk [vmem:[%s14550_s14 + $0x28] sm:$0xff] %vm309_vm1, %v8880_v54  ;;  %v8891_v58 = vadd.f32 %v8855_v60, %v14483_v33  ;;  %v8892_v12 = vadd.f32 %v8856_v23, %v14486_v40  ;;  %v8872_v25 = vld [vmem:[%s12019_s24 + $0x11b] sm:$0xff]  ;;  %v8873_v33 = vld [vmem:[%s12019_s24 + $0x123] sm:$0xff] }
 0x80c   : > { %8917 = vst.msk [vmem:[%s14550_s14 + $0x30] sm:$0xff] %vm309_vm1, %v8881_v63  ;;  %8918 = vst.msk [vmem:[%s14550_s14 + $0x38] sm:$0xff] %vm309_vm1, %v8882_v19  ;;  %v8893_v31 = vadd.f32 %v8857_v27, %v14489_v43  ;;  %v8894_v41 = vadd.f32 %v8858_v53, %v14492_v45  ;;  %v8874_v40 = vld [vmem:[%s12019_s24 + $0x12b] sm:$0xff]  ;;  %v8895_v43 = vadd.f32 %v8859_v16, %v14499_v6 }
 0x80d   : > { %8919 = vst.msk [vmem:[%s14550_s14 + $0x40] sm:$0xff] %vm309_vm1, %v8883_v61  ;;  %8920 = vst.msk [vmem:[%s14550_s14 + $0x48] sm:$0xff] %vm309_vm1, %v8884_v47  ;;  %v8896_v22 = vadd.f32 %v8860_v57, %v14502_v28  ;;  %v8897_v45 = vadd.f32 %v8861_v13, %v14505_v18  ;;  %v8898_v24 = vadd.f32 %v8862_v30, %v14508_v44 }
 0x80e   : > { %8921 = vst.msk [vmem:[%s14550_s14 + $0x50] sm:$0xff] %vm309_vm1, %v8885_v21  ;;  %8922 = vst.msk [vmem:[%s14550_s14 + $0x58] sm:$0xff] %vm309_vm1, %v8886_v49  ;;  %v8899_v6 = vadd.f32 %v8863_v36, %v14515_v32  ;;  %v8900_v28 = vadd.f32 %v8864_v4, %v14518_v5  ;;  %v8901_v18 = vadd.f32 %v8865_v15, %v14521_v17  ;;  %v14871_v32 = vld [vmem:[#allocation3_spill] sm:$0xff]  ;;  %v14872_v17 = vld [vmem:[#allocation5_spill] sm:$0xff] }
 0x80f   : > { %8923 = vst.msk [vmem:[%s14550_s14 + $0x60] sm:$0xff] %vm309_vm1, %v8887_v56  ;;  %8924 = vst.msk [vmem:[%s14550_s14 + $0x68] sm:$0xff] %vm309_vm1, %v8888_v3  ;;  %v8902_v44 = vadd.f32 %v8866_v14, %v14524_v1  ;;  %v8903_v34 = vadd.f32 %v8867_v50, %v14531_v52  ;;  %v8904_v2 = vadd.f32 %v8868_v9, %v14534_v20  ;;  %v14873_v35 = vld [vmem:[#allocation4_spill] sm:$0xff]  ;;  %v14874_v51 = vld [vmem:[#allocation6_spill] sm:$0xff] }
 0x810   : > { %8925 = vst.msk [vmem:[%s14550_s14 + $0x70] sm:$0xff] %vm309_vm1, %v8889_v0  ;;  %8926 = vst.msk [vmem:[%s14550_s14 + $0x78] sm:$0xff] %vm309_vm1, %v8890_v29  ;;  %v8905_v5 = vadd.f32 %v8869_v26, %v14871_v32  ;;  %v8906_v1 = vadd.f32 %v8870_v39, %v14872_v17  ;;  %v8907_v10 = vadd.f32 %v8871_v55, %v14873_v35  ;;  %v14875_v52 = vld [vmem:[#allocation7_spill] sm:$0xff]  ;;  %v14876_v4 = vld [vmem:[#allocation8_spill] sm:$0xff] }
 0x811   : > { %8927 = vst.msk [vmem:[%s14550_s14 + $0x80] sm:$0xff] %vm309_vm1, %v8891_v58  ;;  %8928 = vst.msk [vmem:[%s14550_s14 + $0x88] sm:$0xff] %vm309_vm1, %v8892_v12  ;;  %v8908_v37 = vadd.f32 %v8872_v25, %v14874_v51  ;;  %v8909_v20 = vadd.f32 %v8873_v33, %v14875_v52  ;;  %v8910_v36 = vadd.f32 %v8874_v40, %v14876_v4 }
 0x812   : > { %8929 = vst.msk [vmem:[%s14550_s14 + $0x90] sm:$0xff] %vm309_vm1, %v8893_v31  ;;  %8930 = vst.msk [vmem:[%s14550_s14 + $0x98] sm:$0xff] %vm309_vm1, %v8894_v41 }
 0x813   : > { %8931 = vst.msk [vmem:[%s14550_s14 + $0xa0] sm:$0xff] %vm309_vm1, %v8895_v43  ;;  %8932 = vst.msk [vmem:[%s14550_s14 + $0xa8] sm:$0xff] %vm309_vm1, %v8896_v22 }
 0x814   : > { %8933 = vst.msk [vmem:[%s14550_s14 + $0xb0] sm:$0xff] %vm309_vm1, %v8897_v45  ;;  %8934 = vst.msk [vmem:[%s14550_s14 + $0xb8] sm:$0xff] %vm309_vm1, %v8898_v24 }
 0x815   : > { %8935 = vst.msk [vmem:[%s14550_s14 + $0xc0] sm:$0xff] %vm309_vm1, %v8899_v6  ;;  %8936 = vst.msk [vmem:[%s14550_s14 + $0xc8] sm:$0xff] %vm309_vm1, %v8900_v28 }
 0x816   : > { %8937 = vst.msk [vmem:[%s14550_s14 + $0xd0] sm:$0xff] %vm309_vm1, %v8901_v18  ;;  %8938 = vst.msk [vmem:[%s14550_s14 + $0xd8] sm:$0xff] %vm309_vm1, %v8902_v44 }
 0x817   : > { %8939 = vst.msk [vmem:[%s14550_s14 + $0xe0] sm:$0xff] %vm309_vm1, %v8903_v34  ;;  %8940 = vst.msk [vmem:[%s14550_s14 + $0xe8] sm:$0xff] %vm309_vm1, %v8904_v2 }
 0x818   : > { %8941 = vst.msk [vmem:[%s14550_s14 + $0xf0] sm:$0xff] %vm309_vm1, %v8905_v5  ;;  %8942 = vst.msk [vmem:[%s14550_s14 + $0xf8] sm:$0xff] %vm309_vm1, %v8906_v1 }
 0x819   : > { %8943 = vst.msk [vmem:[%s14550_s14 + $0x100] sm:$0xff] %vm309_vm1, %v8907_v10  ;;  %8944 = vst.msk [vmem:[%s14550_s14 + $0x108] sm:$0xff] %vm309_vm1, %v8908_v37 }
 0x81a   : > { %8945 = vst.msk [vmem:[%s14550_s14 + $0x110] sm:$0xff] %vm309_vm1, %v8909_v20  ;;  %8946 = vst.msk [vmem:[%s14550_s14 + $0x118] sm:$0xff] %vm309_vm1, %v8910_v36 }
 0x81b PF: > { %s14_s15 = sadd.s32 1, %s11967_s15  }
 0x81c   : > { %p11_p4 = scmp.ge.s32.totalorder %s14_s15, 4  }
 0x81e   :  { %13 = sbr.rel (!%p11_p4) target bundleno = 1 (0x1), region = 82 }

</bundles_post_ra>
